<compile_context>
chip_gen: v7x
topology: tpu7x:2x2x1
jax: 0.10.0
libtpu: 0.0.40
codegen_flags: <defaults>
</compile_context>

<pallas_src>
import functools
import math

import jax
import jax.numpy as jnp
from jax import lax
from jax.experimental import pallas as pl
from jax.experimental.pallas import tpu as pltpu


def _round_up(x, m):
    return (x + m - 1) // m * m


def _make_fused_kernel(num_layers, S, BP, I, H, OP, O):
    """Fused forward pass. Ref order:
       inputs : x (S*BP, I) time-major rows,
                per layer: wih_f (in, 8H), wih_b (in, 8H), b_f (1, 8H), b_b (1, 8H), wblk (2H, 8H),
                h0cat (L, BP, 2H), c0cat (L, BP, 2H), w_out (H, OP), b_out (1, OP)
       outputs: probs (S*BP, OP), hncat (L, BP, 2H), cncat (L, BP, 2H)
       scratch: xg_f (S, BP, 8H), xg_b (S, BP, 8H), y_f (S, BP, H), y_b (S, BP, H)
    """
    L = num_layers
    G8 = 8 * H

    def kernel(*refs):
        it = iter(refs)
        x_ref = next(it)
        layers = [tuple(next(it) for _ in range(5)) for _ in range(L)]
        h0_ref, c0_ref, wout_ref, bout_ref = next(it), next(it), next(it), next(it)
        probs_ref, hn_ref, cn_ref = next(it), next(it), next(it)
        xg_f_ref, xg_b_ref, y_f_ref, y_b_ref = next(it), next(it), next(it), next(it)

        # Lane mask selecting the "g" (cell-candidate, tanh) gate block [4H:6H); loop invariant.
        lane = lax.broadcasted_iota(jnp.int32, (BP, G8), 1)
        g_mask = (lane >= 4 * H) & (lane < 6 * H)

        for l in range(L):
            wih_f_ref, wih_b_ref, b_f_ref, b_b_ref, wblk_ref = layers[l]

            # ---- (1) hoisted full-sequence input projection, bias folded in ----
            if l == 0:
                xin = jnp.maximum(x_ref[...], 0.0)               # F.relu(input_), (S*BP, I)
                pf = jnp.dot(xin, wih_f_ref[...], preferred_element_type=jnp.float32)
                pb = jnp.dot(xin, wih_b_ref[...], preferred_element_type=jnp.float32)
            else:
                yf2 = y_f_ref[...].reshape(S * BP, H)            # prev-layer fwd outputs
                yb2 = y_b_ref[...].reshape(S * BP, H)            # prev-layer bwd outputs
                pf = (jnp.dot(yf2, wih_f_ref[:H], preferred_element_type=jnp.float32)
                      + jnp.dot(yb2, wih_f_ref[H:], preferred_element_type=jnp.float32))
                pb = (jnp.dot(yf2, wih_b_ref[:H], preferred_element_type=jnp.float32)
                      + jnp.dot(yb2, wih_b_ref[H:], preferred_element_type=jnp.float32))
            xg_f_ref[...] = (pf + b_f_ref[...]).reshape(S, BP, G8)
            xg_b_ref[...] = (pb + b_b_ref[...]).reshape(S, BP, G8)

            # ---- (2) fwd + bwd recurrences interleaved in ONE serial loop ----
            # Hoisting the (2H, 8H) block-diag weight into vregs is fine at H=32 (16 vregs);
            # for H >= 64 read wblk_ref[...] inside step() instead to avoid spills.
            wblk = wblk_ref[...]

            def step(t, carry, wblk=wblk):
                h2, c2 = carry                                   # h2/c2 = [fwd | bwd], (BP, 2H)
                tb = S - 1 - t                                   # original time of the bwd chain
                # One MXU push yields all 8 gate pre-activations for both directions.
                pre = (jnp.dot(h2, wblk, preferred_element_type=jnp.float32)
                       + xg_f_ref[t] + xg_b_ref[tb])             # (BP, 8H)
                act = jnp.where(g_mask, jnp.tanh(pre), jax.nn.sigmoid(pre))
                i2 = act[:, 0:2 * H]
                f2 = act[:, 2 * H:4 * H]
                g2 = act[:, 4 * H:6 * H]
                o2 = act[:, 6 * H:8 * H]
                c2_new = f2 * c2 + i2 * g2
                h2_new = o2 * jnp.tanh(c2_new)
                y_f_ref[t] = h2_new[:, :H]                       # fwd output at original time t
                y_b_ref[tb] = h2_new[:, H:2 * H]                 # bwd output at original time tb
                return h2_new, c2_new

            h2_fin, c2_fin = lax.fori_loop(
                0, S, step, (h0_ref[l], c0_ref[l]),
                unroll=(True if S <= 8 else 8))
            hn_ref[l] = h2_fin
            cn_ref[l] = c2_fin

        # ---- (3) fwd+bwd sum -> Linear -> softmax (lane-dense, padded lanes masked in-kernel) ----
        summed = (y_f_ref[...] + y_b_ref[...]).reshape(S * BP, H)
        logits = jnp.dot(summed, wout_ref[...],
                         preferred_element_type=jnp.float32) + bout_ref[...]
        out_lane = lax.broadcasted_iota(jnp.int32, (S * BP, OP), 1)
        logits = jnp.where(out_lane < O, logits, -1e30)
        m = jnp.max(logits, axis=-1, keepdims=True)
        e = jnp.exp(logits - m)
        denom = jnp.sum(e, axis=-1, keepdims=True)
        probs_ref[...] = e * pl.reciprocal(denom, approx=False)

    return kernel


def _interleave_cols(w4, H, direction):
    """(in, 4H) gate-major [i f g o]  ->  (in, 8H) interleaved [i_f i_b | f_f f_b | ...],
    with zeros at the other direction's columns."""
    in_dim = w4.shape[0]
    w8 = jnp.zeros((in_dim, 8 * H), jnp.float32)
    for g in range(4):
        c0 = g * 2 * H + direction * H
        w8 = w8.at[:, c0:c0 + H].set(w4[:, g * H:(g + 1) * H])
    return w8


def _prep_layer(dir_params, H):
    """PyTorch per-layer weights -> kernel layout (gate-fused, direction-fused, K-major)."""
    (wih_f, whh_f, bih_f, bhh_f), (wih_b, whh_b, bih_b, bhh_b) = dir_params
    wih_f_i = _interleave_cols(wih_f.T, H, 0)                       # (in, 8H)
    wih_b_i = _interleave_cols(wih_b.T, H, 1)                       # (in, 8H)
    b_f_i = _interleave_cols((bih_f + bhh_f).reshape(1, 4 * H), H, 0)
    b_b_i = _interleave_cols((bih_b + bhh_b).reshape(1, 4 * H), H, 1)
    wblk = jnp.concatenate([_interleave_cols(whh_f.T, H, 0),        # block-diag (2H, 8H)
                            _interleave_cols(whh_b.T, H, 1)], axis=0)
    return [wih_f_i, wih_b_i, b_f_i, b_b_i, wblk]


@functools.partial(jax.jit, static_argnames=("num_layers",))
def q_predictor_forward(params, input_, hidden, *, num_layers):
    h0, c0 = hidden                                    # (2L, B, H) each
    B, S, I = input_.shape
    H = h0.shape[-1]
    O = params["w_out"].shape[0]
    OP = _round_up(max(O, 128), 128)                   # lane-dense padded output width
    BP = max(8, _round_up(B, 8))                       # sublane-aligned batch
    L = num_layers

    # Layout plumbing only; all compute happens inside the kernel.
    x_tm = jnp.transpose(input_, (1, 0, 2))                                     # (S, B, I)
    x_tm = jnp.zeros((S, BP, I), jnp.float32).at[:, :B].set(x_tm).reshape(S * BP, I)
    inputs = [x_tm]
    for l in range(L):
        inputs.extend(_prep_layer(params["lstm"][l], H))
    h0p = jnp.zeros((2 * L, BP, H), jnp.float32).at[:, :B].set(h0)
    c0p = jnp.zeros((2 * L, BP, H), jnp.float32).at[:, :B].set(c0)
    h0cat = jnp.concatenate([h0p[0::2], h0p[1::2]], axis=-1)                    # (L, BP, 2H)
    c0cat = jnp.concatenate([c0p[0::2], c0p[1::2]], axis=-1)                    # (L, BP, 2H)
    wout_k = jnp.zeros((H, OP), jnp.float32).at[:, :O].set(params["w_out"].T)
    bout_k = jnp.zeros((1, OP), jnp.float32).at[0, :O].set(params["b_out"])
    inputs.extend([h0cat, c0cat, wout_k, bout_k])

    out_shapes = (
        jax.ShapeDtypeStruct((S * BP, OP), jnp.float32),
        jax.ShapeDtypeStruct((L, BP, 2 * H), jnp.float32),
        jax.ShapeDtypeStruct((L, BP, 2 * H), jnp.float32),
    )
    scratch = [
        pltpu.VMEM((S, BP, 8 * H), jnp.float32),   # hoisted gate projections, fwd (bias folded in)
        pltpu.VMEM((S, BP, 8 * H), jnp.float32),   # hoisted gate projections, bwd
        pltpu.VMEM((S, BP, H), jnp.float32),       # fwd layer outputs
        pltpu.VMEM((S, BP, H), jnp.float32),       # bwd layer outputs
    ]

    # Explicit VMEM budget (feedback): residents + scratch + headroom.
    resident = sum(int(a.size) for a in inputs) * 4
    resident += sum(math.prod(s.shape) for s in out_shapes) * 4
    resident += (2 * S * BP * 8 * H + 2 * S * BP * H) * 4
    vmem_limit = int(min(max(2 * resident + (1 << 20), 16 << 20), 100 << 20))

    vmem = pl.BlockSpec(memory_space=pltpu.MemorySpace.VMEM)
    probs, hncat, cncat = pl.pallas_call(
        _make_fused_kernel(L, S, BP, I, H, OP, O),
        out_shape=out_shapes,
        in_specs=[vmem] * len(inputs),
        out_specs=(vmem, vmem, vmem),
        scratch_shapes=scratch,
        compiler_params=pltpu.CompilerParams(vmem_limit_bytes=vmem_limit),
    )(*inputs)

    output = jnp.transpose(probs.reshape(S, BP, OP)[:, :B, :O], (1, 0, 2))      # (B, S, O)
    h_n = jnp.stack([hncat[:, :B, :H], hncat[:, :B, H:]], axis=1).reshape(2 * L, B, H)
    c_n = jnp.stack([cncat[:, :B, :H], cncat[:, :B, H:]], axis=1).reshape(2 * L, B, H)
    return output, (h_n, c_n)


def q_predictor_reference(params, input_, hidden, num_layers):
    """Pure-JAX reference matching torch.nn.LSTM semantics (for correctness checking)."""
    h0, c0 = hidden
    _, S, _ = input_.shape
    H = h0.shape[-1]
    dot = functools.partial(jnp.dot, precision=jax.lax.Precision.HIGHEST)
    layer_in = jnp.maximum(input_, 0.0)
    hn, cn = [], []
    for l in range(num_layers):
        outs = []
        for d in range(2):
            w_ih, w_hh, b_ih, b_hh = params["lstm"][l][d]
            h = h0[2 * l + d]
            c = c0[2 * l + d]
            order = range(S) if d == 0 else range(S - 1, -1, -1)
            ys = [None] * S
            for t in order:
                xt = layer_in[:, t, :]
                gates = dot(xt, w_ih.T) + dot(h, w_hh.T) + b_ih + b_hh
                i_g = jax.nn.sigmoid(gates[:, :H])
                f_g = jax.nn.sigmoid(gates[:, H:2 * H])
                g_g = jnp.tanh(gates[:, 2 * H:3 * H])
                o_g = jax.nn.sigmoid(gates[:, 3 * H:])
                c = f_g * c + i_g * g_g
                h = o_g * jnp.tanh(c)
                ys[t] = h
            outs.append(jnp.stack(ys, axis=1))
            hn.append(h)
            cn.append(c)
        layer_in = jnp.concatenate(outs, axis=-1)
    summed = layer_in[:, :, H:] + layer_in[:, :, :H]
    logits = dot(summed, params["w_out"].T) + params["b_out"]
    probs = jax.nn.softmax(logits, axis=2)
    return probs, (jnp.stack(hn, 0), jnp.stack(cn, 0))


def init_params(key, hidden_size, output_size, input_size, num_layers):
    """PyTorch-default uniform(-1/sqrt(H), 1/sqrt(H)) init in torch.nn.LSTM layout."""
    H = hidden_size
    bound = 1.0 / jnp.sqrt(jnp.float32(H))

    def u(k, shape):
        return jax.random.uniform(k, shape, jnp.float32, -bound, bound)

    params = {"lstm": []}
    for l in range(num_layers):
        in_dim = input_size if l == 0 else 2 * H
        dirs = []
        for d in range(2):
            key, k1, k2, k3, k4 = jax.random.split(key, 5)
            dirs.append((u(k1, (4 * H, in_dim)),   # weight_ih
                         u(k2, (4 * H, H)),        # weight_hh
                         u(k3, (4 * H,)),          # bias_ih
                         u(k4, (4 * H,))))         # bias_hh
        params["lstm"].append(dirs)
    key, k1, k2 = jax.random.split(key, 3)
    params["w_out"] = u(k1, (output_size, H))
    params["b_out"] = u(k2, (output_size,))
    # NOTE: nn.Embedding(output_size, hidden_size) exists in __init__ but is unused in forward().
    return params


if __name__ == "__main__":
    B, S = 2, 8
    input_size, hidden_size, output_size, num_layers = 16, 32, 16, 2

    key = jax.random.PRNGKey(0)
    kp, kx, kh, kc = jax.random.split(key, 4)

    params = init_params(kp, hidden_size, output_size, input_size, num_layers)
    input_ = jax.random.normal(kx, (B, S, input_size), jnp.float32)
    h0 = jax.random.normal(kh, (2 * num_layers, B, hidden_size), jnp.float32)
    c0 = jax.random.normal(kc, (2 * num_layers, B, hidden_size), jnp.float32)

    output, (h_n, c_n) = q_predictor_forward(params, input_, (h0, c0),
                                             num_layers=num_layers)
    jax.block_until_ready((output, h_n, c_n))

    assert output.shape == (B, S, output_size)
    assert h_n.shape == (2 * num_layers, B, hidden_size)
    assert c_n.shape == (2 * num_layers, B, hidden_size)
    assert bool(jnp.all(jnp.isfinite(output)))
    row_sums = jnp.sum(output, axis=-1)
    assert bool(jnp.all(jnp.abs(row_sums - 1.0) < 1e-4))

    # Pure-JAX reference check (non-negotiable correctness gate).
    ref_out, (ref_h, ref_c) = q_predictor_reference(params, input_, (h0, c0), num_layers)
    assert bool(jnp.max(jnp.abs(output - ref_out)) < 2e-3)
    assert bool(jnp.max(jnp.abs(h_n - ref_h)) < 2e-3)
    assert bool(jnp.max(jnp.abs(c_n - ref_c)) < 5e-3)

    print("KERNEL_OK")
</pallas_src>

<mosaic_0001>
module attributes {stable_mosaic.version = 11 : i64} {
  func.func @kernel(%arg0: memref<64x16xf32, #tpu.memory_space<vmem>>, %arg1: memref<16x256xf32, #tpu.memory_space<vmem>>, %arg2: memref<16x256xf32, #tpu.memory_space<vmem>>, %arg3: memref<1x256xf32, #tpu.memory_space<vmem>>, %arg4: memref<1x256xf32, #tpu.memory_space<vmem>>, %arg5: memref<64x256xf32, #tpu.memory_space<vmem>>, %arg6: memref<64x256xf32, #tpu.memory_space<vmem>>, %arg7: memref<64x256xf32, #tpu.memory_space<vmem>>, %arg8: memref<1x256xf32, #tpu.memory_space<vmem>>, %arg9: memref<1x256xf32, #tpu.memory_space<vmem>>, %arg10: memref<64x256xf32, #tpu.memory_space<vmem>>, %arg11: memref<2x8x64xf32, #tpu.memory_space<vmem>>, %arg12: memref<2x8x64xf32, #tpu.memory_space<vmem>>, %arg13: memref<32x128xf32, #tpu.memory_space<vmem>>, %arg14: memref<1x128xf32, #tpu.memory_space<vmem>>, %arg15: memref<64x128xf32, #tpu.memory_space<vmem>>, %arg16: memref<2x8x64xf32, #tpu.memory_space<vmem>>, %arg17: memref<2x8x64xf32, #tpu.memory_space<vmem>>, %arg18: memref<8x8x256xf32, #tpu.memory_space<vmem>>, %arg19: memref<8x8x256xf32, #tpu.memory_space<vmem>>, %arg20: memref<8x8x32xf32, #tpu.memory_space<vmem>>, %arg21: memref<8x8x32xf32, #tpu.memory_space<vmem>>) attributes {dimension_semantics = [], scalar_prefetch = 0 : i64, scratch_operands = 4 : i64, tpu.core_type = #tpu.core_type<tc>} {
    %0 = tpu.iota {dimensions = array<i32: 1>} : vector<8x256xi32>
    %c128_i32 = arith.constant 128 : i32
    %1 = vector.broadcast %c128_i32 : i32 to vector<8x256xi32>
    %2 = arith.cmpi sge, %0, %1 : vector<8x256xi32>
    %c192_i32 = arith.constant 192 : i32
    %3 = vector.broadcast %c192_i32 : i32 to vector<8x256xi32>
    %4 = arith.cmpi slt, %0, %3 : vector<8x256xi32>
    %5 = arith.andi %2, %4 : vector<8x256xi1>
    %c0 = arith.constant 0 : index
    %c0_0 = arith.constant 0 : index
    %6 = vector.load %arg0[%c0, %c0_0] : memref<64x16xf32, #tpu.memory_space<vmem>>, vector<64x16xf32>
    %cst = arith.constant 0.000000e+00 : f32
    %7 = vector.broadcast %cst : f32 to vector<64x16xf32>
    %8 = arith.maximumf %6, %7 : vector<64x16xf32>
    %c0_1 = arith.constant 0 : index
    %c0_2 = arith.constant 0 : index
    %9 = vector.load %arg1[%c0_1, %c0_2] : memref<16x256xf32, #tpu.memory_space<vmem>>, vector<16x256xf32>
    %cst_3 = arith.constant dense<0.000000e+00> : vector<64x256xf32>
    %10 = tpu.matmul %8, %9, %cst_3 {dimension_numbers = #tpu.dot_dimension_numbers<[1], [0], [0], [1], [0, 0, 1, 1], [], []>} : vector<64x16xf32>, vector<16x256xf32>, vector<64x256xf32> -> vector<64x256xf32>
    %c0_4 = arith.constant 0 : index
    %c0_5 = arith.constant 0 : index
    %11 = vector.load %arg2[%c0_4, %c0_5] : memref<16x256xf32, #tpu.memory_space<vmem>>, vector<16x256xf32>
    %cst_6 = arith.constant dense<0.000000e+00> : vector<64x256xf32>
    %12 = tpu.matmul %8, %11, %cst_6 {dimension_numbers = #tpu.dot_dimension_numbers<[1], [0], [0], [1], [0, 0, 1, 1], [], []>} : vector<64x16xf32>, vector<16x256xf32>, vector<64x256xf32> -> vector<64x256xf32>
    %c0_7 = arith.constant 0 : index
    %c0_8 = arith.constant 0 : index
    %13 = vector.load %arg3[%c0_7, %c0_8] : memref<1x256xf32, #tpu.memory_space<vmem>>, vector<1x256xf32>
    %14 = vector.broadcast %13 : vector<1x256xf32> to vector<64x256xf32>
    %15 = arith.addf %10, %14 : vector<64x256xf32>
    %16 = vector.shape_cast %15 : vector<64x256xf32> to vector<8x8x256xf32>
    %c0_9 = arith.constant 0 : index
    %c0_10 = arith.constant 0 : index
    %c0_11 = arith.constant 0 : index
    %17 = vector.load %arg18[%c0_9, %c0_10, %c0_11] : memref<8x8x256xf32, #tpu.memory_space<vmem>>, vector<8x8x256xf32>
    tpu.vector_store %arg18[%c0_9, %c0_10, %c0_11], %16 {strides = array<i32>} : memref<8x8x256xf32, #tpu.memory_space<vmem>>, vector<8x8x256xf32>,
    %c0_12 = arith.constant 0 : index
    %c0_13 = arith.constant 0 : index
    %18 = vector.load %arg4[%c0_12, %c0_13] : memref<1x256xf32, #tpu.memory_space<vmem>>, vector<1x256xf32>
    %19 = vector.broadcast %18 : vector<1x256xf32> to vector<64x256xf32>
    %20 = arith.addf %12, %19 : vector<64x256xf32>
    %21 = vector.shape_cast %20 : vector<64x256xf32> to vector<8x8x256xf32>
    %c0_14 = arith.constant 0 : index
    %c0_15 = arith.constant 0 : index
    %c0_16 = arith.constant 0 : index
    %22 = vector.load %arg19[%c0_14, %c0_15, %c0_16] : memref<8x8x256xf32, #tpu.memory_space<vmem>>, vector<8x8x256xf32>
    tpu.vector_store %arg19[%c0_14, %c0_15, %c0_16], %21 {strides = array<i32>} : memref<8x8x256xf32, #tpu.memory_space<vmem>>, vector<8x8x256xf32>,
    %c0_17 = arith.constant 0 : index
    %c0_18 = arith.constant 0 : index
    %23 = vector.load %arg5[%c0_17, %c0_18] : memref<64x256xf32, #tpu.memory_space<vmem>>, vector<64x256xf32>
    %c0_19 = arith.constant 0 : index
    %c0_20 = arith.constant 0 : index
    %c0_21 = arith.constant 0 : index
    %24 = vector.load %arg11[%c0_19, %c0_20, %c0_21] : memref<2x8x64xf32, #tpu.memory_space<vmem>>, vector<1x8x64xf32>
    %25 = vector.shape_cast %24 : vector<1x8x64xf32> to vector<8x64xf32>
    %c0_22 = arith.constant 0 : index
    %c0_23 = arith.constant 0 : index
    %c0_24 = arith.constant 0 : index
    %26 = vector.load %arg12[%c0_22, %c0_23, %c0_24] : memref<2x8x64xf32, #tpu.memory_space<vmem>>, vector<1x8x64xf32>
    %27 = vector.shape_cast %26 : vector<1x8x64xf32> to vector<8x64xf32>
    %c0_i32 = arith.constant 0 : i32
    %c7_i32 = arith.constant 7 : i32
    %28 = arith.subi %c7_i32, %c0_i32 : i32
    %cst_25 = arith.constant dense<0.000000e+00> : vector<8x256xf32>
    %29 = tpu.matmul %25, %23, %cst_25 {dimension_numbers = #tpu.dot_dimension_numbers<[1], [0], [0], [1], [0, 0, 1, 1], [], []>} : vector<8x64xf32>, vector<64x256xf32>, vector<8x256xf32> -> vector<8x256xf32>
    %30 = arith.index_cast %c0_i32 : i32 to index
    %c0_26 = arith.constant 0 : index
    %c0_27 = arith.constant 0 : index
    %31 = vector.load %arg18[%30, %c0_26, %c0_27] : memref<8x8x256xf32, #tpu.memory_space<vmem>>, vector<1x8x256xf32>
    %32 = vector.shape_cast %31 : vector<1x8x256xf32> to vector<8x256xf32>
    %33 = arith.addf %29, %32 : vector<8x256xf32>
    %34 = arith.index_cast %28 : i32 to index
    %c0_28 = arith.constant 0 : index
    %c0_29 = arith.constant 0 : index
    %35 = vector.load %arg19[%34, %c0_28, %c0_29] : memref<8x8x256xf32, #tpu.memory_space<vmem>>, vector<1x8x256xf32>
    %36 = vector.shape_cast %35 : vector<1x8x256xf32> to vector<8x256xf32>
    %37 = arith.addf %33, %36 : vector<8x256xf32>
    %38 = math.tanh %37 : vector<8x256xf32>
    %39 = arith.negf %37 : vector<8x256xf32>
    %40 = math.exp %39 : vector<8x256xf32>
    %cst_30 = arith.constant 1.000000e+00 : f32
    %41 = vector.broadcast %cst_30 : f32 to vector<8x256xf32>
    %42 = arith.addf %41, %40 : vector<8x256xf32>
    %43 = arith.divf %41, %42 : vector<8x256xf32>
    %44 = arith.select %5, %38, %43 : vector<8x256xi1>, vector<8x256xf32>
    %45 = vector.extract_strided_slice %44 {offsets = [0, 0], sizes = [8, 64], strides = [1, 1]} : vector<8x256xf32> to vector<8x64xf32>
    %46 = vector.extract_strided_slice %44 {offsets = [0, 64], sizes = [8, 64], strides = [1, 1]} : vector<8x256xf32> to vector<8x64xf32>
    %47 = vector.extract_strided_slice %44 {offsets = [0, 128], sizes = [8, 64], strides = [1, 1]} : vector<8x256xf32> to vector<8x64xf32>
    %48 = vector.extract_strided_slice %44 {offsets = [0, 192], sizes = [8, 64], strides = [1, 1]} : vector<8x256xf32> to vector<8x64xf32>
    %49 = arith.mulf %46, %27 : vector<8x64xf32>
    %50 = arith.mulf %45, %47 : vector<8x64xf32>
    %51 = arith.addf %49, %50 : vector<8x64xf32>
    %52 = math.tanh %51 : vector<8x64xf32>
    %53 = arith.mulf %48, %52 : vector<8x64xf32>
    %54 = vector.extract_strided_slice %53 {offsets = [0, 0], sizes = [8, 32], strides = [1, 1]} : vector<8x64xf32> to vector<8x32xf32>
    %55 = arith.index_cast %c0_i32 : i32 to index
    %c0_31 = arith.constant 0 : index
    %c0_32 = arith.constant 0 : index
    %56 = vector.load %arg20[%55, %c0_31, %c0_32] : memref<8x8x32xf32, #tpu.memory_space<vmem>>, vector<1x8x32xf32>
    %57 = vector.shape_cast %56 : vector<1x8x32xf32> to vector<8x32xf32>
    %58 = vector.shape_cast %54 : vector<8x32xf32> to vector<1x8x32xf32>
    tpu.vector_store %arg20[%55, %c0_31, %c0_32], %58 {strides = array<i32>} : memref<8x8x32xf32, #tpu.memory_space<vmem>>, vector<1x8x32xf32>,
    %59 = vector.extract_strided_slice %53 {offsets = [0, 32], sizes = [8, 32], strides = [1, 1]} : vector<8x64xf32> to vector<8x32xf32>
    %60 = arith.index_cast %28 : i32 to index
    %c0_33 = arith.constant 0 : index
    %c0_34 = arith.constant 0 : index
    %61 = vector.load %arg21[%60, %c0_33, %c0_34] : memref<8x8x32xf32, #tpu.memory_space<vmem>>, vector<1x8x32xf32>
    %62 = vector.shape_cast %61 : vector<1x8x32xf32> to vector<8x32xf32>
    %63 = vector.shape_cast %59 : vector<8x32xf32> to vector<1x8x32xf32>
    tpu.vector_store %arg21[%60, %c0_33, %c0_34], %63 {strides = array<i32>} : memref<8x8x32xf32, #tpu.memory_space<vmem>>, vector<1x8x32xf32>,
    %c1_i32 = arith.constant 1 : i32
    %c7_i32_35 = arith.constant 7 : i32
    %64 = arith.subi %c7_i32_35, %c1_i32 : i32
    %cst_36 = arith.constant dense<0.000000e+00> : vector<8x256xf32>
    %65 = tpu.matmul %53, %23, %cst_36 {dimension_numbers = #tpu.dot_dimension_numbers<[1], [0], [0], [1], [0, 0, 1, 1], [], []>} : vector<8x64xf32>, vector<64x256xf32>, vector<8x256xf32> -> vector<8x256xf32>
    %66 = arith.index_cast %c1_i32 : i32 to index
    %c0_37 = arith.constant 0 : index
    %c0_38 = arith.constant 0 : index
    %67 = vector.load %arg18[%66, %c0_37, %c0_38] : memref<8x8x256xf32, #tpu.memory_space<vmem>>, vector<1x8x256xf32>
    %68 = vector.shape_cast %67 : vector<1x8x256xf32> to vector<8x256xf32>
    %69 = arith.addf %65, %68 : vector<8x256xf32>
    %70 = arith.index_cast %64 : i32 to index
    %c0_39 = arith.constant 0 : index
    %c0_40 = arith.constant 0 : index
    %71 = vector.load %arg19[%70, %c0_39, %c0_40] : memref<8x8x256xf32, #tpu.memory_space<vmem>>, vector<1x8x256xf32>
    %72 = vector.shape_cast %71 : vector<1x8x256xf32> to vector<8x256xf32>
    %73 = arith.addf %69, %72 : vector<8x256xf32>
    %74 = math.tanh %73 : vector<8x256xf32>
    %75 = arith.negf %73 : vector<8x256xf32>
    %76 = math.exp %75 : vector<8x256xf32>
    %cst_41 = arith.constant 1.000000e+00 : f32
    %77 = vector.broadcast %cst_41 : f32 to vector<8x256xf32>
    %78 = arith.addf %77, %76 : vector<8x256xf32>
    %79 = arith.divf %77, %78 : vector<8x256xf32>
    %80 = arith.select %5, %74, %79 : vector<8x256xi1>, vector<8x256xf32>
    %81 = vector.extract_strided_slice %80 {offsets = [0, 0], sizes = [8, 64], strides = [1, 1]} : vector<8x256xf32> to vector<8x64xf32>
    %82 = vector.extract_strided_slice %80 {offsets = [0, 64], sizes = [8, 64], strides = [1, 1]} : vector<8x256xf32> to vector<8x64xf32>
    %83 = vector.extract_strided_slice %80 {offsets = [0, 128], sizes = [8, 64], strides = [1, 1]} : vector<8x256xf32> to vector<8x64xf32>
    %84 = vector.extract_strided_slice %80 {offsets = [0, 192], sizes = [8, 64], strides = [1, 1]} : vector<8x256xf32> to vector<8x64xf32>
    %85 = arith.mulf %82, %51 : vector<8x64xf32>
    %86 = arith.mulf %81, %83 : vector<8x64xf32>
    %87 = arith.addf %85, %86 : vector<8x64xf32>
    %88 = math.tanh %87 : vector<8x64xf32>
    %89 = arith.mulf %84, %88 : vector<8x64xf32>
    %90 = vector.extract_strided_slice %89 {offsets = [0, 0], sizes = [8, 32], strides = [1, 1]} : vector<8x64xf32> to vector<8x32xf32>
    %91 = arith.index_cast %c1_i32 : i32 to index
    %c0_42 = arith.constant 0 : index
    %c0_43 = arith.constant 0 : index
    %92 = vector.load %arg20[%91, %c0_42, %c0_43] : memref<8x8x32xf32, #tpu.memory_space<vmem>>, vector<1x8x32xf32>
    %93 = vector.shape_cast %92 : vector<1x8x32xf32> to vector<8x32xf32>
    %94 = vector.shape_cast %90 : vector<8x32xf32> to vector<1x8x32xf32>
    tpu.vector_store %arg20[%91, %c0_42, %c0_43], %94 {strides = array<i32>} : memref<8x8x32xf32, #tpu.memory_space<vmem>>, vector<1x8x32xf32>,
    %95 = vector.extract_strided_slice %89 {offsets = [0, 32], sizes = [8, 32], strides = [1, 1]} : vector<8x64xf32> to vector<8x32xf32>
    %96 = arith.index_cast %64 : i32 to index
    %c0_44 = arith.constant 0 : index
    %c0_45 = arith.constant 0 : index
    %97 = vector.load %arg21[%96, %c0_44, %c0_45] : memref<8x8x32xf32, #tpu.memory_space<vmem>>, vector<1x8x32xf32>
    %98 = vector.shape_cast %97 : vector<1x8x32xf32> to vector<8x32xf32>
    %99 = vector.shape_cast %95 : vector<8x32xf32> to vector<1x8x32xf32>
    tpu.vector_store %arg21[%96, %c0_44, %c0_45], %99 {strides = array<i32>} : memref<8x8x32xf32, #tpu.memory_space<vmem>>, vector<1x8x32xf32>,
    %c2_i32 = arith.constant 2 : i32
    %c7_i32_46 = arith.constant 7 : i32
    %100 = arith.subi %c7_i32_46, %c2_i32 : i32
    %cst_47 = arith.constant dense<0.000000e+00> : vector<8x256xf32>
    %101 = tpu.matmul %89, %23, %cst_47 {dimension_numbers = #tpu.dot_dimension_numbers<[1], [0], [0], [1], [0, 0, 1, 1], [], []>} : vector<8x64xf32>, vector<64x256xf32>, vector<8x256xf32> -> vector<8x256xf32>
    %102 = arith.index_cast %c2_i32 : i32 to index
    %c0_48 = arith.constant 0 : index
    %c0_49 = arith.constant 0 : index
    %103 = vector.load %arg18[%102, %c0_48, %c0_49] : memref<8x8x256xf32, #tpu.memory_space<vmem>>, vector<1x8x256xf32>
    %104 = vector.shape_cast %103 : vector<1x8x256xf32> to vector<8x256xf32>
    %105 = arith.addf %101, %104 : vector<8x256xf32>
    %106 = arith.index_cast %100 : i32 to index
    %c0_50 = arith.constant 0 : index
    %c0_51 = arith.constant 0 : index
    %107 = vector.load %arg19[%106, %c0_50, %c0_51] : memref<8x8x256xf32, #tpu.memory_space<vmem>>, vector<1x8x256xf32>
    %108 = vector.shape_cast %107 : vector<1x8x256xf32> to vector<8x256xf32>
    %109 = arith.addf %105, %108 : vector<8x256xf32>
    %110 = math.tanh %109 : vector<8x256xf32>
    %111 = arith.negf %109 : vector<8x256xf32>
    %112 = math.exp %111 : vector<8x256xf32>
    %cst_52 = arith.constant 1.000000e+00 : f32
    %113 = vector.broadcast %cst_52 : f32 to vector<8x256xf32>
    %114 = arith.addf %113, %112 : vector<8x256xf32>
    %115 = arith.divf %113, %114 : vector<8x256xf32>
    %116 = arith.select %5, %110, %115 : vector<8x256xi1>, vector<8x256xf32>
    %117 = vector.extract_strided_slice %116 {offsets = [0, 0], sizes = [8, 64], strides = [1, 1]} : vector<8x256xf32> to vector<8x64xf32>
    %118 = vector.extract_strided_slice %116 {offsets = [0, 64], sizes = [8, 64], strides = [1, 1]} : vector<8x256xf32> to vector<8x64xf32>
    %119 = vector.extract_strided_slice %116 {offsets = [0, 128], sizes = [8, 64], strides = [1, 1]} : vector<8x256xf32> to vector<8x64xf32>
    %120 = vector.extract_strided_slice %116 {offsets = [0, 192], sizes = [8, 64], strides = [1, 1]} : vector<8x256xf32> to vector<8x64xf32>
    %121 = arith.mulf %118, %87 : vector<8x64xf32>
    %122 = arith.mulf %117, %119 : vector<8x64xf32>
    %123 = arith.addf %121, %122 : vector<8x64xf32>
    %124 = math.tanh %123 : vector<8x64xf32>
    %125 = arith.mulf %120, %124 : vector<8x64xf32>
    %126 = vector.extract_strided_slice %125 {offsets = [0, 0], sizes = [8, 32], strides = [1, 1]} : vector<8x64xf32> to vector<8x32xf32>
    %127 = arith.index_cast %c2_i32 : i32 to index
    %c0_53 = arith.constant 0 : index
    %c0_54 = arith.constant 0 : index
    %128 = vector.load %arg20[%127, %c0_53, %c0_54] : memref<8x8x32xf32, #tpu.memory_space<vmem>>, vector<1x8x32xf32>
    %129 = vector.shape_cast %128 : vector<1x8x32xf32> to vector<8x32xf32>
    %130 = vector.shape_cast %126 : vector<8x32xf32> to vector<1x8x32xf32>
    tpu.vector_store %arg20[%127, %c0_53, %c0_54], %130 {strides = array<i32>} : memref<8x8x32xf32, #tpu.memory_space<vmem>>, vector<1x8x32xf32>,
    %131 = vector.extract_strided_slice %125 {offsets = [0, 32], sizes = [8, 32], strides = [1, 1]} : vector<8x64xf32> to vector<8x32xf32>
    %132 = arith.index_cast %100 : i32 to index
    %c0_55 = arith.constant 0 : index
    %c0_56 = arith.constant 0 : index
    %133 = vector.load %arg21[%132, %c0_55, %c0_56] : memref<8x8x32xf32, #tpu.memory_space<vmem>>, vector<1x8x32xf32>
    %134 = vector.shape_cast %133 : vector<1x8x32xf32> to vector<8x32xf32>
    %135 = vector.shape_cast %131 : vector<8x32xf32> to vector<1x8x32xf32>
    tpu.vector_store %arg21[%132, %c0_55, %c0_56], %135 {strides = array<i32>} : memref<8x8x32xf32, #tpu.memory_space<vmem>>, vector<1x8x32xf32>,
    %c3_i32 = arith.constant 3 : i32
    %c7_i32_57 = arith.constant 7 : i32
    %136 = arith.subi %c7_i32_57, %c3_i32 : i32
    %cst_58 = arith.constant dense<0.000000e+00> : vector<8x256xf32>
    %137 = tpu.matmul %125, %23, %cst_58 {dimension_numbers = #tpu.dot_dimension_numbers<[1], [0], [0], [1], [0, 0, 1, 1], [], []>} : vector<8x64xf32>, vector<64x256xf32>, vector<8x256xf32> -> vector<8x256xf32>
    %138 = arith.index_cast %c3_i32 : i32 to index
    %c0_59 = arith.constant 0 : index
    %c0_60 = arith.constant 0 : index
    %139 = vector.load %arg18[%138, %c0_59, %c0_60] : memref<8x8x256xf32, #tpu.memory_space<vmem>>, vector<1x8x256xf32>
    %140 = vector.shape_cast %139 : vector<1x8x256xf32> to vector<8x256xf32>
    %141 = arith.addf %137, %140 : vector<8x256xf32>
    %142 = arith.index_cast %136 : i32 to index
    %c0_61 = arith.constant 0 : index
    %c0_62 = arith.constant 0 : index
    %143 = vector.load %arg19[%142, %c0_61, %c0_62] : memref<8x8x256xf32, #tpu.memory_space<vmem>>, vector<1x8x256xf32>
    %144 = vector.shape_cast %143 : vector<1x8x256xf32> to vector<8x256xf32>
    %145 = arith.addf %141, %144 : vector<8x256xf32>
    %146 = math.tanh %145 : vector<8x256xf32>
    %147 = arith.negf %145 : vector<8x256xf32>
    %148 = math.exp %147 : vector<8x256xf32>
    %cst_63 = arith.constant 1.000000e+00 : f32
    %149 = vector.broadcast %cst_63 : f32 to vector<8x256xf32>
    %150 = arith.addf %149, %148 : vector<8x256xf32>
    %151 = arith.divf %149, %150 : vector<8x256xf32>
    %152 = arith.select %5, %146, %151 : vector<8x256xi1>, vector<8x256xf32>
    %153 = vector.extract_strided_slice %152 {offsets = [0, 0], sizes = [8, 64], strides = [1, 1]} : vector<8x256xf32> to vector<8x64xf32>
    %154 = vector.extract_strided_slice %152 {offsets = [0, 64], sizes = [8, 64], strides = [1, 1]} : vector<8x256xf32> to vector<8x64xf32>
    %155 = vector.extract_strided_slice %152 {offsets = [0, 128], sizes = [8, 64], strides = [1, 1]} : vector<8x256xf32> to vector<8x64xf32>
    %156 = vector.extract_strided_slice %152 {offsets = [0, 192], sizes = [8, 64], strides = [1, 1]} : vector<8x256xf32> to vector<8x64xf32>
    %157 = arith.mulf %154, %123 : vector<8x64xf32>
    %158 = arith.mulf %153, %155 : vector<8x64xf32>
    %159 = arith.addf %157, %158 : vector<8x64xf32>
    %160 = math.tanh %159 : vector<8x64xf32>
    %161 = arith.mulf %156, %160 : vector<8x64xf32>
    %162 = vector.extract_strided_slice %161 {offsets = [0, 0], sizes = [8, 32], strides = [1, 1]} : vector<8x64xf32> to vector<8x32xf32>
    %163 = arith.index_cast %c3_i32 : i32 to index
    %c0_64 = arith.constant 0 : index
    %c0_65 = arith.constant 0 : index
    %164 = vector.load %arg20[%163, %c0_64, %c0_65] : memref<8x8x32xf32, #tpu.memory_space<vmem>>, vector<1x8x32xf32>
    %165 = vector.shape_cast %164 : vector<1x8x32xf32> to vector<8x32xf32>
    %166 = vector.shape_cast %162 : vector<8x32xf32> to vector<1x8x32xf32>
    tpu.vector_store %arg20[%163, %c0_64, %c0_65], %166 {strides = array<i32>} : memref<8x8x32xf32, #tpu.memory_space<vmem>>, vector<1x8x32xf32>,
    %167 = vector.extract_strided_slice %161 {offsets = [0, 32], sizes = [8, 32], strides = [1, 1]} : vector<8x64xf32> to vector<8x32xf32>
    %168 = arith.index_cast %136 : i32 to index
    %c0_66 = arith.constant 0 : index
    %c0_67 = arith.constant 0 : index
    %169 = vector.load %arg21[%168, %c0_66, %c0_67] : memref<8x8x32xf32, #tpu.memory_space<vmem>>, vector<1x8x32xf32>
    %170 = vector.shape_cast %169 : vector<1x8x32xf32> to vector<8x32xf32>
    %171 = vector.shape_cast %167 : vector<8x32xf32> to vector<1x8x32xf32>
    tpu.vector_store %arg21[%168, %c0_66, %c0_67], %171 {strides = array<i32>} : memref<8x8x32xf32, #tpu.memory_space<vmem>>, vector<1x8x32xf32>,
    %c4_i32 = arith.constant 4 : i32
    %c7_i32_68 = arith.constant 7 : i32
    %172 = arith.subi %c7_i32_68, %c4_i32 : i32
    %cst_69 = arith.constant dense<0.000000e+00> : vector<8x256xf32>
    %173 = tpu.matmul %161, %23, %cst_69 {dimension_numbers = #tpu.dot_dimension_numbers<[1], [0], [0], [1], [0, 0, 1, 1], [], []>} : vector<8x64xf32>, vector<64x256xf32>, vector<8x256xf32> -> vector<8x256xf32>
    %174 = arith.index_cast %c4_i32 : i32 to index
    %c0_70 = arith.constant 0 : index
    %c0_71 = arith.constant 0 : index
    %175 = vector.load %arg18[%174, %c0_70, %c0_71] : memref<8x8x256xf32, #tpu.memory_space<vmem>>, vector<1x8x256xf32>
    %176 = vector.shape_cast %175 : vector<1x8x256xf32> to vector<8x256xf32>
    %177 = arith.addf %173, %176 : vector<8x256xf32>
    %178 = arith.index_cast %172 : i32 to index
    %c0_72 = arith.constant 0 : index
    %c0_73 = arith.constant 0 : index
    %179 = vector.load %arg19[%178, %c0_72, %c0_73] : memref<8x8x256xf32, #tpu.memory_space<vmem>>, vector<1x8x256xf32>
    %180 = vector.shape_cast %179 : vector<1x8x256xf32> to vector<8x256xf32>
    %181 = arith.addf %177, %180 : vector<8x256xf32>
    %182 = math.tanh %181 : vector<8x256xf32>
    %183 = arith.negf %181 : vector<8x256xf32>
    %184 = math.exp %183 : vector<8x256xf32>
    %cst_74 = arith.constant 1.000000e+00 : f32
    %185 = vector.broadcast %cst_74 : f32 to vector<8x256xf32>
    %186 = arith.addf %185, %184 : vector<8x256xf32>
    %187 = arith.divf %185, %186 : vector<8x256xf32>
    %188 = arith.select %5, %182, %187 : vector<8x256xi1>, vector<8x256xf32>
    %189 = vector.extract_strided_slice %188 {offsets = [0, 0], sizes = [8, 64], strides = [1, 1]} : vector<8x256xf32> to vector<8x64xf32>
    %190 = vector.extract_strided_slice %188 {offsets = [0, 64], sizes = [8, 64], strides = [1, 1]} : vector<8x256xf32> to vector<8x64xf32>
    %191 = vector.extract_strided_slice %188 {offsets = [0, 128], sizes = [8, 64], strides = [1, 1]} : vector<8x256xf32> to vector<8x64xf32>
    %192 = vector.extract_strided_slice %188 {offsets = [0, 192], sizes = [8, 64], strides = [1, 1]} : vector<8x256xf32> to vector<8x64xf32>
    %193 = arith.mulf %190, %159 : vector<8x64xf32>
    %194 = arith.mulf %189, %191 : vector<8x64xf32>
    %195 = arith.addf %193, %194 : vector<8x64xf32>
    %196 = math.tanh %195 : vector<8x64xf32>
    %197 = arith.mulf %192, %196 : vector<8x64xf32>
    %198 = vector.extract_strided_slice %197 {offsets = [0, 0], sizes = [8, 32], strides = [1, 1]} : vector<8x64xf32> to vector<8x32xf32>
    %199 = arith.index_cast %c4_i32 : i32 to index
    %c0_75 = arith.constant 0 : index
    %c0_76 = arith.constant 0 : index
    %200 = vector.load %arg20[%199, %c0_75, %c0_76] : memref<8x8x32xf32, #tpu.memory_space<vmem>>, vector<1x8x32xf32>
    %201 = vector.shape_cast %200 : vector<1x8x32xf32> to vector<8x32xf32>
    %202 = vector.shape_cast %198 : vector<8x32xf32> to vector<1x8x32xf32>
    tpu.vector_store %arg20[%199, %c0_75, %c0_76], %202 {strides = array<i32>} : memref<8x8x32xf32, #tpu.memory_space<vmem>>, vector<1x8x32xf32>,
    %203 = vector.extract_strided_slice %197 {offsets = [0, 32], sizes = [8, 32], strides = [1, 1]} : vector<8x64xf32> to vector<8x32xf32>
    %204 = arith.index_cast %172 : i32 to index
    %c0_77 = arith.constant 0 : index
    %c0_78 = arith.constant 0 : index
    %205 = vector.load %arg21[%204, %c0_77, %c0_78] : memref<8x8x32xf32, #tpu.memory_space<vmem>>, vector<1x8x32xf32>
    %206 = vector.shape_cast %205 : vector<1x8x32xf32> to vector<8x32xf32>
    %207 = vector.shape_cast %203 : vector<8x32xf32> to vector<1x8x32xf32>
    tpu.vector_store %arg21[%204, %c0_77, %c0_78], %207 {strides = array<i32>} : memref<8x8x32xf32, #tpu.memory_space<vmem>>, vector<1x8x32xf32>,
    %c5_i32 = arith.constant 5 : i32
    %c7_i32_79 = arith.constant 7 : i32
    %208 = arith.subi %c7_i32_79, %c5_i32 : i32
    %cst_80 = arith.constant dense<0.000000e+00> : vector<8x256xf32>
    %209 = tpu.matmul %197, %23, %cst_80 {dimension_numbers = #tpu.dot_dimension_numbers<[1], [0], [0], [1], [0, 0, 1, 1], [], []>} : vector<8x64xf32>, vector<64x256xf32>, vector<8x256xf32> -> vector<8x256xf32>
    %210 = arith.index_cast %c5_i32 : i32 to index
    %c0_81 = arith.constant 0 : index
    %c0_82 = arith.constant 0 : index
    %211 = vector.load %arg18[%210, %c0_81, %c0_82] : memref<8x8x256xf32, #tpu.memory_space<vmem>>, vector<1x8x256xf32>
    %212 = vector.shape_cast %211 : vector<1x8x256xf32> to vector<8x256xf32>
    %213 = arith.addf %209, %212 : vector<8x256xf32>
    %214 = arith.index_cast %208 : i32 to index
    %c0_83 = arith.constant 0 : index
    %c0_84 = arith.constant 0 : index
    %215 = vector.load %arg19[%214, %c0_83, %c0_84] : memref<8x8x256xf32, #tpu.memory_space<vmem>>, vector<1x8x256xf32>
    %216 = vector.shape_cast %215 : vector<1x8x256xf32> to vector<8x256xf32>
    %217 = arith.addf %213, %216 : vector<8x256xf32>
    %218 = math.tanh %217 : vector<8x256xf32>
    %219 = arith.negf %217 : vector<8x256xf32>
    %220 = math.exp %219 : vector<8x256xf32>
    %cst_85 = arith.constant 1.000000e+00 : f32
    %221 = vector.broadcast %cst_85 : f32 to vector<8x256xf32>
    %222 = arith.addf %221, %220 : vector<8x256xf32>
    %223 = arith.divf %221, %222 : vector<8x256xf32>
    %224 = arith.select %5, %218, %223 : vector<8x256xi1>, vector<8x256xf32>
    %225 = vector.extract_strided_slice %224 {offsets = [0, 0], sizes = [8, 64], strides = [1, 1]} : vector<8x256xf32> to vector<8x64xf32>
    %226 = vector.extract_strided_slice %224 {offsets = [0, 64], sizes = [8, 64], strides = [1, 1]} : vector<8x256xf32> to vector<8x64xf32>
    %227 = vector.extract_strided_slice %224 {offsets = [0, 128], sizes = [8, 64], strides = [1, 1]} : vector<8x256xf32> to vector<8x64xf32>
    %228 = vector.extract_strided_slice %224 {offsets = [0, 192], sizes = [8, 64], strides = [1, 1]} : vector<8x256xf32> to vector<8x64xf32>
    %229 = arith.mulf %226, %195 : vector<8x64xf32>
    %230 = arith.mulf %225, %227 : vector<8x64xf32>
    %231 = arith.addf %229, %230 : vector<8x64xf32>
    %232 = math.tanh %231 : vector<8x64xf32>
    %233 = arith.mulf %228, %232 : vector<8x64xf32>
    %234 = vector.extract_strided_slice %233 {offsets = [0, 0], sizes = [8, 32], strides = [1, 1]} : vector<8x64xf32> to vector<8x32xf32>
    %235 = arith.index_cast %c5_i32 : i32 to index
    %c0_86 = arith.constant 0 : index
    %c0_87 = arith.constant 0 : index
    %236 = vector.load %arg20[%235, %c0_86, %c0_87] : memref<8x8x32xf32, #tpu.memory_space<vmem>>, vector<1x8x32xf32>
    %237 = vector.shape_cast %236 : vector<1x8x32xf32> to vector<8x32xf32>
    %238 = vector.shape_cast %234 : vector<8x32xf32> to vector<1x8x32xf32>
    tpu.vector_store %arg20[%235, %c0_86, %c0_87], %238 {strides = array<i32>} : memref<8x8x32xf32, #tpu.memory_space<vmem>>, vector<1x8x32xf32>,
    %239 = vector.extract_strided_slice %233 {offsets = [0, 32], sizes = [8, 32], strides = [1, 1]} : vector<8x64xf32> to vector<8x32xf32>
    %240 = arith.index_cast %208 : i32 to index
    %c0_88 = arith.constant 0 : index
    %c0_89 = arith.constant 0 : index
    %241 = vector.load %arg21[%240, %c0_88, %c0_89] : memref<8x8x32xf32, #tpu.memory_space<vmem>>, vector<1x8x32xf32>
    %242 = vector.shape_cast %241 : vector<1x8x32xf32> to vector<8x32xf32>
    %243 = vector.shape_cast %239 : vector<8x32xf32> to vector<1x8x32xf32>
    tpu.vector_store %arg21[%240, %c0_88, %c0_89], %243 {strides = array<i32>} : memref<8x8x32xf32, #tpu.memory_space<vmem>>, vector<1x8x32xf32>,
    %c6_i32 = arith.constant 6 : i32
    %c7_i32_90 = arith.constant 7 : i32
    %244 = arith.subi %c7_i32_90, %c6_i32 : i32
    %cst_91 = arith.constant dense<0.000000e+00> : vector<8x256xf32>
    %245 = tpu.matmul %233, %23, %cst_91 {dimension_numbers = #tpu.dot_dimension_numbers<[1], [0], [0], [1], [0, 0, 1, 1], [], []>} : vector<8x64xf32>, vector<64x256xf32>, vector<8x256xf32> -> vector<8x256xf32>
    %246 = arith.index_cast %c6_i32 : i32 to index
    %c0_92 = arith.constant 0 : index
    %c0_93 = arith.constant 0 : index
    %247 = vector.load %arg18[%246, %c0_92, %c0_93] : memref<8x8x256xf32, #tpu.memory_space<vmem>>, vector<1x8x256xf32>
    %248 = vector.shape_cast %247 : vector<1x8x256xf32> to vector<8x256xf32>
    %249 = arith.addf %245, %248 : vector<8x256xf32>
    %250 = arith.index_cast %244 : i32 to index
    %c0_94 = arith.constant 0 : index
    %c0_95 = arith.constant 0 : index
    %251 = vector.load %arg19[%250, %c0_94, %c0_95] : memref<8x8x256xf32, #tpu.memory_space<vmem>>, vector<1x8x256xf32>
    %252 = vector.shape_cast %251 : vector<1x8x256xf32> to vector<8x256xf32>
    %253 = arith.addf %249, %252 : vector<8x256xf32>
    %254 = math.tanh %253 : vector<8x256xf32>
    %255 = arith.negf %253 : vector<8x256xf32>
    %256 = math.exp %255 : vector<8x256xf32>
    %cst_96 = arith.constant 1.000000e+00 : f32
    %257 = vector.broadcast %cst_96 : f32 to vector<8x256xf32>
    %258 = arith.addf %257, %256 : vector<8x256xf32>
    %259 = arith.divf %257, %258 : vector<8x256xf32>
    %260 = arith.select %5, %254, %259 : vector<8x256xi1>, vector<8x256xf32>
    %261 = vector.extract_strided_slice %260 {offsets = [0, 0], sizes = [8, 64], strides = [1, 1]} : vector<8x256xf32> to vector<8x64xf32>
    %262 = vector.extract_strided_slice %260 {offsets = [0, 64], sizes = [8, 64], strides = [1, 1]} : vector<8x256xf32> to vector<8x64xf32>
    %263 = vector.extract_strided_slice %260 {offsets = [0, 128], sizes = [8, 64], strides = [1, 1]} : vector<8x256xf32> to vector<8x64xf32>
    %264 = vector.extract_strided_slice %260 {offsets = [0, 192], sizes = [8, 64], strides = [1, 1]} : vector<8x256xf32> to vector<8x64xf32>
    %265 = arith.mulf %262, %231 : vector<8x64xf32>
    %266 = arith.mulf %261, %263 : vector<8x64xf32>
    %267 = arith.addf %265, %266 : vector<8x64xf32>
    %268 = math.tanh %267 : vector<8x64xf32>
    %269 = arith.mulf %264, %268 : vector<8x64xf32>
    %270 = vector.extract_strided_slice %269 {offsets = [0, 0], sizes = [8, 32], strides = [1, 1]} : vector<8x64xf32> to vector<8x32xf32>
    %271 = arith.index_cast %c6_i32 : i32 to index
    %c0_97 = arith.constant 0 : index
    %c0_98 = arith.constant 0 : index
    %272 = vector.load %arg20[%271, %c0_97, %c0_98] : memref<8x8x32xf32, #tpu.memory_space<vmem>>, vector<1x8x32xf32>
    %273 = vector.shape_cast %272 : vector<1x8x32xf32> to vector<8x32xf32>
    %274 = vector.shape_cast %270 : vector<8x32xf32> to vector<1x8x32xf32>
    tpu.vector_store %arg20[%271, %c0_97, %c0_98], %274 {strides = array<i32>} : memref<8x8x32xf32, #tpu.memory_space<vmem>>, vector<1x8x32xf32>,
    %275 = vector.extract_strided_slice %269 {offsets = [0, 32], sizes = [8, 32], strides = [1, 1]} : vector<8x64xf32> to vector<8x32xf32>
    %276 = arith.index_cast %244 : i32 to index
    %c0_99 = arith.constant 0 : index
    %c0_100 = arith.constant 0 : index
    %277 = vector.load %arg21[%276, %c0_99, %c0_100] : memref<8x8x32xf32, #tpu.memory_space<vmem>>, vector<1x8x32xf32>
    %278 = vector.shape_cast %277 : vector<1x8x32xf32> to vector<8x32xf32>
    %279 = vector.shape_cast %275 : vector<8x32xf32> to vector<1x8x32xf32>
    tpu.vector_store %arg21[%276, %c0_99, %c0_100], %279 {strides = array<i32>} : memref<8x8x32xf32, #tpu.memory_space<vmem>>, vector<1x8x32xf32>,
    %c7_i32_101 = arith.constant 7 : i32
    %c7_i32_102 = arith.constant 7 : i32
    %280 = arith.subi %c7_i32_102, %c7_i32_101 : i32
    %cst_103 = arith.constant dense<0.000000e+00> : vector<8x256xf32>
    %281 = tpu.matmul %269, %23, %cst_103 {dimension_numbers = #tpu.dot_dimension_numbers<[1], [0], [0], [1], [0, 0, 1, 1], [], []>} : vector<8x64xf32>, vector<64x256xf32>, vector<8x256xf32> -> vector<8x256xf32>
    %282 = arith.index_cast %c7_i32_101 : i32 to index
    %c0_104 = arith.constant 0 : index
    %c0_105 = arith.constant 0 : index
    %283 = vector.load %arg18[%282, %c0_104, %c0_105] : memref<8x8x256xf32, #tpu.memory_space<vmem>>, vector<1x8x256xf32>
    %284 = vector.shape_cast %283 : vector<1x8x256xf32> to vector<8x256xf32>
    %285 = arith.addf %281, %284 : vector<8x256xf32>
    %286 = arith.index_cast %280 : i32 to index
    %c0_106 = arith.constant 0 : index
    %c0_107 = arith.constant 0 : index
    %287 = vector.load %arg19[%286, %c0_106, %c0_107] : memref<8x8x256xf32, #tpu.memory_space<vmem>>, vector<1x8x256xf32>
    %288 = vector.shape_cast %287 : vector<1x8x256xf32> to vector<8x256xf32>
    %289 = arith.addf %285, %288 : vector<8x256xf32>
    %290 = math.tanh %289 : vector<8x256xf32>
    %291 = arith.negf %289 : vector<8x256xf32>
    %292 = math.exp %291 : vector<8x256xf32>
    %cst_108 = arith.constant 1.000000e+00 : f32
    %293 = vector.broadcast %cst_108 : f32 to vector<8x256xf32>
    %294 = arith.addf %293, %292 : vector<8x256xf32>
    %295 = arith.divf %293, %294 : vector<8x256xf32>
    %296 = arith.select %5, %290, %295 : vector<8x256xi1>, vector<8x256xf32>
    %297 = vector.extract_strided_slice %296 {offsets = [0, 0], sizes = [8, 64], strides = [1, 1]} : vector<8x256xf32> to vector<8x64xf32>
    %298 = vector.extract_strided_slice %296 {offsets = [0, 64], sizes = [8, 64], strides = [1, 1]} : vector<8x256xf32> to vector<8x64xf32>
    %299 = vector.extract_strided_slice %296 {offsets = [0, 128], sizes = [8, 64], strides = [1, 1]} : vector<8x256xf32> to vector<8x64xf32>
    %300 = vector.extract_strided_slice %296 {offsets = [0, 192], sizes = [8, 64], strides = [1, 1]} : vector<8x256xf32> to vector<8x64xf32>
    %301 = arith.mulf %298, %267 : vector<8x64xf32>
    %302 = arith.mulf %297, %299 : vector<8x64xf32>
    %303 = arith.addf %301, %302 : vector<8x64xf32>
    %304 = math.tanh %303 : vector<8x64xf32>
    %305 = arith.mulf %300, %304 : vector<8x64xf32>
    %306 = vector.extract_strided_slice %305 {offsets = [0, 0], sizes = [8, 32], strides = [1, 1]} : vector<8x64xf32> to vector<8x32xf32>
    %307 = arith.index_cast %c7_i32_101 : i32 to index
    %c0_109 = arith.constant 0 : index
    %c0_110 = arith.constant 0 : index
    %308 = vector.load %arg20[%307, %c0_109, %c0_110] : memref<8x8x32xf32, #tpu.memory_space<vmem>>, vector<1x8x32xf32>
    %309 = vector.shape_cast %308 : vector<1x8x32xf32> to vector<8x32xf32>
    %310 = vector.shape_cast %306 : vector<8x32xf32> to vector<1x8x32xf32>
    tpu.vector_store %arg20[%307, %c0_109, %c0_110], %310 {strides = array<i32>} : memref<8x8x32xf32, #tpu.memory_space<vmem>>, vector<1x8x32xf32>,
    %311 = vector.extract_strided_slice %305 {offsets = [0, 32], sizes = [8, 32], strides = [1, 1]} : vector<8x64xf32> to vector<8x32xf32>
    %312 = arith.index_cast %280 : i32 to index
    %c0_111 = arith.constant 0 : index
    %c0_112 = arith.constant 0 : index
    %313 = vector.load %arg21[%312, %c0_111, %c0_112] : memref<8x8x32xf32, #tpu.memory_space<vmem>>, vector<1x8x32xf32>
    %314 = vector.shape_cast %313 : vector<1x8x32xf32> to vector<8x32xf32>
    %315 = vector.shape_cast %311 : vector<8x32xf32> to vector<1x8x32xf32>
    tpu.vector_store %arg21[%312, %c0_111, %c0_112], %315 {strides = array<i32>} : memref<8x8x32xf32, #tpu.memory_space<vmem>>, vector<1x8x32xf32>,
    %c8_i32 = arith.constant 8 : i32
    %c0_113 = arith.constant 0 : index
    %c0_114 = arith.constant 0 : index
    %c0_115 = arith.constant 0 : index
    %316 = vector.load %arg16[%c0_113, %c0_114, %c0_115] : memref<2x8x64xf32, #tpu.memory_space<vmem>>, vector<1x8x64xf32>
    %317 = vector.shape_cast %316 : vector<1x8x64xf32> to vector<8x64xf32>
    %318 = vector.shape_cast %305 : vector<8x64xf32> to vector<1x8x64xf32>
    tpu.vector_store %arg16[%c0_113, %c0_114, %c0_115], %318 {strides = array<i32>} : memref<2x8x64xf32, #tpu.memory_space<vmem>>, vector<1x8x64xf32>,
    %c0_116 = arith.constant 0 : index
    %c0_117 = arith.constant 0 : index
    %c0_118 = arith.constant 0 : index
    %319 = vector.load %arg17[%c0_116, %c0_117, %c0_118] : memref<2x8x64xf32, #tpu.memory_space<vmem>>, vector<1x8x64xf32>
    %320 = vector.shape_cast %319 : vector<1x8x64xf32> to vector<8x64xf32>
    %321 = vector.shape_cast %303 : vector<8x64xf32> to vector<1x8x64xf32>
    tpu.vector_store %arg17[%c0_116, %c0_117, %c0_118], %321 {strides = array<i32>} : memref<2x8x64xf32, #tpu.memory_space<vmem>>, vector<1x8x64xf32>,
    %c0_119 = arith.constant 0 : index
    %c0_120 = arith.constant 0 : index
    %c0_121 = arith.constant 0 : index
    %322 = vector.load %arg20[%c0_119, %c0_120, %c0_121] : memref<8x8x32xf32, #tpu.memory_space<vmem>>, vector<8x8x32xf32>
    %323 = vector.shape_cast %322 : vector<8x8x32xf32> to vector<64x32xf32>
    %c0_122 = arith.constant 0 : index
    %c0_123 = arith.constant 0 : index
    %c0_124 = arith.constant 0 : index
    %324 = vector.load %arg21[%c0_122, %c0_123, %c0_124] : memref<8x8x32xf32, #tpu.memory_space<vmem>>, vector<8x8x32xf32>
    %325 = vector.shape_cast %324 : vector<8x8x32xf32> to vector<64x32xf32>
    %c0_125 = arith.constant 0 : index
    %c0_126 = arith.constant 0 : index
    %326 = vector.load %arg6[%c0_125, %c0_126] : memref<64x256xf32, #tpu.memory_space<vmem>>, vector<32x256xf32>
    %cst_127 = arith.constant dense<0.000000e+00> : vector<64x256xf32>
    %327 = tpu.matmul %323, %326, %cst_127 {dimension_numbers = #tpu.dot_dimension_numbers<[1], [0], [0], [1], [0, 0, 1, 1], [], []>} : vector<64x32xf32>, vector<32x256xf32>, vector<64x256xf32> -> vector<64x256xf32>
    %c32 = arith.constant 32 : index
    %c0_128 = arith.constant 0 : index
    %328 = vector.load %arg6[%c32, %c0_128] : memref<64x256xf32, #tpu.memory_space<vmem>>, vector<32x256xf32>
    %cst_129 = arith.constant dense<0.000000e+00> : vector<64x256xf32>
    %329 = tpu.matmul %325, %328, %cst_129 {dimension_numbers = #tpu.dot_dimension_numbers<[1], [0], [0], [1], [0, 0, 1, 1], [], []>} : vector<64x32xf32>, vector<32x256xf32>, vector<64x256xf32> -> vector<64x256xf32>
    %330 = arith.addf %327, %329 : vector<64x256xf32>
    %c0_130 = arith.constant 0 : index
    %c0_131 = arith.constant 0 : index
    %331 = vector.load %arg7[%c0_130, %c0_131] : memref<64x256xf32, #tpu.memory_space<vmem>>, vector<32x256xf32>
    %cst_132 = arith.constant dense<0.000000e+00> : vector<64x256xf32>
    %332 = tpu.matmul %323, %331, %cst_132 {dimension_numbers = #tpu.dot_dimension_numbers<[1], [0], [0], [1], [0, 0, 1, 1], [], []>} : vector<64x32xf32>, vector<32x256xf32>, vector<64x256xf32> -> vector<64x256xf32>
    %c32_133 = arith.constant 32 : index
    %c0_134 = arith.constant 0 : index
    %333 = vector.load %arg7[%c32_133, %c0_134] : memref<64x256xf32, #tpu.memory_space<vmem>>, vector<32x256xf32>
    %cst_135 = arith.constant dense<0.000000e+00> : vector<64x256xf32>
    %334 = tpu.matmul %325, %333, %cst_135 {dimension_numbers = #tpu.dot_dimension_numbers<[1], [0], [0], [1], [0, 0, 1, 1], [], []>} : vector<64x32xf32>, vector<32x256xf32>, vector<64x256xf32> -> vector<64x256xf32>
    %335 = arith.addf %332, %334 : vector<64x256xf32>
    %c0_136 = arith.constant 0 : index
    %c0_137 = arith.constant 0 : index
    %336 = vector.load %arg8[%c0_136, %c0_137] : memref<1x256xf32, #tpu.memory_space<vmem>>, vector<1x256xf32>
    %337 = vector.broadcast %336 : vector<1x256xf32> to vector<64x256xf32>
    %338 = arith.addf %330, %337 : vector<64x256xf32>
    %339 = vector.shape_cast %338 : vector<64x256xf32> to vector<8x8x256xf32>
    %c0_138 = arith.constant 0 : index
    %c0_139 = arith.constant 0 : index
    %c0_140 = arith.constant 0 : index
    %340 = vector.load %arg18[%c0_138, %c0_139, %c0_140] : memref<8x8x256xf32, #tpu.memory_space<vmem>>, vector<8x8x256xf32>
    tpu.vector_store %arg18[%c0_138, %c0_139, %c0_140], %339 {strides = array<i32>} : memref<8x8x256xf32, #tpu.memory_space<vmem>>, vector<8x8x256xf32>,
    %c0_141 = arith.constant 0 : index
    %c0_142 = arith.constant 0 : index
    %341 = vector.load %arg9[%c0_141, %c0_142] : memref<1x256xf32, #tpu.memory_space<vmem>>, vector<1x256xf32>
    %342 = vector.broadcast %341 : vector<1x256xf32> to vector<64x256xf32>
    %343 = arith.addf %335, %342 : vector<64x256xf32>
    %344 = vector.shape_cast %343 : vector<64x256xf32> to vector<8x8x256xf32>
    %c0_143 = arith.constant 0 : index
    %c0_144 = arith.constant 0 : index
    %c0_145 = arith.constant 0 : index
    %345 = vector.load %arg19[%c0_143, %c0_144, %c0_145] : memref<8x8x256xf32, #tpu.memory_space<vmem>>, vector<8x8x256xf32>
    tpu.vector_store %arg19[%c0_143, %c0_144, %c0_145], %344 {strides = array<i32>} : memref<8x8x256xf32, #tpu.memory_space<vmem>>, vector<8x8x256xf32>,
    %c0_146 = arith.constant 0 : index
    %c0_147 = arith.constant 0 : index
    %346 = vector.load %arg10[%c0_146, %c0_147] : memref<64x256xf32, #tpu.memory_space<vmem>>, vector<64x256xf32>
    %c1 = arith.constant 1 : index
    %c0_148 = arith.constant 0 : index
    %c0_149 = arith.constant 0 : index
    %347 = vector.load %arg11[%c1, %c0_148, %c0_149] : memref<2x8x64xf32, #tpu.memory_space<vmem>>, vector<1x8x64xf32>
    %348 = vector.shape_cast %347 : vector<1x8x64xf32> to vector<8x64xf32>
    %c1_150 = arith.constant 1 : index
    %c0_151 = arith.constant 0 : index
    %c0_152 = arith.constant 0 : index
    %349 = vector.load %arg12[%c1_150, %c0_151, %c0_152] : memref<2x8x64xf32, #tpu.memory_space<vmem>>, vector<1x8x64xf32>
    %350 = vector.shape_cast %349 : vector<1x8x64xf32> to vector<8x64xf32>
    %c0_i32_153 = arith.constant 0 : i32
    %c7_i32_154 = arith.constant 7 : i32
    %351 = arith.subi %c7_i32_154, %c0_i32_153 : i32
    %cst_155 = arith.constant dense<0.000000e+00> : vector<8x256xf32>
    %352 = tpu.matmul %348, %346, %cst_155 {dimension_numbers = #tpu.dot_dimension_numbers<[1], [0], [0], [1], [0, 0, 1, 1], [], []>} : vector<8x64xf32>, vector<64x256xf32>, vector<8x256xf32> -> vector<8x256xf32>
    %353 = arith.index_cast %c0_i32_153 : i32 to index
    %c0_156 = arith.constant 0 : index
    %c0_157 = arith.constant 0 : index
    %354 = vector.load %arg18[%353, %c0_156, %c0_157] : memref<8x8x256xf32, #tpu.memory_space<vmem>>, vector<1x8x256xf32>
    %355 = vector.shape_cast %354 : vector<1x8x256xf32> to vector<8x256xf32>
    %356 = arith.addf %352, %355 : vector<8x256xf32>
    %357 = arith.index_cast %351 : i32 to index
    %c0_158 = arith.constant 0 : index
    %c0_159 = arith.constant 0 : index
    %358 = vector.load %arg19[%357, %c0_158, %c0_159] : memref<8x8x256xf32, #tpu.memory_space<vmem>>, vector<1x8x256xf32>
    %359 = vector.shape_cast %358 : vector<1x8x256xf32> to vector<8x256xf32>
    %360 = arith.addf %356, %359 : vector<8x256xf32>
    %361 = math.tanh %360 : vector<8x256xf32>
    %362 = arith.negf %360 : vector<8x256xf32>
    %363 = math.exp %362 : vector<8x256xf32>
    %cst_160 = arith.constant 1.000000e+00 : f32
    %364 = vector.broadcast %cst_160 : f32 to vector<8x256xf32>
    %365 = arith.addf %364, %363 : vector<8x256xf32>
    %366 = arith.divf %364, %365 : vector<8x256xf32>
    %367 = arith.select %5, %361, %366 : vector<8x256xi1>, vector<8x256xf32>
    %368 = vector.extract_strided_slice %367 {offsets = [0, 0], sizes = [8, 64], strides = [1, 1]} : vector<8x256xf32> to vector<8x64xf32>
    %369 = vector.extract_strided_slice %367 {offsets = [0, 64], sizes = [8, 64], strides = [1, 1]} : vector<8x256xf32> to vector<8x64xf32>
    %370 = vector.extract_strided_slice %367 {offsets = [0, 128], sizes = [8, 64], strides = [1, 1]} : vector<8x256xf32> to vector<8x64xf32>
    %371 = vector.extract_strided_slice %367 {offsets = [0, 192], sizes = [8, 64], strides = [1, 1]} : vector<8x256xf32> to vector<8x64xf32>
    %372 = arith.mulf %369, %350 : vector<8x64xf32>
    %373 = arith.mulf %368, %370 : vector<8x64xf32>
    %374 = arith.addf %372, %373 : vector<8x64xf32>
    %375 = math.tanh %374 : vector<8x64xf32>
    %376 = arith.mulf %371, %375 : vector<8x64xf32>
    %377 = vector.extract_strided_slice %376 {offsets = [0, 0], sizes = [8, 32], strides = [1, 1]} : vector<8x64xf32> to vector<8x32xf32>
    %378 = arith.index_cast %c0_i32_153 : i32 to index
    %c0_161 = arith.constant 0 : index
    %c0_162 = arith.constant 0 : index
    %379 = vector.load %arg20[%378, %c0_161, %c0_162] : memref<8x8x32xf32, #tpu.memory_space<vmem>>, vector<1x8x32xf32>
    %380 = vector.shape_cast %379 : vector<1x8x32xf32> to vector<8x32xf32>
    %381 = vector.shape_cast %377 : vector<8x32xf32> to vector<1x8x32xf32>
    tpu.vector_store %arg20[%378, %c0_161, %c0_162], %381 {strides = array<i32>} : memref<8x8x32xf32, #tpu.memory_space<vmem>>, vector<1x8x32xf32>,
    %382 = vector.extract_strided_slice %376 {offsets = [0, 32], sizes = [8, 32], strides = [1, 1]} : vector<8x64xf32> to vector<8x32xf32>
    %383 = arith.index_cast %351 : i32 to index
    %c0_163 = arith.constant 0 : index
    %c0_164 = arith.constant 0 : index
    %384 = vector.load %arg21[%383, %c0_163, %c0_164] : memref<8x8x32xf32, #tpu.memory_space<vmem>>, vector<1x8x32xf32>
    %385 = vector.shape_cast %384 : vector<1x8x32xf32> to vector<8x32xf32>
    %386 = vector.shape_cast %382 : vector<8x32xf32> to vector<1x8x32xf32>
    tpu.vector_store %arg21[%383, %c0_163, %c0_164], %386 {strides = array<i32>} : memref<8x8x32xf32, #tpu.memory_space<vmem>>, vector<1x8x32xf32>,
    %c1_i32_165 = arith.constant 1 : i32
    %c7_i32_166 = arith.constant 7 : i32
    %387 = arith.subi %c7_i32_166, %c1_i32_165 : i32
    %cst_167 = arith.constant dense<0.000000e+00> : vector<8x256xf32>
    %388 = tpu.matmul %376, %346, %cst_167 {dimension_numbers = #tpu.dot_dimension_numbers<[1], [0], [0], [1], [0, 0, 1, 1], [], []>} : vector<8x64xf32>, vector<64x256xf32>, vector<8x256xf32> -> vector<8x256xf32>
    %389 = arith.index_cast %c1_i32_165 : i32 to index
    %c0_168 = arith.constant 0 : index
    %c0_169 = arith.constant 0 : index
    %390 = vector.load %arg18[%389, %c0_168, %c0_169] : memref<8x8x256xf32, #tpu.memory_space<vmem>>, vector<1x8x256xf32>
    %391 = vector.shape_cast %390 : vector<1x8x256xf32> to vector<8x256xf32>
    %392 = arith.addf %388, %391 : vector<8x256xf32>
    %393 = arith.index_cast %387 : i32 to index
    %c0_170 = arith.constant 0 : index
    %c0_171 = arith.constant 0 : index
    %394 = vector.load %arg19[%393, %c0_170, %c0_171] : memref<8x8x256xf32, #tpu.memory_space<vmem>>, vector<1x8x256xf32>
    %395 = vector.shape_cast %394 : vector<1x8x256xf32> to vector<8x256xf32>
    %396 = arith.addf %392, %395 : vector<8x256xf32>
    %397 = math.tanh %396 : vector<8x256xf32>
    %398 = arith.negf %396 : vector<8x256xf32>
    %399 = math.exp %398 : vector<8x256xf32>
    %cst_172 = arith.constant 1.000000e+00 : f32
    %400 = vector.broadcast %cst_172 : f32 to vector<8x256xf32>
    %401 = arith.addf %400, %399 : vector<8x256xf32>
    %402 = arith.divf %400, %401 : vector<8x256xf32>
    %403 = arith.select %5, %397, %402 : vector<8x256xi1>, vector<8x256xf32>
    %404 = vector.extract_strided_slice %403 {offsets = [0, 0], sizes = [8, 64], strides = [1, 1]} : vector<8x256xf32> to vector<8x64xf32>
    %405 = vector.extract_strided_slice %403 {offsets = [0, 64], sizes = [8, 64], strides = [1, 1]} : vector<8x256xf32> to vector<8x64xf32>
    %406 = vector.extract_strided_slice %403 {offsets = [0, 128], sizes = [8, 64], strides = [1, 1]} : vector<8x256xf32> to vector<8x64xf32>
    %407 = vector.extract_strided_slice %403 {offsets = [0, 192], sizes = [8, 64], strides = [1, 1]} : vector<8x256xf32> to vector<8x64xf32>
    %408 = arith.mulf %405, %374 : vector<8x64xf32>
    %409 = arith.mulf %404, %406 : vector<8x64xf32>
    %410 = arith.addf %408, %409 : vector<8x64xf32>
    %411 = math.tanh %410 : vector<8x64xf32>
    %412 = arith.mulf %407, %411 : vector<8x64xf32>
    %413 = vector.extract_strided_slice %412 {offsets = [0, 0], sizes = [8, 32], strides = [1, 1]} : vector<8x64xf32> to vector<8x32xf32>
    %414 = arith.index_cast %c1_i32_165 : i32 to index
    %c0_173 = arith.constant 0 : index
    %c0_174 = arith.constant 0 : index
    %415 = vector.load %arg20[%414, %c0_173, %c0_174] : memref<8x8x32xf32, #tpu.memory_space<vmem>>, vector<1x8x32xf32>
    %416 = vector.shape_cast %415 : vector<1x8x32xf32> to vector<8x32xf32>
    %417 = vector.shape_cast %413 : vector<8x32xf32> to vector<1x8x32xf32>
    tpu.vector_store %arg20[%414, %c0_173, %c0_174], %417 {strides = array<i32>} : memref<8x8x32xf32, #tpu.memory_space<vmem>>, vector<1x8x32xf32>,
    %418 = vector.extract_strided_slice %412 {offsets = [0, 32], sizes = [8, 32], strides = [1, 1]} : vector<8x64xf32> to vector<8x32xf32>
    %419 = arith.index_cast %387 : i32 to index
    %c0_175 = arith.constant 0 : index
    %c0_176 = arith.constant 0 : index
    %420 = vector.load %arg21[%419, %c0_175, %c0_176] : memref<8x8x32xf32, #tpu.memory_space<vmem>>, vector<1x8x32xf32>
    %421 = vector.shape_cast %420 : vector<1x8x32xf32> to vector<8x32xf32>
    %422 = vector.shape_cast %418 : vector<8x32xf32> to vector<1x8x32xf32>
    tpu.vector_store %arg21[%419, %c0_175, %c0_176], %422 {strides = array<i32>} : memref<8x8x32xf32, #tpu.memory_space<vmem>>, vector<1x8x32xf32>,
    %c2_i32_177 = arith.constant 2 : i32
    %c7_i32_178 = arith.constant 7 : i32
    %423 = arith.subi %c7_i32_178, %c2_i32_177 : i32
    %cst_179 = arith.constant dense<0.000000e+00> : vector<8x256xf32>
    %424 = tpu.matmul %412, %346, %cst_179 {dimension_numbers = #tpu.dot_dimension_numbers<[1], [0], [0], [1], [0, 0, 1, 1], [], []>} : vector<8x64xf32>, vector<64x256xf32>, vector<8x256xf32> -> vector<8x256xf32>
    %425 = arith.index_cast %c2_i32_177 : i32 to index
    %c0_180 = arith.constant 0 : index
    %c0_181 = arith.constant 0 : index
    %426 = vector.load %arg18[%425, %c0_180, %c0_181] : memref<8x8x256xf32, #tpu.memory_space<vmem>>, vector<1x8x256xf32>
    %427 = vector.shape_cast %426 : vector<1x8x256xf32> to vector<8x256xf32>
    %428 = arith.addf %424, %427 : vector<8x256xf32>
    %429 = arith.index_cast %423 : i32 to index
    %c0_182 = arith.constant 0 : index
    %c0_183 = arith.constant 0 : index
    %430 = vector.load %arg19[%429, %c0_182, %c0_183] : memref<8x8x256xf32, #tpu.memory_space<vmem>>, vector<1x8x256xf32>
    %431 = vector.shape_cast %430 : vector<1x8x256xf32> to vector<8x256xf32>
    %432 = arith.addf %428, %431 : vector<8x256xf32>
    %433 = math.tanh %432 : vector<8x256xf32>
    %434 = arith.negf %432 : vector<8x256xf32>
    %435 = math.exp %434 : vector<8x256xf32>
    %cst_184 = arith.constant 1.000000e+00 : f32
    %436 = vector.broadcast %cst_184 : f32 to vector<8x256xf32>
    %437 = arith.addf %436, %435 : vector<8x256xf32>
    %438 = arith.divf %436, %437 : vector<8x256xf32>
    %439 = arith.select %5, %433, %438 : vector<8x256xi1>, vector<8x256xf32>
    %440 = vector.extract_strided_slice %439 {offsets = [0, 0], sizes = [8, 64], strides = [1, 1]} : vector<8x256xf32> to vector<8x64xf32>
    %441 = vector.extract_strided_slice %439 {offsets = [0, 64], sizes = [8, 64], strides = [1, 1]} : vector<8x256xf32> to vector<8x64xf32>
    %442 = vector.extract_strided_slice %439 {offsets = [0, 128], sizes = [8, 64], strides = [1, 1]} : vector<8x256xf32> to vector<8x64xf32>
    %443 = vector.extract_strided_slice %439 {offsets = [0, 192], sizes = [8, 64], strides = [1, 1]} : vector<8x256xf32> to vector<8x64xf32>
    %444 = arith.mulf %441, %410 : vector<8x64xf32>
    %445 = arith.mulf %440, %442 : vector<8x64xf32>
    %446 = arith.addf %444, %445 : vector<8x64xf32>
    %447 = math.tanh %446 : vector<8x64xf32>
    %448 = arith.mulf %443, %447 : vector<8x64xf32>
    %449 = vector.extract_strided_slice %448 {offsets = [0, 0], sizes = [8, 32], strides = [1, 1]} : vector<8x64xf32> to vector<8x32xf32>
    %450 = arith.index_cast %c2_i32_177 : i32 to index
    %c0_185 = arith.constant 0 : index
    %c0_186 = arith.constant 0 : index
    %451 = vector.load %arg20[%450, %c0_185, %c0_186] : memref<8x8x32xf32, #tpu.memory_space<vmem>>, vector<1x8x32xf32>
    %452 = vector.shape_cast %451 : vector<1x8x32xf32> to vector<8x32xf32>
    %453 = vector.shape_cast %449 : vector<8x32xf32> to vector<1x8x32xf32>
    tpu.vector_store %arg20[%450, %c0_185, %c0_186], %453 {strides = array<i32>} : memref<8x8x32xf32, #tpu.memory_space<vmem>>, vector<1x8x32xf32>,
    %454 = vector.extract_strided_slice %448 {offsets = [0, 32], sizes = [8, 32], strides = [1, 1]} : vector<8x64xf32> to vector<8x32xf32>
    %455 = arith.index_cast %423 : i32 to index
    %c0_187 = arith.constant 0 : index
    %c0_188 = arith.constant 0 : index
    %456 = vector.load %arg21[%455, %c0_187, %c0_188] : memref<8x8x32xf32, #tpu.memory_space<vmem>>, vector<1x8x32xf32>
    %457 = vector.shape_cast %456 : vector<1x8x32xf32> to vector<8x32xf32>
    %458 = vector.shape_cast %454 : vector<8x32xf32> to vector<1x8x32xf32>
    tpu.vector_store %arg21[%455, %c0_187, %c0_188], %458 {strides = array<i32>} : memref<8x8x32xf32, #tpu.memory_space<vmem>>, vector<1x8x32xf32>,
    %c3_i32_189 = arith.constant 3 : i32
    %c7_i32_190 = arith.constant 7 : i32
    %459 = arith.subi %c7_i32_190, %c3_i32_189 : i32
    %cst_191 = arith.constant dense<0.000000e+00> : vector<8x256xf32>
    %460 = tpu.matmul %448, %346, %cst_191 {dimension_numbers = #tpu.dot_dimension_numbers<[1], [0], [0], [1], [0, 0, 1, 1], [], []>} : vector<8x64xf32>, vector<64x256xf32>, vector<8x256xf32> -> vector<8x256xf32>
    %461 = arith.index_cast %c3_i32_189 : i32 to index
    %c0_192 = arith.constant 0 : index
    %c0_193 = arith.constant 0 : index
    %462 = vector.load %arg18[%461, %c0_192, %c0_193] : memref<8x8x256xf32, #tpu.memory_space<vmem>>, vector<1x8x256xf32>
    %463 = vector.shape_cast %462 : vector<1x8x256xf32> to vector<8x256xf32>
    %464 = arith.addf %460, %463 : vector<8x256xf32>
    %465 = arith.index_cast %459 : i32 to index
    %c0_194 = arith.constant 0 : index
    %c0_195 = arith.constant 0 : index
    %466 = vector.load %arg19[%465, %c0_194, %c0_195] : memref<8x8x256xf32, #tpu.memory_space<vmem>>, vector<1x8x256xf32>
    %467 = vector.shape_cast %466 : vector<1x8x256xf32> to vector<8x256xf32>
    %468 = arith.addf %464, %467 : vector<8x256xf32>
    %469 = math.tanh %468 : vector<8x256xf32>
    %470 = arith.negf %468 : vector<8x256xf32>
    %471 = math.exp %470 : vector<8x256xf32>
    %cst_196 = arith.constant 1.000000e+00 : f32
    %472 = vector.broadcast %cst_196 : f32 to vector<8x256xf32>
    %473 = arith.addf %472, %471 : vector<8x256xf32>
    %474 = arith.divf %472, %473 : vector<8x256xf32>
    %475 = arith.select %5, %469, %474 : vector<8x256xi1>, vector<8x256xf32>
    %476 = vector.extract_strided_slice %475 {offsets = [0, 0], sizes = [8, 64], strides = [1, 1]} : vector<8x256xf32> to vector<8x64xf32>
    %477 = vector.extract_strided_slice %475 {offsets = [0, 64], sizes = [8, 64], strides = [1, 1]} : vector<8x256xf32> to vector<8x64xf32>
    %478 = vector.extract_strided_slice %475 {offsets = [0, 128], sizes = [8, 64], strides = [1, 1]} : vector<8x256xf32> to vector<8x64xf32>
    %479 = vector.extract_strided_slice %475 {offsets = [0, 192], sizes = [8, 64], strides = [1, 1]} : vector<8x256xf32> to vector<8x64xf32>
    %480 = arith.mulf %477, %446 : vector<8x64xf32>
    %481 = arith.mulf %476, %478 : vector<8x64xf32>
    %482 = arith.addf %480, %481 : vector<8x64xf32>
    %483 = math.tanh %482 : vector<8x64xf32>
    %484 = arith.mulf %479, %483 : vector<8x64xf32>
    %485 = vector.extract_strided_slice %484 {offsets = [0, 0], sizes = [8, 32], strides = [1, 1]} : vector<8x64xf32> to vector<8x32xf32>
    %486 = arith.index_cast %c3_i32_189 : i32 to index
    %c0_197 = arith.constant 0 : index
    %c0_198 = arith.constant 0 : index
    %487 = vector.load %arg20[%486, %c0_197, %c0_198] : memref<8x8x32xf32, #tpu.memory_space<vmem>>, vector<1x8x32xf32>
    %488 = vector.shape_cast %487 : vector<1x8x32xf32> to vector<8x32xf32>
    %489 = vector.shape_cast %485 : vector<8x32xf32> to vector<1x8x32xf32>
    tpu.vector_store %arg20[%486, %c0_197, %c0_198], %489 {strides = array<i32>} : memref<8x8x32xf32, #tpu.memory_space<vmem>>, vector<1x8x32xf32>,
    %490 = vector.extract_strided_slice %484 {offsets = [0, 32], sizes = [8, 32], strides = [1, 1]} : vector<8x64xf32> to vector<8x32xf32>
    %491 = arith.index_cast %459 : i32 to index
    %c0_199 = arith.constant 0 : index
    %c0_200 = arith.constant 0 : index
    %492 = vector.load %arg21[%491, %c0_199, %c0_200] : memref<8x8x32xf32, #tpu.memory_space<vmem>>, vector<1x8x32xf32>
    %493 = vector.shape_cast %492 : vector<1x8x32xf32> to vector<8x32xf32>
    %494 = vector.shape_cast %490 : vector<8x32xf32> to vector<1x8x32xf32>
    tpu.vector_store %arg21[%491, %c0_199, %c0_200], %494 {strides = array<i32>} : memref<8x8x32xf32, #tpu.memory_space<vmem>>, vector<1x8x32xf32>,
    %c4_i32_201 = arith.constant 4 : i32
    %c7_i32_202 = arith.constant 7 : i32
    %495 = arith.subi %c7_i32_202, %c4_i32_201 : i32
    %cst_203 = arith.constant dense<0.000000e+00> : vector<8x256xf32>
    %496 = tpu.matmul %484, %346, %cst_203 {dimension_numbers = #tpu.dot_dimension_numbers<[1], [0], [0], [1], [0, 0, 1, 1], [], []>} : vector<8x64xf32>, vector<64x256xf32>, vector<8x256xf32> -> vector<8x256xf32>
    %497 = arith.index_cast %c4_i32_201 : i32 to index
    %c0_204 = arith.constant 0 : index
    %c0_205 = arith.constant 0 : index
    %498 = vector.load %arg18[%497, %c0_204, %c0_205] : memref<8x8x256xf32, #tpu.memory_space<vmem>>, vector<1x8x256xf32>
    %499 = vector.shape_cast %498 : vector<1x8x256xf32> to vector<8x256xf32>
    %500 = arith.addf %496, %499 : vector<8x256xf32>
    %501 = arith.index_cast %495 : i32 to index
    %c0_206 = arith.constant 0 : index
    %c0_207 = arith.constant 0 : index
    %502 = vector.load %arg19[%501, %c0_206, %c0_207] : memref<8x8x256xf32, #tpu.memory_space<vmem>>, vector<1x8x256xf32>
    %503 = vector.shape_cast %502 : vector<1x8x256xf32> to vector<8x256xf32>
    %504 = arith.addf %500, %503 : vector<8x256xf32>
    %505 = math.tanh %504 : vector<8x256xf32>
    %506 = arith.negf %504 : vector<8x256xf32>
    %507 = math.exp %506 : vector<8x256xf32>
    %cst_208 = arith.constant 1.000000e+00 : f32
    %508 = vector.broadcast %cst_208 : f32 to vector<8x256xf32>
    %509 = arith.addf %508, %507 : vector<8x256xf32>
    %510 = arith.divf %508, %509 : vector<8x256xf32>
    %511 = arith.select %5, %505, %510 : vector<8x256xi1>, vector<8x256xf32>
    %512 = vector.extract_strided_slice %511 {offsets = [0, 0], sizes = [8, 64], strides = [1, 1]} : vector<8x256xf32> to vector<8x64xf32>
    %513 = vector.extract_strided_slice %511 {offsets = [0, 64], sizes = [8, 64], strides = [1, 1]} : vector<8x256xf32> to vector<8x64xf32>
    %514 = vector.extract_strided_slice %511 {offsets = [0, 128], sizes = [8, 64], strides = [1, 1]} : vector<8x256xf32> to vector<8x64xf32>
    %515 = vector.extract_strided_slice %511 {offsets = [0, 192], sizes = [8, 64], strides = [1, 1]} : vector<8x256xf32> to vector<8x64xf32>
    %516 = arith.mulf %513, %482 : vector<8x64xf32>
    %517 = arith.mulf %512, %514 : vector<8x64xf32>
    %518 = arith.addf %516, %517 : vector<8x64xf32>
    %519 = math.tanh %518 : vector<8x64xf32>
    %520 = arith.mulf %515, %519 : vector<8x64xf32>
    %521 = vector.extract_strided_slice %520 {offsets = [0, 0], sizes = [8, 32], strides = [1, 1]} : vector<8x64xf32> to vector<8x32xf32>
    %522 = arith.index_cast %c4_i32_201 : i32 to index
    %c0_209 = arith.constant 0 : index
    %c0_210 = arith.constant 0 : index
    %523 = vector.load %arg20[%522, %c0_209, %c0_210] : memref<8x8x32xf32, #tpu.memory_space<vmem>>, vector<1x8x32xf32>
    %524 = vector.shape_cast %523 : vector<1x8x32xf32> to vector<8x32xf32>
    %525 = vector.shape_cast %521 : vector<8x32xf32> to vector<1x8x32xf32>
    tpu.vector_store %arg20[%522, %c0_209, %c0_210], %525 {strides = array<i32>} : memref<8x8x32xf32, #tpu.memory_space<vmem>>, vector<1x8x32xf32>,
    %526 = vector.extract_strided_slice %520 {offsets = [0, 32], sizes = [8, 32], strides = [1, 1]} : vector<8x64xf32> to vector<8x32xf32>
    %527 = arith.index_cast %495 : i32 to index
    %c0_211 = arith.constant 0 : index
    %c0_212 = arith.constant 0 : index
    %528 = vector.load %arg21[%527, %c0_211, %c0_212] : memref<8x8x32xf32, #tpu.memory_space<vmem>>, vector<1x8x32xf32>
    %529 = vector.shape_cast %528 : vector<1x8x32xf32> to vector<8x32xf32>
    %530 = vector.shape_cast %526 : vector<8x32xf32> to vector<1x8x32xf32>
    tpu.vector_store %arg21[%527, %c0_211, %c0_212], %530 {strides = array<i32>} : memref<8x8x32xf32, #tpu.memory_space<vmem>>, vector<1x8x32xf32>,
    %c5_i32_213 = arith.constant 5 : i32
    %c7_i32_214 = arith.constant 7 : i32
    %531 = arith.subi %c7_i32_214, %c5_i32_213 : i32
    %cst_215 = arith.constant dense<0.000000e+00> : vector<8x256xf32>
    %532 = tpu.matmul %520, %346, %cst_215 {dimension_numbers = #tpu.dot_dimension_numbers<[1], [0], [0], [1], [0, 0, 1, 1], [], []>} : vector<8x64xf32>, vector<64x256xf32>, vector<8x256xf32> -> vector<8x256xf32>
    %533 = arith.index_cast %c5_i32_213 : i32 to index
    %c0_216 = arith.constant 0 : index
    %c0_217 = arith.constant 0 : index
    %534 = vector.load %arg18[%533, %c0_216, %c0_217] : memref<8x8x256xf32, #tpu.memory_space<vmem>>, vector<1x8x256xf32>
    %535 = vector.shape_cast %534 : vector<1x8x256xf32> to vector<8x256xf32>
    %536 = arith.addf %532, %535 : vector<8x256xf32>
    %537 = arith.index_cast %531 : i32 to index
    %c0_218 = arith.constant 0 : index
    %c0_219 = arith.constant 0 : index
    %538 = vector.load %arg19[%537, %c0_218, %c0_219] : memref<8x8x256xf32, #tpu.memory_space<vmem>>, vector<1x8x256xf32>
    %539 = vector.shape_cast %538 : vector<1x8x256xf32> to vector<8x256xf32>
    %540 = arith.addf %536, %539 : vector<8x256xf32>
    %541 = math.tanh %540 : vector<8x256xf32>
    %542 = arith.negf %540 : vector<8x256xf32>
    %543 = math.exp %542 : vector<8x256xf32>
    %cst_220 = arith.constant 1.000000e+00 : f32
    %544 = vector.broadcast %cst_220 : f32 to vector<8x256xf32>
    %545 = arith.addf %544, %543 : vector<8x256xf32>
    %546 = arith.divf %544, %545 : vector<8x256xf32>
    %547 = arith.select %5, %541, %546 : vector<8x256xi1>, vector<8x256xf32>
    %548 = vector.extract_strided_slice %547 {offsets = [0, 0], sizes = [8, 64], strides = [1, 1]} : vector<8x256xf32> to vector<8x64xf32>
    %549 = vector.extract_strided_slice %547 {offsets = [0, 64], sizes = [8, 64], strides = [1, 1]} : vector<8x256xf32> to vector<8x64xf32>
    %550 = vector.extract_strided_slice %547 {offsets = [0, 128], sizes = [8, 64], strides = [1, 1]} : vector<8x256xf32> to vector<8x64xf32>
    %551 = vector.extract_strided_slice %547 {offsets = [0, 192], sizes = [8, 64], strides = [1, 1]} : vector<8x256xf32> to vector<8x64xf32>
    %552 = arith.mulf %549, %518 : vector<8x64xf32>
    %553 = arith.mulf %548, %550 : vector<8x64xf32>
    %554 = arith.addf %552, %553 : vector<8x64xf32>
    %555 = math.tanh %554 : vector<8x64xf32>
    %556 = arith.mulf %551, %555 : vector<8x64xf32>
    %557 = vector.extract_strided_slice %556 {offsets = [0, 0], sizes = [8, 32], strides = [1, 1]} : vector<8x64xf32> to vector<8x32xf32>
    %558 = arith.index_cast %c5_i32_213 : i32 to index
    %c0_221 = arith.constant 0 : index
    %c0_222 = arith.constant 0 : index
    %559 = vector.load %arg20[%558, %c0_221, %c0_222] : memref<8x8x32xf32, #tpu.memory_space<vmem>>, vector<1x8x32xf32>
    %560 = vector.shape_cast %559 : vector<1x8x32xf32> to vector<8x32xf32>
    %561 = vector.shape_cast %557 : vector<8x32xf32> to vector<1x8x32xf32>
    tpu.vector_store %arg20[%558, %c0_221, %c0_222], %561 {strides = array<i32>} : memref<8x8x32xf32, #tpu.memory_space<vmem>>, vector<1x8x32xf32>,
    %562 = vector.extract_strided_slice %556 {offsets = [0, 32], sizes = [8, 32], strides = [1, 1]} : vector<8x64xf32> to vector<8x32xf32>
    %563 = arith.index_cast %531 : i32 to index
    %c0_223 = arith.constant 0 : index
    %c0_224 = arith.constant 0 : index
    %564 = vector.load %arg21[%563, %c0_223, %c0_224] : memref<8x8x32xf32, #tpu.memory_space<vmem>>, vector<1x8x32xf32>
    %565 = vector.shape_cast %564 : vector<1x8x32xf32> to vector<8x32xf32>
    %566 = vector.shape_cast %562 : vector<8x32xf32> to vector<1x8x32xf32>
    tpu.vector_store %arg21[%563, %c0_223, %c0_224], %566 {strides = array<i32>} : memref<8x8x32xf32, #tpu.memory_space<vmem>>, vector<1x8x32xf32>,
    %c6_i32_225 = arith.constant 6 : i32
    %c7_i32_226 = arith.constant 7 : i32
    %567 = arith.subi %c7_i32_226, %c6_i32_225 : i32
    %cst_227 = arith.constant dense<0.000000e+00> : vector<8x256xf32>
    %568 = tpu.matmul %556, %346, %cst_227 {dimension_numbers = #tpu.dot_dimension_numbers<[1], [0], [0], [1], [0, 0, 1, 1], [], []>} : vector<8x64xf32>, vector<64x256xf32>, vector<8x256xf32> -> vector<8x256xf32>
    %569 = arith.index_cast %c6_i32_225 : i32 to index
    %c0_228 = arith.constant 0 : index
    %c0_229 = arith.constant 0 : index
    %570 = vector.load %arg18[%569, %c0_228, %c0_229] : memref<8x8x256xf32, #tpu.memory_space<vmem>>, vector<1x8x256xf32>
    %571 = vector.shape_cast %570 : vector<1x8x256xf32> to vector<8x256xf32>
    %572 = arith.addf %568, %571 : vector<8x256xf32>
    %573 = arith.index_cast %567 : i32 to index
    %c0_230 = arith.constant 0 : index
    %c0_231 = arith.constant 0 : index
    %574 = vector.load %arg19[%573, %c0_230, %c0_231] : memref<8x8x256xf32, #tpu.memory_space<vmem>>, vector<1x8x256xf32>
    %575 = vector.shape_cast %574 : vector<1x8x256xf32> to vector<8x256xf32>
    %576 = arith.addf %572, %575 : vector<8x256xf32>
    %577 = math.tanh %576 : vector<8x256xf32>
    %578 = arith.negf %576 : vector<8x256xf32>
    %579 = math.exp %578 : vector<8x256xf32>
    %cst_232 = arith.constant 1.000000e+00 : f32
    %580 = vector.broadcast %cst_232 : f32 to vector<8x256xf32>
    %581 = arith.addf %580, %579 : vector<8x256xf32>
    %582 = arith.divf %580, %581 : vector<8x256xf32>
    %583 = arith.select %5, %577, %582 : vector<8x256xi1>, vector<8x256xf32>
    %584 = vector.extract_strided_slice %583 {offsets = [0, 0], sizes = [8, 64], strides = [1, 1]} : vector<8x256xf32> to vector<8x64xf32>
    %585 = vector.extract_strided_slice %583 {offsets = [0, 64], sizes = [8, 64], strides = [1, 1]} : vector<8x256xf32> to vector<8x64xf32>
    %586 = vector.extract_strided_slice %583 {offsets = [0, 128], sizes = [8, 64], strides = [1, 1]} : vector<8x256xf32> to vector<8x64xf32>
    %587 = vector.extract_strided_slice %583 {offsets = [0, 192], sizes = [8, 64], strides = [1, 1]} : vector<8x256xf32> to vector<8x64xf32>
    %588 = arith.mulf %585, %554 : vector<8x64xf32>
    %589 = arith.mulf %584, %586 : vector<8x64xf32>
    %590 = arith.addf %588, %589 : vector<8x64xf32>
    %591 = math.tanh %590 : vector<8x64xf32>
    %592 = arith.mulf %587, %591 : vector<8x64xf32>
    %593 = vector.extract_strided_slice %592 {offsets = [0, 0], sizes = [8, 32], strides = [1, 1]} : vector<8x64xf32> to vector<8x32xf32>
    %594 = arith.index_cast %c6_i32_225 : i32 to index
    %c0_233 = arith.constant 0 : index
    %c0_234 = arith.constant 0 : index
    %595 = vector.load %arg20[%594, %c0_233, %c0_234] : memref<8x8x32xf32, #tpu.memory_space<vmem>>, vector<1x8x32xf32>
    %596 = vector.shape_cast %595 : vector<1x8x32xf32> to vector<8x32xf32>
    %597 = vector.shape_cast %593 : vector<8x32xf32> to vector<1x8x32xf32>
    tpu.vector_store %arg20[%594, %c0_233, %c0_234], %597 {strides = array<i32>} : memref<8x8x32xf32, #tpu.memory_space<vmem>>, vector<1x8x32xf32>,
    %598 = vector.extract_strided_slice %592 {offsets = [0, 32], sizes = [8, 32], strides = [1, 1]} : vector<8x64xf32> to vector<8x32xf32>
    %599 = arith.index_cast %567 : i32 to index
    %c0_235 = arith.constant 0 : index
    %c0_236 = arith.constant 0 : index
    %600 = vector.load %arg21[%599, %c0_235, %c0_236] : memref<8x8x32xf32, #tpu.memory_space<vmem>>, vector<1x8x32xf32>
    %601 = vector.shape_cast %600 : vector<1x8x32xf32> to vector<8x32xf32>
    %602 = vector.shape_cast %598 : vector<8x32xf32> to vector<1x8x32xf32>
    tpu.vector_store %arg21[%599, %c0_235, %c0_236], %602 {strides = array<i32>} : memref<8x8x32xf32, #tpu.memory_space<vmem>>, vector<1x8x32xf32>,
    %c7_i32_237 = arith.constant 7 : i32
    %c7_i32_238 = arith.constant 7 : i32
    %603 = arith.subi %c7_i32_238, %c7_i32_237 : i32
    %cst_239 = arith.constant dense<0.000000e+00> : vector<8x256xf32>
    %604 = tpu.matmul %592, %346, %cst_239 {dimension_numbers = #tpu.dot_dimension_numbers<[1], [0], [0], [1], [0, 0, 1, 1], [], []>} : vector<8x64xf32>, vector<64x256xf32>, vector<8x256xf32> -> vector<8x256xf32>
    %605 = arith.index_cast %c7_i32_237 : i32 to index
    %c0_240 = arith.constant 0 : index
    %c0_241 = arith.constant 0 : index
    %606 = vector.load %arg18[%605, %c0_240, %c0_241] : memref<8x8x256xf32, #tpu.memory_space<vmem>>, vector<1x8x256xf32>
    %607 = vector.shape_cast %606 : vector<1x8x256xf32> to vector<8x256xf32>
    %608 = arith.addf %604, %607 : vector<8x256xf32>
    %609 = arith.index_cast %603 : i32 to index
    %c0_242 = arith.constant 0 : index
    %c0_243 = arith.constant 0 : index
    %610 = vector.load %arg19[%609, %c0_242, %c0_243] : memref<8x8x256xf32, #tpu.memory_space<vmem>>, vector<1x8x256xf32>
    %611 = vector.shape_cast %610 : vector<1x8x256xf32> to vector<8x256xf32>
    %612 = arith.addf %608, %611 : vector<8x256xf32>
    %613 = math.tanh %612 : vector<8x256xf32>
    %614 = arith.negf %612 : vector<8x256xf32>
    %615 = math.exp %614 : vector<8x256xf32>
    %cst_244 = arith.constant 1.000000e+00 : f32
    %616 = vector.broadcast %cst_244 : f32 to vector<8x256xf32>
    %617 = arith.addf %616, %615 : vector<8x256xf32>
    %618 = arith.divf %616, %617 : vector<8x256xf32>
    %619 = arith.select %5, %613, %618 : vector<8x256xi1>, vector<8x256xf32>
    %620 = vector.extract_strided_slice %619 {offsets = [0, 0], sizes = [8, 64], strides = [1, 1]} : vector<8x256xf32> to vector<8x64xf32>
    %621 = vector.extract_strided_slice %619 {offsets = [0, 64], sizes = [8, 64], strides = [1, 1]} : vector<8x256xf32> to vector<8x64xf32>
    %622 = vector.extract_strided_slice %619 {offsets = [0, 128], sizes = [8, 64], strides = [1, 1]} : vector<8x256xf32> to vector<8x64xf32>
    %623 = vector.extract_strided_slice %619 {offsets = [0, 192], sizes = [8, 64], strides = [1, 1]} : vector<8x256xf32> to vector<8x64xf32>
    %624 = arith.mulf %621, %590 : vector<8x64xf32>
    %625 = arith.mulf %620, %622 : vector<8x64xf32>
    %626 = arith.addf %624, %625 : vector<8x64xf32>
    %627 = math.tanh %626 : vector<8x64xf32>
    %628 = arith.mulf %623, %627 : vector<8x64xf32>
    %629 = vector.extract_strided_slice %628 {offsets = [0, 0], sizes = [8, 32], strides = [1, 1]} : vector<8x64xf32> to vector<8x32xf32>
    %630 = arith.index_cast %c7_i32_237 : i32 to index
    %c0_245 = arith.constant 0 : index
    %c0_246 = arith.constant 0 : index
    %631 = vector.load %arg20[%630, %c0_245, %c0_246] : memref<8x8x32xf32, #tpu.memory_space<vmem>>, vector<1x8x32xf32>
    %632 = vector.shape_cast %631 : vector<1x8x32xf32> to vector<8x32xf32>
    %633 = vector.shape_cast %629 : vector<8x32xf32> to vector<1x8x32xf32>
    tpu.vector_store %arg20[%630, %c0_245, %c0_246], %633 {strides = array<i32>} : memref<8x8x32xf32, #tpu.memory_space<vmem>>, vector<1x8x32xf32>,
    %634 = vector.extract_strided_slice %628 {offsets = [0, 32], sizes = [8, 32], strides = [1, 1]} : vector<8x64xf32> to vector<8x32xf32>
    %635 = arith.index_cast %603 : i32 to index
    %c0_247 = arith.constant 0 : index
    %c0_248 = arith.constant 0 : index
    %636 = vector.load %arg21[%635, %c0_247, %c0_248] : memref<8x8x32xf32, #tpu.memory_space<vmem>>, vector<1x8x32xf32>
    %637 = vector.shape_cast %636 : vector<1x8x32xf32> to vector<8x32xf32>
    %638 = vector.shape_cast %634 : vector<8x32xf32> to vector<1x8x32xf32>
    tpu.vector_store %arg21[%635, %c0_247, %c0_248], %638 {strides = array<i32>} : memref<8x8x32xf32, #tpu.memory_space<vmem>>, vector<1x8x32xf32>,
    %c8_i32_249 = arith.constant 8 : i32
    %c1_250 = arith.constant 1 : index
    %c0_251 = arith.constant 0 : index
    %c0_252 = arith.constant 0 : index
    %639 = vector.load %arg16[%c1_250, %c0_251, %c0_252] : memref<2x8x64xf32, #tpu.memory_space<vmem>>, vector<1x8x64xf32>
    %640 = vector.shape_cast %639 : vector<1x8x64xf32> to vector<8x64xf32>
    %641 = vector.shape_cast %628 : vector<8x64xf32> to vector<1x8x64xf32>
    tpu.vector_store %arg16[%c1_250, %c0_251, %c0_252], %641 {strides = array<i32>} : memref<2x8x64xf32, #tpu.memory_space<vmem>>, vector<1x8x64xf32>,
    %c1_253 = arith.constant 1 : index
    %c0_254 = arith.constant 0 : index
    %c0_255 = arith.constant 0 : index
    %642 = vector.load %arg17[%c1_253, %c0_254, %c0_255] : memref<2x8x64xf32, #tpu.memory_space<vmem>>, vector<1x8x64xf32>
    %643 = vector.shape_cast %642 : vector<1x8x64xf32> to vector<8x64xf32>
    %644 = vector.shape_cast %626 : vector<8x64xf32> to vector<1x8x64xf32>
    tpu.vector_store %arg17[%c1_253, %c0_254, %c0_255], %644 {strides = array<i32>} : memref<2x8x64xf32, #tpu.memory_space<vmem>>, vector<1x8x64xf32>,
    %c0_256 = arith.constant 0 : index
    %c0_257 = arith.constant 0 : index
    %c0_258 = arith.constant 0 : index
    %645 = vector.load %arg20[%c0_256, %c0_257, %c0_258] : memref<8x8x32xf32, #tpu.memory_space<vmem>>, vector<8x8x32xf32>
    %c0_259 = arith.constant 0 : index
    %c0_260 = arith.constant 0 : index
    %c0_261 = arith.constant 0 : index
    %646 = vector.load %arg21[%c0_259, %c0_260, %c0_261] : memref<8x8x32xf32, #tpu.memory_space<vmem>>, vector<8x8x32xf32>
    %647 = arith.addf %645, %646 : vector<8x8x32xf32>
    %648 = vector.shape_cast %647 : vector<8x8x32xf32> to vector<64x32xf32>
    %c0_262 = arith.constant 0 : index
    %c0_263 = arith.constant 0 : index
    %649 = vector.load %arg13[%c0_262, %c0_263] : memref<32x128xf32, #tpu.memory_space<vmem>>, vector<32x128xf32>
    %cst_264 = arith.constant dense<0.000000e+00> : vector<64x128xf32>
    %650 = tpu.matmul %648, %649, %cst_264 {dimension_numbers = #tpu.dot_dimension_numbers<[1], [0], [0], [1], [0, 0, 1, 1], [], []>} : vector<64x32xf32>, vector<32x128xf32>, vector<64x128xf32> -> vector<64x128xf32>
    %c0_265 = arith.constant 0 : index
    %c0_266 = arith.constant 0 : index
    %651 = vector.load %arg14[%c0_265, %c0_266] : memref<1x128xf32, #tpu.memory_space<vmem>>, vector<1x128xf32>
    %652 = vector.broadcast %651 : vector<1x128xf32> to vector<64x128xf32>
    %653 = arith.addf %650, %652 : vector<64x128xf32>
    %654 = tpu.iota {dimensions = array<i32: 1>} : vector<64x128xi32>
    %c16_i32 = arith.constant 16 : i32
    %655 = vector.broadcast %c16_i32 : i32 to vector<64x128xi32>
    %656 = arith.cmpi slt, %654, %655 : vector<64x128xi32>
    %cst_267 = arith.constant -1.000000e+30 : f32
    %657 = vector.broadcast %cst_267 : f32 to vector<64x128xf32>
    %658 = arith.select %656, %653, %657 : vector<64x128xi1>, vector<64x128xf32>
    %cst_268 = arith.constant dense<0xFF800000> : vector<64xf32>
    %659 = vector.multi_reduction <maximumf>, %658, %cst_268 [1] : vector<64x128xf32> to vector<64xf32>
    %660 = vector.shape_cast %659 : vector<64xf32> to vector<64x1xf32>
    %661 = vector.broadcast %660 : vector<64x1xf32> to vector<64x128xf32>
    %662 = arith.subf %658, %661 : vector<64x128xf32>
    %663 = math.exp %662 : vector<64x128xf32>
    %cst_269 = arith.constant dense<0.000000e+00> : vector<64xf32>
    %664 = vector.multi_reduction <add>, %663, %cst_269 [1] : vector<64x128xf32> to vector<64xf32>
    %665 = vector.shape_cast %664 : vector<64xf32> to vector<64x1xf32>
    %666 = tpu.reciprocal %665 : vector<64x1xf32> -> vector<64x1xf32>
    %667 = vector.broadcast %666 : vector<64x1xf32> to vector<64x128xf32>
    %668 = arith.mulf %663, %667 : vector<64x128xf32>
    %c0_270 = arith.constant 0 : index
    %c0_271 = arith.constant 0 : index
    %669 = vector.load %arg15[%c0_270, %c0_271] : memref<64x128xf32, #tpu.memory_space<vmem>>, vector<64x128xf32>
    tpu.vector_store %arg15[%c0_270, %c0_271], %668 {strides = array<i32>} : memref<64x128xf32, #tpu.memory_space<vmem>>, vector<64x128xf32>,
    return
  }
}

</mosaic_0001>

<bundles_post_ra>
// kernel: q_predictor_forward.1
= control target key start
LH: loop header
LB: loop body
LE: loop exit
PB: predicated region body
PF: predicated region fallthrough
CT: control target
= control target key end

     0   :  { %v4030_v3 = vmov 0.0   ;;  %vm98_vm0 = vcmask 130048   ;;  %s4031_s27 = smov 64   ;;  %vm413_vm1 = vcmask 523264   ;;  %v53_v55 = vlaneseq  ;;  %s4032_s21 = smov 32   ;;  %s5082_s1 = inlined_call_operand.vmem [shape: f32[16,256], index: 1, kind: input, shape index: {}]   ;;  %s5083_s0 = inlined_call_operand.vmem [shape: f32[64,16], index: 0, kind: input, shape index: {}]   ;;  %s5084_s2 = inlined_call_operand.vmem [shape: f32[16,256], index: 2, kind: input, shape index: {}]   ;;  %s5085_s5 = inlined_call_operand.vmem [shape: f32[64,256], index: 5, kind: input, shape index: {}]   ;;  %s5086_s12 = inlined_call_operand.vmem [shape: f32[2,8,64], index: 12, kind: input, shape index: {}]   ;;  %s5087_s11 = inlined_call_operand.vmem [shape: f32[2,8,64], index: 11, kind: input, shape index: {}]   ;;  %s5088_s3 = inlined_call_operand.vmem [shape: f32[1,256], index: 3, kind: input, shape index: {}]   ;;  %s5089_s4 = inlined_call_operand.vmem [shape: f32[1,256], index: 4, kind: input, shape index: {}]   ;;  %s5090_s6 = inlined_call_operand.vmem [shape: f32[64,256], index: 6, kind: input, shape index: {}]   ;;  %s5091_s7 = inlined_call_operand.vmem [shape: f32[64,256], index: 7, kind: input, shape index: {}]   ;;  %s5092_s16 = inlined_call_operand.vmem [shape: f32[2,8,64], index: 16, kind: output, shape index: {1}]   ;;  %s5093_s10 = inlined_call_operand.vmem [shape: f32[64,256], index: 10, kind: input, shape index: {}]   ;;  %s5094_s8 = inlined_call_operand.vmem [shape: f32[1,256], index: 8, kind: input, shape index: {}]   ;;  %s5095_s9 = inlined_call_operand.vmem [shape: f32[1,256], index: 9, kind: input, shape index: {}]   ;;  %s5096_s13 = inlined_call_operand.vmem [shape: f32[32,128], index: 13, kind: input, shape index: {}]   ;;  %s5097_s14 = inlined_call_operand.vmem [shape: f32[1,128], index: 14, kind: input, shape index: {}]   ;;  %s5098_s15 = inlined_call_operand.vmem [shape: f32[64,128], index: 15, kind: output, shape index: {0}]   ;;  %s5099_s17 = inlined_call_operand.vmem [shape: f32[2,8,64], index: 17, kind: output, shape index: {2}]  }
   0x1   :  { %5102 = sst [smem:[#allocation6_spill]] %s5082_s1  ;;  %187 = vmatprep.mubr.f32.mxu0 %v4030_v3  ;;  %1512 = vmatprep.mubr.f32.mxu1 %v4030_v3  ;;  %v83_v7 = vld [vmem:[%s5084_s2 + $0x8] sm:$0xff]  ;;  %v85_v9 = vld [vmem:[%s5084_s2 + $0x18] sm:$0xff]  ;;  %v82_v10 = vld [vmem:[%s5084_s2] sm:$0xff]  ;;  %vm526_vm3 = vcmask 261120  }
   0x2   :  { %5103 = sst [smem:[#allocation7_spill]] %s5083_s0  ;;  %s5104_s26 = sld [smem:[#allocation6_spill]]  ;;  %v84_v11 = vld [vmem:[%s5084_s2 + $0x10] sm:$0xff]  ;;  %v3339_v13 = vpack.c.bf16 %v85_v9, %v83_v7  ;;  %v394_v16 = vld [vmem:[%s5085_s5 + $0x8] sm:$0xff]  ;;  %v396_v17 = vld [vmem:[%s5085_s5 + $0x18] sm:$0xff]  ;;  %v89_v56 = vshrl.u32 %v53_v55, 7 }
   0x3   :  { %s5105_s20 = sld [smem:[#allocation7_spill]]  ;;  %v3341_v14 = vpack.c.bf16 %v84_v11, %v82_v10  ;;  %v4164_v18 = vpack.c.bf16 %v396_v17, %v394_v16  ;;  %v410_v22 = vld [vmem:[%s5086_s12] sm:$0xff]  ;;  %v395_v34 = vld [vmem:[%s5085_s5 + $0x10] sm:$0xff]  ;;  %v398_v35 = vld [vmem:[%s5085_s5 + $0x28] sm:$0xff] }
   0x4   :  { %510 = vrot.lane.b32.xlu0 %v410_v22, %s4031_s27  ;;  %v393_v33 = vld [vmem:[%s5085_s5] sm:$0xff]  ;;  %v400_v36 = vld [vmem:[%s5085_s5 + $0x38] sm:$0xff]  ;;  %v399_v40 = vld [vmem:[%s5085_s5 + $0x30] sm:$0xff]  ;;  %v4298_v57 = vsub.s32 0, %v89_v56  ;;  %v4306_v60 = vsub.s32 1, %v89_v56 }
   0x5   :  { %v4217_v37 = vpack.c.bf16 %v395_v34, %v393_v33  ;;  %v4219_v38 = vpack.c.bf16 %v400_v36, %v398_v35  ;;  %v397_v39 = vld [vmem:[%s5085_s5 + $0x20] sm:$0xff]  ;;  %v402_v41 = vld [vmem:[%s5085_s5 + $0x48] sm:$0xff]  ;;  %v404_v42 = vld [vmem:[%s5085_s5 + $0x58] sm:$0xff] }
   0x6   :  { %v4236_v43 = vpack.c.bf16 %v399_v40, %v397_v39  ;;  %v4239_v44 = vpack.c.bf16 %v404_v42, %v402_v41  ;;  %v401_v45 = vld [vmem:[%s5085_s5 + $0x40] sm:$0xff]  ;;  %v403_v46 = vld [vmem:[%s5085_s5 + $0x50] sm:$0xff]  ;;  %v406_v47 = vld [vmem:[%s5085_s5 + $0x68] sm:$0xff] }
   0x7   :  { %v408_v48 = vld [vmem:[%s5085_s5 + $0x78] sm:$0xff]  ;;  %v4256_v49 = vpack.c.bf16 %v403_v46, %v401_v45  ;;  %v405_v51 = vld [vmem:[%s5085_s5 + $0x60] sm:$0xff]  ;;  %v407_v52 = vld [vmem:[%s5085_s5 + $0x70] sm:$0xff] }
   0x8   :  { %v79_v0 = vld [vmem:[%s5104_s26 + $0x8] sm:$0xff]  ;;  %v81_v1 = vld [vmem:[%s5104_s26 + $0x18] sm:$0xff]  ;;  %v78_v2 = vld [vmem:[%s5104_s26] sm:$0xff]  ;;  %v4259_v50 = vpack.c.bf16 %v408_v48, %v406_v47  ;;  %v4270_v53 = vpack.c.bf16 %v407_v52, %v405_v51 }
   0x9   :  { %v3335_v4 = vpack.c.bf16 %v81_v1, %v79_v0  ;;  %v80_v5 = vld [vmem:[%s5104_s26 + $0x10] sm:$0xff]  ;;  %v4140_v6 = vld [vmem:[%s5105_s20] sm:$0xff]  ;;  %v63_v15 = vld [vmem:[%s5105_s20 + $0x8] sm:$0xff] }
   0xa   :  { %v3337_v8 = vpack.c.bf16 %v80_v5, %v78_v2  ;;  %v70_v12 = vmax.f32 %v4140_v6, 0.0  ;;  %v71_v19 = vmax.f32 %v63_v15, 0.0  ;;  %v64_v20 = vld [vmem:[%s5105_s20 + $0x10] sm:$0xff]  ;;  %v65_v23 = vld [vmem:[%s5105_s20 + $0x18] sm:$0xff]  ;;  %v66_v25 = vld [vmem:[%s5105_s20 + $0x20] sm:$0xff] }
   0xb   :  { %3336 = vmatprep.subr.bf16.mxu0 %v3335_v4  ;;  %v72_v21 = vmax.f32 %v64_v20, 0.0  ;;  %v73_v24 = vmax.f32 %v65_v23, 0.0  ;;  %v74_v26 = vmax.f32 %v66_v25, 0.0  ;;  %v67_v27 = vld [vmem:[%s5105_s20 + $0x28] sm:$0xff]  ;;  %v68_v29 = vld [vmem:[%s5105_s20 + $0x30] sm:$0xff]  ;;  %v69_v31 = vld [vmem:[%s5105_s20 + $0x38] sm:$0xff] }
   0xc   :  { %3338 = vmatpush1.bf16.msra.mxu0 %v3337_v8  ;;  %v75_v28 = vmax.f32 %v67_v27, 0.0  ;;  %v76_v30 = vmax.f32 %v68_v29, 0.0  ;;  %v77_v32 = vmax.f32 %v69_v31, 0.0  ;;  %v409_v54 = vld [vmem:[%s5087_s11] sm:$0xff] }
   0xd   :  { %3340 = vmatprep.subr.bf16.mxu0 %v3339_v13  ;;  %v86_v58 = vld [vmem:[%s5088_s3] sm:$0x3] }
   0xe   :  { %v252_v59 = vld [vmem:[%s5089_s4] sm:$0x3]  ;;  %v91_v61 = vrot.slane %v86_v58, %v4298_v57  ;;  %v95_v63 = vrot.slane %v86_v58, %v4306_v60 }
   0xf   :  { %3194 = vmatmul.mubr.msk.f32.vlgmr.msra.gmra.mrb[0].mxu0 %vm98_vm0, %v70_v12  ;;  %v257_v62 = vrot.slane %v252_v59, %v4298_v57  ;;  %v261_v0 = vrot.slane %v252_v59, %v4306_v60 }
  0x10   :  { %3342 = vmatpush1.bf16.msra.mxu0 %v3341_v14  ;;  %193 = vmatprep.mubr.f32.mxu0 %v4030_v3  ;;  %v4318_v14 = vand.u32 127, %v53_v55 }
  0x11   :  { %3344 = vmatprep.subr.bf16.mxu0 %v4164_v18  ;;  %v4312_v1 = vadd.f32 %v257_v62, %v91_v61  ;;  %v4314_v2 = vadd.f32 %v261_v0, %v95_v63 }
  0x12   :  { %v4321_v15 = vadd.s32 128, %v4318_v14  ;;  %vm3093_vm4 = vcmp.lt.s32.totalorder %v4318_v14, 16 }
  0x13   :  { %3195 = vmatmul.mubr.msk.f32.gmra.mrb[2].mxu0 %vm98_vm0, %v71_v19 }
  0x14   :  { %199 = vmatprep.mubr.f32.mxu0 %v4030_v3  ;;  %vm59_vm2 = vcmp.lt.s32.totalorder %v4321_v15, 192  ;;  %v2954_v15 = vld [vmem:[%s5096_s13 + $0x8] sm:$0xff] }
  0x17   :  { %3196 = vmatmul.mubr.msk.f32.gmra.mrb[4].mxu0 %vm98_vm0, %v72_v21 }
  0x18   :  { %205 = vmatprep.mubr.f32.mxu0 %v4030_v3 }
  0x1b   :  { %3197 = vmatmul.mubr.msk.f32.gmra.mrb[6].mxu0 %vm98_vm0, %v73_v24 }
  0x1c   :  { %211 = vmatprep.mubr.f32.mxu0 %v4030_v3 }
  0x1f   :  { %3198 = vmatmul.mubr.msk.f32.gmra.mrb[8].mxu0 %vm98_vm0, %v74_v26 }
  0x20   :  { %217 = vmatprep.mubr.f32.mxu0 %v4030_v3 }
  0x23   :  { %3199 = vmatmul.mubr.msk.f32.gmra.mrb[10].mxu0 %vm98_vm0, %v75_v28 }
  0x24   :  { %223 = vmatprep.mubr.f32.mxu0 %v4030_v3 }
  0x27   :  { %3200 = vmatmul.mubr.msk.f32.gmra.mrb[12].mxu0 %vm98_vm0, %v76_v30 }
  0x28   :  { %229 = vmatprep.mubr.f32.mxu0 %v4030_v3 }
  0x2b   :  { %3201 = vmatmul.mubr.msk.f32.gmra.mrb[14].mxu0 %vm98_vm0, %v77_v32 }
  0x2c   :  { %328 = vmatprep.mubr.f32.mxu0 %v4030_v3 }
  0x33   :  { %3202 = vmatmul.mubr.msk.f32.vlgmr.msra.gmra.mrb[14].mxu0 %vm98_vm0, %v70_v12 }
  0x34   :  { %3346 = vmatpush1.bf16.msra.mxu0 %v4217_v37  ;;  %334 = vmatprep.mubr.f32.mxu0 %v4030_v3 }
  0x35   :  { %3348 = vmatprep.subr.bf16.mxu0 %v4219_v38 }
  0x37   :  { %3203 = vmatmul.mubr.msk.f32.gmra.mrb[12].mxu0 %vm98_vm0, %v71_v19 }
  0x38   :  { %340 = vmatprep.mubr.f32.mxu0 %v4030_v3  ;;  %3350 = vmatpush1.bf16.msra.mxu0 %v4236_v43 }
  0x39   :  { %3352 = vmatprep.subr.bf16.mxu0 %v4239_v44 }
  0x3b   :  { %3204 = vmatmul.mubr.msk.f32.gmra.mrb[10].mxu0 %vm98_vm0, %v72_v21 }
  0x3c   :  { %346 = vmatprep.mubr.f32.mxu0 %v4030_v3  ;;  %3354 = vmatpush1.bf16.msra.mxu0 %v4256_v49 }
  0x3d   :  { %3356 = vmatprep.subr.bf16.mxu0 %v4259_v50 }
  0x3f   :  { %3205 = vmatmul.mubr.msk.f32.gmra.mrb[8].mxu0 %vm98_vm0, %v73_v24 }
  0x40   :  { %352 = vmatprep.mubr.f32.mxu0 %v4030_v3  ;;  %3358 = vmatpush1.bf16.msra.mxu0 %v4270_v53 }
  0x41   :  { %3360 = vmatprep.subr.bf16.mxu0 %v4164_v18 }
  0x43   :  { %3206 = vmatmul.mubr.msk.f32.gmra.mrb[6].mxu0 %vm98_vm0, %v74_v26 }
  0x44   :  { %358 = vmatprep.mubr.f32.mxu0 %v4030_v3 }
  0x47   :  { %3207 = vmatmul.mubr.msk.f32.gmra.mrb[4].mxu0 %vm98_vm0, %v75_v28 }
  0x48   :  { %364 = vmatprep.mubr.f32.mxu0 %v4030_v3 }
  0x4b   :  { %3208 = vmatmul.mubr.msk.f32.gmra.mrb[2].mxu0 %vm98_vm0, %v76_v30 }
  0x4c   :  { %370 = vmatprep.mubr.f32.mxu0 %v4030_v3 }
  0x4f   :  { %3209 = vmatmul.mubr.msk.f32.gmra.mrb[0].mxu0 %vm98_vm0, %v77_v32 }
  0x50   :  { %481 = vmatprep.mubr.f32.mxu0 %v4030_v3 }
  0x57   :  { %3210 = vmatmul.mubr.msk.f32.vlgmr.msra.gmra.mrb[0].mxu0 %vm413_vm1, %v409_v54 }
  0x58   :  { %3362 = vmatpush1.bf16.msra.mxu0 %v4217_v37  ;;  %602 = vmatprep.mubr.f32.mxu0 %v4030_v3 }
  0x59   :  { %3364 = vmatprep.subr.bf16.mxu0 %v4219_v38 }
  0x5c   :  { %3366 = vmatpush1.bf16.msra.mxu0 %v4236_v43 }
  0x5d   :  { %3368 = vmatprep.subr.bf16.mxu0 %v4239_v44 }
  0x60   :  { %3370 = vmatpush1.bf16.msra.mxu0 %v4256_v49 }
  0x61   :  { %3372 = vmatprep.subr.bf16.mxu0 %v4259_v50 }
  0x64   :  { %3374 = vmatpush1.bf16.msra.mxu0 %v4270_v53 }
  0x65   :  { %3376 = vmatprep.subr.bf16.mxu0 %v4164_v18 }
  0x76   :  { %v511_v22 = vpop.permute.xlu0 %510 }
 0x12a   :  { %v483_v4 = vpop.f32.mrb[0].mxu0 }
 0x12b   :  { %v3644_v5 = vadd.f32 %v4312_v1, %v483_v4  ;;  %v485_v6 = vpop.f32.mrb[1].mxu0 }
 0x12c   :  { %v3646_v7 = vadd.f32 %v4314_v2, %v485_v6 }
 0x12d   :  { %v3211_v8 = vmul.f32 -1.442695, %v3644_v5 }
 0x12e   :  { %v3212_v9 = vmul.f32 -1.442695, %v3646_v7 }
 0x12f   :  { %3806 = vpow2.f32 %v3211_v8 }
 0x130   :  { %3808 = vpow2.f32 %v3212_v9 }
 0x131   :  { %3810 = vtanh.f32 %v3646_v7 }
 0x139   :  { %v3807_v10 = vpop.eup %3806 }
 0x13a   :  { %v3809_v11 = vpop.eup %3808  ;;  %v501_v12 = vadd.f32 1.0, %v3807_v10 }
 0x13b   :  { %v502_v13 = vadd.f32 1.0, %v3809_v11  ;;  %v3811_v16 = vpop.eup %3810 }
 0x13d   :  { %3812 = vrcp.f32 %v502_v13 }
 0x13e   :  { %3814 = vrcp.f32 %v501_v12 }
 0x147   :  { %v3813_v17 = vpop.eup %3812 }
 0x148   :  { %v3815_v19 = vpop.eup %3814  ;;  %v508_v20 = vsel %vm59_vm2, %v3811_v16, %v3813_v17 }
 0x149   :  { %v514_v21 = vmul.f32 %v3815_v19, %v508_v20  ;;  %v513_v23 = vmul.f32 %v3815_v19, %v511_v22 }
 0x14b   :  { %516 = vrot.lane.b32.xlu0 %v514_v21, %s4031_s27 }
 0x1bd   :  { %v517_v24 = vpop.permute.xlu0 %516 }
 0x1be   :  { %v519_v25 = vadd.f32 %v517_v24, %v513_v23 }
 0x1c0   :  { %3816 = vtanh.f32 %v519_v25 }
 0x1ca   :  { %v3817_v26 = vpop.eup %3816 }
 0x1cb   :  { %v4327_v27 = vmul.f32 %v3817_v26, %v508_v20 }
 0x1cd   :  { %523 = vrot.lane.b32.xlu1 %v4327_v27, %s4031_s27 }
 0x23f   :  { %v524_v28 = vpop.permute.xlu1 %523 }
 0x240   :  { %527 = vst.msk [vmem:[#allocation4] sm:$0xff] %vm526_vm3, %v524_v28  ;;  %3213 = vmatmul.mubr.msk.f32.vlgmr.msra.gmra.mrb[2].mxu0 %vm413_vm1, %v524_v28 }
 0x241   :  { %3378 = vmatpush1.bf16.msra.mxu0 %v4217_v37  ;;  %719 = vmatprep.mubr.f32.mxu0 %v4030_v3 }
 0x242   :  { %3380 = vmatprep.subr.bf16.mxu0 %v4219_v38 }
 0x245   :  { %3382 = vmatpush1.bf16.msra.mxu0 %v4236_v43 }
 0x246   :  { %3384 = vmatprep.subr.bf16.mxu0 %v4239_v44 }
 0x249   :  { %3386 = vmatpush1.bf16.msra.mxu0 %v4256_v49 }
 0x24a   :  { %3388 = vmatprep.subr.bf16.mxu0 %v4259_v50 }
 0x24d   :  { %3390 = vmatpush1.bf16.msra.mxu0 %v4270_v53 }
 0x24e   :  { %3392 = vmatprep.subr.bf16.mxu0 %v4164_v18 }
 0x313   :  { %v604_v29 = vpop.f32.mrb[2].mxu0 }
 0x314   :  { %v3648_v30 = vadd.f32 %v4312_v1, %v604_v29  ;;  %v606_v31 = vpop.f32.mrb[3].mxu0 }
 0x315   :  { %v3650_v32 = vadd.f32 %v4314_v2, %v606_v31 }
 0x316   :  { %v3214_v33 = vmul.f32 -1.442695, %v3648_v30 }
 0x317   :  { %v3215_v34 = vmul.f32 -1.442695, %v3650_v32 }
 0x318   :  { %3818 = vpow2.f32 %v3214_v33 }
 0x319   :  { %3820 = vpow2.f32 %v3215_v34 }
 0x31a   :  { %3822 = vtanh.f32 %v3650_v32 }
 0x322   :  { %v3819_v35 = vpop.eup %3818 }
 0x323   :  { %v3821_v36 = vpop.eup %3820  ;;  %v622_v39 = vadd.f32 1.0, %v3819_v35 }
 0x324   :  { %v623_v40 = vadd.f32 1.0, %v3821_v36  ;;  %v3823_v41 = vpop.eup %3822 }
 0x326   :  { %3824 = vrcp.f32 %v623_v40 }
 0x327   :  { %3826 = vrcp.f32 %v622_v39 }
 0x330   :  { %v3825_v42 = vpop.eup %3824 }
 0x331   :  { %v3827_v45 = vpop.eup %3826  ;;  %v629_v46 = vsel %vm59_vm2, %v3823_v41, %v3825_v42 }
 0x332   :  { %v631_v47 = vmul.f32 %v3827_v45, %v629_v46  ;;  %v630_v48 = vmul.f32 %v3827_v45, %v519_v25 }
 0x334   :  { %633 = vrot.lane.b32.xlu1 %v631_v47, %s4031_s27 }
 0x3a6   :  { %v634_v51 = vpop.permute.xlu1 %633 }
 0x3a7   :  { %v636_v52 = vadd.f32 %v634_v51, %v630_v48 }
 0x3a9   :  { %3828 = vtanh.f32 %v636_v52 }
 0x3b3   :  { %v3829_v54 = vpop.eup %3828 }
 0x3b4   :  { %v4347_v55 = vmul.f32 %v3829_v54, %v629_v46 }
 0x3b6   :  { %640 = vrot.lane.b32.xlu0 %v4347_v55, %s4031_s27 }
 0x428   :  { %v641_v56 = vpop.permute.xlu0 %640 }
 0x429   :  { %644 = vst.msk [vmem:[#allocation4 + $0x8] sm:$0xff] %vm526_vm3, %v641_v56  ;;  %3216 = vmatmul.mubr.msk.f32.vlgmr.msra.gmra.mrb[4].mxu0 %vm413_vm1, %v641_v56 }
 0x42a   :  { %3394 = vmatpush1.bf16.msra.mxu0 %v4217_v37  ;;  %836 = vmatprep.mubr.f32.mxu0 %v4030_v3 }
 0x42b   :  { %3396 = vmatprep.subr.bf16.mxu0 %v4219_v38 }
 0x42e   :  { %3398 = vmatpush1.bf16.msra.mxu0 %v4236_v43 }
 0x42f   :  { %3400 = vmatprep.subr.bf16.mxu0 %v4239_v44 }
 0x432   :  { %3402 = vmatpush1.bf16.msra.mxu0 %v4256_v49 }
 0x433   :  { %3404 = vmatprep.subr.bf16.mxu0 %v4259_v50 }
 0x436   :  { %3406 = vmatpush1.bf16.msra.mxu0 %v4270_v53 }
 0x437   :  { %3408 = vmatprep.subr.bf16.mxu0 %v4164_v18 }
 0x4fc   :  { %v721_v58 = vpop.f32.mrb[4].mxu0 }
 0x4fd   :  { %v3652_v59 = vadd.f32 %v4312_v1, %v721_v58  ;;  %v723_v61 = vpop.f32.mrb[5].mxu0 }
 0x4fe   :  { %v3654_v62 = vadd.f32 %v4314_v2, %v723_v61 }
 0x4ff   :  { %v3217_v63 = vmul.f32 -1.442695, %v3652_v59 }
 0x500   :  { %v3218_v0 = vmul.f32 -1.442695, %v3654_v62 }
 0x501   :  { %3830 = vpow2.f32 %v3217_v63 }
 0x502   :  { %3832 = vpow2.f32 %v3218_v0 }
 0x503   :  { %3834 = vtanh.f32 %v3654_v62 }
 0x50b   :  { %v3831_v4 = vpop.eup %3830 }
 0x50c   :  { %v3833_v5 = vpop.eup %3832  ;;  %v739_v6 = vadd.f32 1.0, %v3831_v4 }
 0x50d   :  { %v740_v7 = vadd.f32 1.0, %v3833_v5  ;;  %v3835_v8 = vpop.eup %3834 }
 0x50f   :  { %3836 = vrcp.f32 %v740_v7 }
 0x510   :  { %3838 = vrcp.f32 %v739_v6 }
 0x519   :  { %v3837_v9 = vpop.eup %3836 }
 0x51a   :  { %v3839_v10 = vpop.eup %3838  ;;  %v746_v11 = vsel %vm59_vm2, %v3835_v8, %v3837_v9 }
 0x51b   :  { %v748_v12 = vmul.f32 %v3839_v10, %v746_v11  ;;  %v747_v13 = vmul.f32 %v3839_v10, %v636_v52 }
 0x51d   :  { %750 = vrot.lane.b32.xlu1 %v748_v12, %s4031_s27 }
 0x58f   :  { %v751_v16 = vpop.permute.xlu1 %750 }
 0x590   :  { %v753_v17 = vadd.f32 %v751_v16, %v747_v13 }
 0x592   :  { %3840 = vtanh.f32 %v753_v17 }
 0x59c   :  { %v3841_v19 = vpop.eup %3840 }
 0x59d   :  { %v4367_v20 = vmul.f32 %v3841_v19, %v746_v11 }
 0x59f   :  { %757 = vrot.lane.b32.xlu0 %v4367_v20, %s4031_s27 }
 0x611   :  { %v758_v21 = vpop.permute.xlu0 %757 }
 0x612   :  { %761 = vst.msk [vmem:[#allocation4 + $0x10] sm:$0xff] %vm526_vm3, %v758_v21  ;;  %3219 = vmatmul.mubr.msk.f32.vlgmr.msra.gmra.mrb[6].mxu0 %vm413_vm1, %v758_v21 }
 0x613   :  { %3410 = vmatpush1.bf16.msra.mxu0 %v4217_v37  ;;  %953 = vmatprep.mubr.f32.mxu0 %v4030_v3 }
 0x614   :  { %3412 = vmatprep.subr.bf16.mxu0 %v4219_v38 }
 0x617   :  { %3414 = vmatpush1.bf16.msra.mxu0 %v4236_v43 }
 0x618   :  { %3416 = vmatprep.subr.bf16.mxu0 %v4239_v44 }
 0x61b   :  { %3418 = vmatpush1.bf16.msra.mxu0 %v4256_v49 }
 0x61c   :  { %3420 = vmatprep.subr.bf16.mxu0 %v4259_v50 }
 0x61f   :  { %3422 = vmatpush1.bf16.msra.mxu0 %v4270_v53 }
 0x620   :  { %3424 = vmatprep.subr.bf16.mxu0 %v4164_v18 }
 0x6e5   :  { %v838_v22 = vpop.f32.mrb[6].mxu0 }
 0x6e6   :  { %v3656_v23 = vadd.f32 %v4312_v1, %v838_v22  ;;  %v840_v24 = vpop.f32.mrb[7].mxu0 }
 0x6e7   :  { %v3658_v25 = vadd.f32 %v4314_v2, %v840_v24 }
 0x6e8   :  { %v3220_v26 = vmul.f32 -1.442695, %v3656_v23 }
 0x6e9   :  { %v3221_v28 = vmul.f32 -1.442695, %v3658_v25 }
 0x6ea   :  { %3842 = vpow2.f32 %v3220_v26 }
 0x6eb   :  { %3844 = vpow2.f32 %v3221_v28 }
 0x6ec   :  { %3846 = vtanh.f32 %v3658_v25 }
 0x6f4   :  { %v3843_v29 = vpop.eup %3842 }
 0x6f5   :  { %v3845_v30 = vpop.eup %3844  ;;  %v856_v31 = vadd.f32 1.0, %v3843_v29 }
 0x6f6   :  { %v857_v32 = vadd.f32 1.0, %v3845_v30  ;;  %v3847_v33 = vpop.eup %3846 }
 0x6f8   :  { %3848 = vrcp.f32 %v857_v32 }
 0x6f9   :  { %3850 = vrcp.f32 %v856_v31 }
 0x702   :  { %v3849_v34 = vpop.eup %3848 }
 0x703   :  { %v3851_v35 = vpop.eup %3850  ;;  %v863_v36 = vsel %vm59_vm2, %v3847_v33, %v3849_v34 }
 0x704   :  { %v865_v39 = vmul.f32 %v3851_v35, %v863_v36  ;;  %v864_v40 = vmul.f32 %v3851_v35, %v753_v17 }
 0x706   :  { %867 = vrot.lane.b32.xlu1 %v865_v39, %s4031_s27 }
 0x778   :  { %v868_v41 = vpop.permute.xlu1 %867 }
 0x779   :  { %v870_v42 = vadd.f32 %v868_v41, %v864_v40 }
 0x77b   :  { %3852 = vtanh.f32 %v870_v42 }
 0x785   :  { %v3853_v45 = vpop.eup %3852 }
 0x786   :  { %v4387_v46 = vmul.f32 %v3853_v45, %v863_v36 }
 0x788   :  { %874 = vrot.lane.b32.xlu0 %v4387_v46, %s4031_s27 }
 0x7fa   :  { %v875_v47 = vpop.permute.xlu0 %874 }
 0x7fb   :  { %878 = vst.msk [vmem:[#allocation4 + $0x18] sm:$0xff] %vm526_vm3, %v875_v47  ;;  %3222 = vmatmul.mubr.msk.f32.vlgmr.msra.gmra.mrb[8].mxu0 %vm413_vm1, %v875_v47 }
 0x7fc   :  { %3426 = vmatpush1.bf16.msra.mxu0 %v4217_v37  ;;  %1070 = vmatprep.mubr.f32.mxu0 %v4030_v3 }
 0x7fd   :  { %3428 = vmatprep.subr.bf16.mxu0 %v4219_v38 }
 0x800   :  { %3430 = vmatpush1.bf16.msra.mxu0 %v4236_v43 }
 0x801   :  { %3432 = vmatprep.subr.bf16.mxu0 %v4239_v44 }
 0x804   :  { %3434 = vmatpush1.bf16.msra.mxu0 %v4256_v49 }
 0x805   :  { %3436 = vmatprep.subr.bf16.mxu0 %v4259_v50 }
 0x808   :  { %3438 = vmatpush1.bf16.msra.mxu0 %v4270_v53 }
 0x809   :  { %3440 = vmatprep.subr.bf16.mxu0 %v4164_v18 }
 0x8ce   :  { %v955_v48 = vpop.f32.mrb[8].mxu0 }
 0x8cf   :  { %v3660_v51 = vadd.f32 %v4312_v1, %v955_v48  ;;  %v957_v52 = vpop.f32.mrb[9].mxu0 }
 0x8d0   :  { %v3662_v54 = vadd.f32 %v4314_v2, %v957_v52 }
 0x8d1   :  { %v3223_v56 = vmul.f32 -1.442695, %v3660_v51 }
 0x8d2   :  { %v3224_v58 = vmul.f32 -1.442695, %v3662_v54 }
 0x8d3   :  { %3854 = vpow2.f32 %v3223_v56 }
 0x8d4   :  { %3856 = vpow2.f32 %v3224_v58 }
 0x8d5   :  { %3858 = vtanh.f32 %v3662_v54 }
 0x8dd   :  { %v3855_v59 = vpop.eup %3854 }
 0x8de   :  { %v3857_v61 = vpop.eup %3856  ;;  %v973_v62 = vadd.f32 1.0, %v3855_v59 }
 0x8df   :  { %v974_v63 = vadd.f32 1.0, %v3857_v61  ;;  %v3859_v0 = vpop.eup %3858  ;;  %v1381_v61 = vld [vmem:[%s5090_s6 + $0x48] sm:$0xff] }
 0x8e1   :  { %3860 = vrcp.f32 %v974_v63 }
 0x8e2   :  { %3862 = vrcp.f32 %v973_v62  ;;  %v1383_v62 = vld [vmem:[%s5090_s6 + $0x58] sm:$0xff] }
 0x8e3   :  { %v3471_v63 = vpack.c.bf16 %v1383_v62, %v1381_v61  ;;  %v1677_v61 = vld [vmem:[%s5091_s7 + $0x78] sm:$0xff] }
 0x8e5   :  { %3639 = vmatprep.subr.bf16.mxu1 %v3471_v63 }
 0x8eb   :  { %v3861_v4 = vpop.eup %3860 }
 0x8ec   :  { %v3863_v5 = vpop.eup %3862  ;;  %v980_v6 = vsel %vm59_vm2, %v3859_v0, %v3861_v4  ;;  %v1380_v0 = vld [vmem:[%s5090_s6 + $0x40] sm:$0xff]  ;;  %v1382_v4 = vld [vmem:[%s5090_s6 + $0x50] sm:$0xff] }
 0x8ed   :  { %v982_v7 = vmul.f32 %v3863_v5, %v980_v6  ;;  %v981_v8 = vmul.f32 %v3863_v5, %v870_v42  ;;  %v3473_v5 = vpack.c.bf16 %v1382_v4, %v1380_v0 }
 0x8ef   :  { %984 = vrot.lane.b32.xlu1 %v982_v7, %s4031_s27  ;;  %v1387_v7 = vld [vmem:[%s5090_s6 + $0x78] sm:$0xff]  ;;  %3641 = vmatpush1.bf16.msra.mxu1 %v3473_v5 }
 0x961   :  { %v985_v9 = vpop.permute.xlu1 %984 }
 0x962   :  { %v987_v10 = vadd.f32 %v985_v9, %v981_v8  ;;  %v1384_v8 = vld [vmem:[%s5090_s6 + $0x60] sm:$0xff] }
 0x964   :  { %3864 = vtanh.f32 %v987_v10 }
 0x96e   :  { %v3865_v11 = vpop.eup %3864 }
 0x96f   :  { %v4407_v12 = vmul.f32 %v3865_v11, %v980_v6  ;;  %v1385_v6 = vld [vmem:[%s5090_s6 + $0x68] sm:$0xff] }
 0x970   :  { %v3475_v9 = vpack.c.bf16 %v1387_v7, %v1385_v6  ;;  %v1676_v6 = vld [vmem:[%s5091_s7 + $0x70] sm:$0xff]  ;;  %v4555_v7 = vld [vmem:[#allocation4] sm:$0xff] }
 0x971   :  { %991 = vrot.lane.b32.xlu0 %v4407_v12, %s4031_s27 }
 0x972   :  { %3640 = vmatprep.subr.bf16.mxu1 %v3475_v9 }
 0x9e3   :  { %v992_v13 = vpop.permute.xlu0 %991 }
 0x9e4   :  { %995 = vst.msk [vmem:[#allocation4 + $0x20] sm:$0xff] %vm526_vm3, %v992_v13  ;;  %3225 = vmatmul.mubr.msk.f32.vlgmr.msra.gmra.mrb[10].mxu0 %vm413_vm1, %v992_v13 }
 0x9e5   :  { %3442 = vmatpush1.bf16.msra.mxu0 %v4217_v37  ;;  %1187 = vmatprep.mubr.f32.mxu0 %v4030_v3 }
 0x9e6   :  { %3444 = vmatprep.subr.bf16.mxu0 %v4219_v38 }
 0x9e9   :  { %3446 = vmatpush1.bf16.msra.mxu0 %v4236_v43 }
 0x9ea   :  { %3448 = vmatprep.subr.bf16.mxu0 %v4239_v44 }
 0x9ed   :  { %3450 = vmatpush1.bf16.msra.mxu0 %v4256_v49 }
 0x9ee   :  { %3452 = vmatprep.subr.bf16.mxu0 %v4259_v50 }
 0x9f1   :  { %3454 = vmatpush1.bf16.msra.mxu0 %v4270_v53 }
 0x9f2   :  { %3456 = vmatprep.subr.bf16.mxu0 %v4164_v18 }
 0xab7   :  { %v1072_v16 = vpop.f32.mrb[10].mxu0 }
 0xab8   :  { %v3664_v17 = vadd.f32 %v4312_v1, %v1072_v16  ;;  %v1074_v19 = vpop.f32.mrb[11].mxu0 }
 0xab9   :  { %v3666_v21 = vadd.f32 %v4314_v2, %v1074_v19 }
 0xaba   :  { %v3226_v22 = vmul.f32 -1.442695, %v3664_v17 }
 0xabb   :  { %v3227_v23 = vmul.f32 -1.442695, %v3666_v21 }
 0xabc   :  { %3866 = vpow2.f32 %v3226_v22 }
 0xabd   :  { %3868 = vpow2.f32 %v3227_v23 }
 0xabe   :  { %3870 = vtanh.f32 %v3666_v21 }
 0xac6   :  { %v3867_v24 = vpop.eup %3866 }
 0xac7   :  { %v3869_v25 = vpop.eup %3868  ;;  %v1090_v26 = vadd.f32 1.0, %v3867_v24 }
 0xac8   :  { %v1091_v28 = vadd.f32 1.0, %v3869_v25  ;;  %v3871_v29 = vpop.eup %3870 }
 0xaca   :  { %3872 = vrcp.f32 %v1091_v28 }
 0xacb   :  { %3874 = vrcp.f32 %v1090_v26 }
 0xad4   :  { %v3873_v30 = vpop.eup %3872 }
 0xad5   :  { %v3875_v18 = vpop.eup %3874  ;;  %v1097_v31 = vsel %vm59_vm2, %v3871_v29, %v3873_v30 }
 0xad6   :  { %v1099_v32 = vmul.f32 %v3875_v18, %v1097_v31  ;;  %v1098_v33 = vmul.f32 %v3875_v18, %v987_v10  ;;  %v1386_v10 = vld [vmem:[%s5090_s6 + $0x70] sm:$0xff] }
 0xad7   :  { %v3477_v11 = vpack.c.bf16 %v1386_v10, %v1384_v8  ;;  %v1665_v10 = vld [vmem:[%s5091_s7 + $0x18] sm:$0xff] }
 0xad8   :  { %1101 = vrot.lane.b32.xlu1 %v1099_v32, %s4031_s27 }
 0xad9   :  { %3642 = vmatpush1.bf16.msra.mxu1 %v3477_v11 }
 0xb4a   :  { %v1102_v34 = vpop.permute.xlu1 %1101 }
 0xb4b   :  { %v1104_v35 = vadd.f32 %v1102_v34, %v1098_v33  ;;  %v1374_v33 = vld [vmem:[%s5090_s6 + $0x10] sm:$0xff] }
 0xb4d   :  { %3876 = vtanh.f32 %v1104_v35 }
 0xb57   :  { %v3877_v36 = vpop.eup %3876 }
 0xb58   :  { %v4427_v39 = vmul.f32 %v3877_v36, %v1097_v31  ;;  %v1373_v31 = vld [vmem:[%s5090_s6 + $0x8] sm:$0xff] }
 0xb5a   :  { %1108 = vrot.lane.b32.xlu0 %v4427_v39, %s4031_s27 }
 0xbcc   :  { %v1109_v40 = vpop.permute.xlu0 %1108 }
 0xbcd   :  { %1112 = vst.msk [vmem:[#allocation4 + $0x28] sm:$0xff] %vm526_vm3, %v1109_v40  ;;  %3228 = vmatmul.mubr.msk.f32.vlgmr.msra.gmra.mrb[12].mxu0 %vm413_vm1, %v1109_v40  ;;  %v1377_v40 = vld [vmem:[%s5090_s6 + $0x28] sm:$0xff] }
 0xbce   :  { %3458 = vmatpush1.bf16.msra.mxu0 %v4217_v37  ;;  %1304 = vmatprep.mubr.f32.mxu0 %v4030_v3 }
 0xbcf   :  { %3460 = vmatprep.subr.bf16.mxu0 %v4219_v38 }
 0xbd2   :  { %3462 = vmatpush1.bf16.msra.mxu0 %v4236_v43 }
 0xbd3   :  { %3464 = vmatprep.subr.bf16.mxu0 %v4239_v44 }
 0xbd6   :  { %3466 = vmatpush1.bf16.msra.mxu0 %v4256_v49 }
 0xbd7   :  { %3468 = vmatprep.subr.bf16.mxu0 %v4259_v50 }
 0xbda   :  { %3470 = vmatpush1.bf16.msra.mxu0 %v4270_v53 }
 0xbdb   :  { %3472 = vmatprep.subr.bf16.mxu0 %v3471_v63 }
 0xca0   :  { %v1189_v41 = vpop.f32.mrb[12].mxu0 }
 0xca1   :  { %v3668_v42 = vadd.f32 %v4312_v1, %v1189_v41  ;;  %v1191_v45 = vpop.f32.mrb[13].mxu0  ;;  %v1379_v41 = vld [vmem:[%s5090_s6 + $0x38] sm:$0xff] }
 0xca2   :  { %v3670_v37 = vadd.f32 %v4314_v2, %v1191_v45 }
 0xca3   :  { %v3229_v47 = vmul.f32 -1.442695, %v3668_v42 }
 0xca4   :  { %v3230_v48 = vmul.f32 -1.442695, %v3670_v37 }
 0xca5   :  { %3878 = vpow2.f32 %v3229_v47  ;;  %v1376_v47 = vld [vmem:[%s5090_s6 + $0x20] sm:$0xff] }
 0xca6   :  { %3880 = vpow2.f32 %v3230_v48  ;;  %v1378_v48 = vld [vmem:[%s5090_s6 + $0x30] sm:$0xff] }
 0xca7   :  { %3882 = vtanh.f32 %v3670_v37  ;;  %v3483_v37 = vpack.c.bf16 %v1379_v41, %v1377_v40  ;;  %v1993_v40 = vld [vmem:[%s5093_s10 + $0x8] sm:$0xff]  ;;  %v1995_v41 = vld [vmem:[%s5093_s10 + $0x18] sm:$0xff] }
 0xcaf   :  { %v3879_v38 = vpop.eup %3878 }
 0xcb0   :  { %v3881_v43 = vpop.eup %3880  ;;  %v1207_v51 = vadd.f32 1.0, %v3879_v38 }
 0xcb1   :  { %v1208_v44 = vadd.f32 1.0, %v3881_v43  ;;  %v3883_v49 = vpop.eup %3882  ;;  %v3485_v43 = vpack.c.bf16 %v1378_v48, %v1376_v47 }
 0xcb3   :  { %3884 = vrcp.f32 %v1208_v44  ;;  %v1673_v44 = vld [vmem:[%s5091_s7 + $0x58] sm:$0xff] }
 0xcb4   :  { %3886 = vrcp.f32 %v1207_v51  ;;  %v1671_v51 = vld [vmem:[%s5091_s7 + $0x48] sm:$0xff] }
 0xcbd   :  { %v3885_v50 = vpop.eup %3884 }
 0xcbe   :  { %v3887_v53 = vpop.eup %3886  ;;  %v1214_v52 = vsel %vm59_vm2, %v3883_v49, %v3885_v50  ;;  %v3487_v49 = vpack.c.bf16 %v1673_v44, %v1671_v51  ;;  %v1997_v51 = vld [vmem:[%s5093_s10 + $0x28] sm:$0xff]  ;;  %v1999_v44 = vld [vmem:[%s5093_s10 + $0x38] sm:$0xff] }
 0xcbf   :  { %v1216_v54 = vmul.f32 %v3887_v53, %v1214_v52  ;;  %v1215_v56 = vmul.f32 %v3887_v53, %v1104_v35 }
 0xcc1   :  { %1218 = vrot.lane.b32.xlu1 %v1216_v54, %s4031_s27 }
 0xd33   :  { %v1219_v58 = vpop.permute.xlu1 %1218 }
 0xd34   :  { %v4446_v59 = vadd.f32 %v1219_v58, %v1215_v56  ;;  %v1672_v56 = vld [vmem:[%s5091_s7 + $0x50] sm:$0xff] }
 0xd36   :  { %3888 = vtanh.f32 %v4446_v59 }
 0xd40   :  { %v3889_v13 = vpop.eup %3888 }
 0xd41   :  { %v4473_v16 = vmul.f32 %v3889_v13, %v1214_v52 }
 0xd43   :  { %1225 = vrot.lane.b32.xlu0 %v4473_v16, %s4031_s27 }
 0xd47   :  { %645 = vrot.lane.b32.xlu0 %v4347_v55, %s4032_s21 }
 0xdb5   :  { %v1226_v17 = vpop.permute.xlu0 %1225 }
 0xdb6   :  { %1229 = vst.msk [vmem:[#allocation4 + $0x30] sm:$0xff] %vm526_vm3, %v1226_v17  ;;  %3231 = vmatmul.mubr.msk.f32.vlgmr.msra.gmra.mrb[14].mxu0 %vm413_vm1, %v1226_v17  ;;  %v3267_v17 = vld [vmem:[%s5086_s12 + $0x8] sm:$0xff] }
 0xdb7   :  { %3474 = vmatpush1.bf16.msra.mxu0 %v3473_v5  ;;  %1476 = vmatprep.mubr.f32.mxu0 %v4030_v3  ;;  %v1674_v5 = vld [vmem:[%s5091_s7 + $0x60] sm:$0xff] }
 0xdb8   :  { %3476 = vmatprep.subr.bf16.mxu0 %v3475_v9  ;;  %v3493_v8 = vpack.c.bf16 %v1676_v6, %v1674_v5  ;;  %v1663_v9 = vld [vmem:[%s5091_s7 + $0x8] sm:$0xff]  ;;  %v2004_v5 = vld [vmem:[%s5093_s10 + $0x60] sm:$0xff]  ;;  %v2006_v6 = vld [vmem:[%s5093_s10 + $0x70] sm:$0xff] }
 0xdb9   :  { %v646_v19 = vpop.permute.xlu0 %645  ;;  %v3495_v13 = vpack.c.bf16 %v1665_v10, %v1663_v9 }
 0xdba   :  { %649 = vst.msk [vmem:[#allocation5 + $0x30] sm:$0xff] %vm526_vm3, %v646_v19 }
 0xdbb   :  { %3478 = vmatpush1.bf16.msra.mxu0 %v3477_v11  ;;  %v4570_v11 = vld [vmem:[#allocation4 + $0x8] sm:$0xff] }
 0xdc1   :  { %v4483_v21 = vld [vmem:[#allocation5 + $0x30] sm:$0xff] }
 0xdc2   :  { %3240 = vmatmul.mubr.msk.f32.vlgmr.msra.gmra.mrb[0].mxu1 %vm526_vm3, %v4483_v21 }
 0xdc3   :  { %1518 = vmatprep.mubr.f32.mxu1 %v4030_v3 }
 0xe89   :  { %v1306_v55 = vpop.f32.mrb[14].mxu0 }
 0xe8a   :  { %v3672_v22 = vadd.f32 %v4312_v1, %v1306_v55  ;;  %v1308_v23 = vpop.f32.mrb[15].mxu0  ;;  %v1375_v1 = vld [vmem:[%s5090_s6 + $0x18] sm:$0xff] }
 0xe8b   :  { %v3674_v24 = vadd.f32 %v4314_v2, %v1308_v23  ;;  %v1372_v2 = vld [vmem:[%s5090_s6] sm:$0xff]  ;;  %v3479_v32 = vpack.c.bf16 %v1375_v1, %v1373_v31  ;;  %v1667_v1 = vld [vmem:[%s5091_s7 + $0x28] sm:$0xff] }
 0xe8c   :  { %v3232_v25 = vmul.f32 -1.442695, %v3672_v22  ;;  %v3481_v34 = vpack.c.bf16 %v1374_v33, %v1372_v2  ;;  %v1669_v2 = vld [vmem:[%s5091_s7 + $0x38] sm:$0xff] }
 0xe8d   :  { %v3233_v26 = vmul.f32 -1.442695, %v3674_v24  ;;  %3480 = vmatprep.subr.bf16.mxu1 %v3479_v32  ;;  %v3499_v33 = vpack.c.bf16 %v1669_v2, %v1667_v1 }
 0xe8e   :  { %3890 = vpow2.f32 %v3232_v25  ;;  %3482 = vmatpush1.bf16.msra.mxu1 %v3481_v34 }
 0xe8f   :  { %3892 = vpow2.f32 %v3233_v26  ;;  %3484 = vmatprep.subr.bf16.mxu1 %v3483_v37  ;;  %v4658_v37 = vpack.c.bf16 %v1995_v41, %v1993_v40 }
 0xe90   :  { %3894 = vtanh.f32 %v3674_v24 }
 0xe92   :  { %3486 = vmatpush1.bf16.msra.mxu1 %v3485_v43  ;;  %v1994_v43 = vld [vmem:[%s5093_s10 + $0x10] sm:$0xff] }
 0xe93   :  { %3488 = vmatprep.subr.bf16.mxu1 %v3487_v49  ;;  %v4696_v49 = vpack.c.bf16 %v1999_v44, %v1997_v51 }
 0xe98   :  { %v3891_v28 = vpop.eup %3890 }
 0xe99   :  { %v3893_v29 = vpop.eup %3892  ;;  %v1323_v30 = vadd.f32 1.0, %v3891_v28 }
 0xe9a   :  { %v1324_v18 = vadd.f32 1.0, %v3893_v29  ;;  %v3895_v35 = vpop.eup %3894  ;;  %v1662_v29 = vld [vmem:[%s5091_s7] sm:$0xff] }
 0xe9c   :  { %3896 = vrcp.f32 %v1324_v18 }
 0xe9d   :  { %3898 = vrcp.f32 %v1323_v30  ;;  %v1664_v30 = vld [vmem:[%s5091_s7 + $0x10] sm:$0xff] }
 0xe9e   :  { %v3497_v32 = vpack.c.bf16 %v1664_v30, %v1662_v29 }
 0xea6   :  { %v3897_v36 = vpop.eup %3896 }
 0xea7   :  { %v3899_v42 = vpop.eup %3898  ;;  %v1330_v45 = vsel %vm59_vm2, %v3895_v35, %v3897_v36  ;;  %v1666_v35 = vld [vmem:[%s5091_s7 + $0x20] sm:$0xff]  ;;  %v1668_v36 = vld [vmem:[%s5091_s7 + $0x30] sm:$0xff] }
 0xea8   :  { %v1332_v38 = vmul.f32 %v3899_v42, %v1330_v45  ;;  %v1331_v50 = vmul.f32 %v3899_v42, %v4446_v59  ;;  %v1675_v59 = vld [vmem:[%s5091_s7 + $0x68] sm:$0xff]  ;;  %v3501_v42 = vpack.c.bf16 %v1668_v36, %v1666_v35 }
 0xea9   :  { %v3491_v4 = vpack.c.bf16 %v1677_v61, %v1675_v59  ;;  %v2000_v59 = vld [vmem:[%s5093_s10 + $0x40] sm:$0xff]  ;;  %v2002_v61 = vld [vmem:[%s5093_s10 + $0x50] sm:$0xff] }
 0xeaa   :  { %1334 = vrot.lane.b32.xlu1 %v1332_v38, %s4031_s27  ;;  %v1992_v38 = vld [vmem:[%s5093_s10] sm:$0xff] }
 0xeae   :  { %528 = vrot.lane.b32.xlu1 %v4327_v27, %s4032_s21  ;;  %v1670_v27 = vld [vmem:[%s5091_s7 + $0x40] sm:$0xff] }
 0xeaf   :  { %v3489_v0 = vpack.c.bf16 %v1672_v56, %v1670_v27  ;;  %v2003_v27 = vld [vmem:[%s5093_s10 + $0x58] sm:$0xff] }
 0xf1c   :  { %v1335_v53 = vpop.permute.xlu1 %1334 }
 0xf1d   :  { %v4526_v52 = vadd.f32 %v1335_v53, %v1331_v50  ;;  %v1996_v50 = vld [vmem:[%s5093_s10 + $0x20] sm:$0xff]  ;;  %v1998_v53 = vld [vmem:[%s5093_s10 + $0x30] sm:$0xff] }
 0xf1e   :  { %v4714_v56 = vpack.c.bf16 %v1998_v53, %v1996_v50 }
 0xf1f   :  { %3900 = vtanh.f32 %v4526_v52 }
 0xf20   :  { %v529_v54 = vpop.permute.xlu1 %528 }
 0xf21   :  { %532 = vst.msk [vmem:[#allocation5 + $0x38] sm:$0xff] %vm526_vm3, %v529_v54  ;;  %v2001_v54 = vld [vmem:[%s5093_s10 + $0x48] sm:$0xff] }
 0xf28   :  { %v4536_v58 = vld [vmem:[#allocation5 + $0x38] sm:$0xff] }
 0xf29   :  { %v3901_v62 = vpop.eup %3900  ;;  %3241 = vmatmul.mubr.msk.f32.gmra.mrb[2].mxu1 %vm526_vm3, %v4536_v58 }
 0xf2a   :  { %v1339_v63 = vmul.f32 %v3901_v62, %v1330_v45  ;;  %1613 = vmatprep.mubr.f32.mxu1 %v4030_v3  ;;  %v2005_v62 = vld [vmem:[%s5093_s10 + $0x68] sm:$0xff] }
 0xf2c   :  { %1346 = vrot.lane.b32.xlu1 %v1339_v63, %s4032_s21  ;;  %1341 = vrot.lane.b32.xlu0 %v1339_v63, %s4031_s27  ;;  %v2007_v63 = vld [vmem:[%s5093_s10 + $0x78] sm:$0xff] }
 0xf2d   :  { %3242 = vmatmul.mubr.msk.f32.vlgmr.msra.gmra.mrb[4].mxu1 %vm526_vm3, %v4555_v7 }
 0xf2e   :  { %1619 = vmatprep.mubr.f32.mxu1 %v4030_v3  ;;  %3490 = vmatpush1.bf16.msra.mxu1 %v3489_v0  ;;  %v4735_v0 = vpack.c.bf16 %v2002_v61, %v2000_v59 }
 0xf2f   :  { %3492 = vmatprep.subr.bf16.mxu1 %v3491_v4  ;;  %v4738_v4 = vpack.c.bf16 %v2007_v63, %v2005_v62 }
 0xf30   :  { %1113 = vrot.lane.b32.xlu1 %v4427_v39, %s4032_s21  ;;  %1230 = vrot.lane.b32.xlu0 %v4473_v16, %s4032_s21  ;;  %v4579_v39 = vld [vmem:[#allocation4 + $0x10] sm:$0xff]  ;;  %v4586_v16 = vld [vmem:[#allocation4 + $0x18] sm:$0xff] }
 0xf31   :  { %3243 = vmatmul.mubr.msk.f32.gmra.mrb[6].mxu1 %vm526_vm3, %v4570_v11 }
 0xf32   :  { %1625 = vmatprep.mubr.f32.mxu1 %v4030_v3  ;;  %3494 = vmatpush1.bf16.msra.mxu1 %v3493_v8  ;;  %v3266_v8 = vld [vmem:[%s5087_s11 + $0x8] sm:$0xff] }
 0xf33   :  { %3496 = vmatprep.subr.bf16.mxu1 %v3495_v13 }
 0xf34   :  { %879 = vrot.lane.b32.xlu1 %v4387_v46, %s4032_s21  ;;  %996 = vrot.lane.b32.xlu0 %v4407_v12, %s4032_s21  ;;  %v4591_v46 = vld [vmem:[#allocation4 + $0x20] sm:$0xff]  ;;  %v4596_v12 = vld [vmem:[#allocation4 + $0x28] sm:$0xff] }
 0xf35   :  { %3244 = vmatmul.mubr.msk.f32.gmra.mrb[8].mxu1 %vm526_vm3, %v4579_v39 }
 0xf36   :  { %1631 = vmatprep.mubr.f32.mxu1 %v4030_v3 }
 0xf38   :  { %762 = vrot.lane.b32.xlu0 %v4367_v20, %s4032_s21  ;;  %v4601_v20 = vld [vmem:[#allocation4 + $0x30] sm:$0xff]  ;;  %2109 = vrot.lane.b32.xlu1 %v3267_v17, %s4031_s27 }
 0xf39   :  { %3245 = vmatmul.mubr.msk.f32.gmra.mrb[10].mxu1 %vm526_vm3, %v4586_v16 }
 0xf3a   :  { %1637 = vmatprep.mubr.f32.mxu1 %v4030_v3 }
 0xf3d   :  { %3246 = vmatmul.mubr.msk.f32.gmra.mrb[12].mxu1 %vm526_vm3, %v4591_v46 }
 0xf3e   :  { %1643 = vmatprep.mubr.f32.mxu1 %v4030_v3 }
 0xf41   :  { %3247 = vmatmul.mubr.msk.f32.gmra.mrb[14].mxu1 %vm526_vm3, %v4596_v12 }
 0xf42   :  { %1649 = vmatprep.mubr.f32.mxu1 %v4030_v3 }
 0xf45   :  { %3248 = vmatmul.mubr.msk.f32.gmra.mrb[0].mxu1 %vm526_vm3, %v4601_v20 }
 0xf46   :  { %1655 = vmatprep.mubr.f32.mxu1 %v4030_v3 }
 0xf9e   :  { %v1347_v19 = vpop.permute.xlu1 %1346  ;;  %v1342_v55 = vpop.permute.xlu0 %1341 }
 0xf9f   :  { %1349 = vst.msk [vmem:[#allocation5] sm:$0xff] %vm526_vm3, %v1347_v19  ;;  %1345 = vst.msk [vmem:[#allocation4 + $0x38] sm:$0xff] %vm526_vm3, %v1342_v55 }
 0xfa0   :  { %1350 = vst.msk [vmem:[%s5092_s16] sm:$0xff] %vm413_vm1, %v1342_v55 }
 0xfa2   :  { %v1114_v22 = vpop.permute.xlu1 %1113  ;;  %v1231_v23 = vpop.permute.xlu0 %1230 }
 0xfa3   :  { %1117 = vst.msk [vmem:[#allocation5 + $0x10] sm:$0xff] %vm526_vm3, %v1114_v22  ;;  %1234 = vst.msk [vmem:[#allocation5 + $0x8] sm:$0xff] %vm526_vm3, %v1231_v23  ;;  %v1904_v22 = vld [vmem:[%s5094_s8] sm:$0x3] }
 0xfa4   :  { %v4807_v23 = vrot.slane %v1904_v22, %v4298_v57 }
 0xfa6   :  { %v880_v24 = vpop.permute.xlu1 %879  ;;  %v997_v25 = vpop.permute.xlu0 %996  ;;  %v1364_v26 = vld [vmem:[#allocation5] sm:$0xff]  ;;  %v4618_v28 = vld [vmem:[#allocation4 + $0x38] sm:$0xff] }
 0xfa7   :  { %883 = vst.msk [vmem:[#allocation5 + $0x20] sm:$0xff] %vm526_vm3, %v880_v24  ;;  %1000 = vst.msk [vmem:[#allocation5 + $0x18] sm:$0xff] %vm526_vm3, %v997_v25  ;;  %3234 = vmatmul.mubr.msk.f32.vlgmr.msra.gmra.mrb[16].mxu0 %vm526_vm3, %v1364_v26  ;;  %3249 = vmatmul.mubr.msk.f32.gmra.mrb[2].mxu1 %vm526_vm3, %v4618_v28  ;;  %v4810_v24 = vrot.slane %v1904_v22, %v4306_v60  ;;  %v1948_v25 = vld [vmem:[%s5095_s9] sm:$0x3] }
 0xfa8   :  { %1482 = vmatprep.mubr.f32.mxu0 %v4030_v3  ;;  %1742 = vmatprep.mubr.f32.mxu1 %v4030_v3  ;;  %v4821_v30 = vrot.slane %v1948_v25, %v4306_v60 }
 0xfaa   :  { %v763_v18 = vpop.permute.xlu0 %762  ;;  %v1365_v31 = vld [vmem:[#allocation5 + $0x8] sm:$0xff]  ;;  %v1366_v34 = vld [vmem:[#allocation5 + $0x10] sm:$0xff] }
 0xfab   :  { %766 = vst.msk [vmem:[#allocation5 + $0x28] sm:$0xff] %vm526_vm3, %v763_v18  ;;  %3235 = vmatmul.mubr.msk.f32.gmra.mrb[18].mxu0 %vm526_vm3, %v1365_v31 }
 0xfac   :  { %1488 = vmatprep.mubr.f32.mxu0 %v4030_v3 }
 0xfae   :  { %v1367_v45 = vld [vmem:[#allocation5 + $0x18] sm:$0xff]  ;;  %v1368_v47 = vld [vmem:[#allocation5 + $0x20] sm:$0xff] }
 0xfaf   :  { %3236 = vmatmul.mubr.msk.f32.gmra.mrb[20].mxu0 %vm526_vm3, %v1366_v34  ;;  %3250 = vmatmul.mubr.msk.f32.vlgmr.msra.gmra.mrb[2].mxu1 %vm526_vm3, %v1364_v26 }
 0xfb0   :  { %3498 = vmatpush1.bf16.msra.mxu1 %v3497_v32  ;;  %1494 = vmatprep.mubr.f32.mxu0 %v4030_v3 }
 0xfb1   :  { %1748 = vmatprep.mubr.f32.mxu1 %v4030_v3  ;;  %3500 = vmatprep.subr.bf16.mxu1 %v3499_v33 }
 0xfb2   :  { %v1369_v48 = vld [vmem:[#allocation5 + $0x28] sm:$0xff] }
 0xfb3   :  { %3237 = vmatmul.mubr.msk.f32.gmra.mrb[22].mxu0 %vm526_vm3, %v1367_v45  ;;  %3251 = vmatmul.mubr.msk.f32.gmra.mrb[0].mxu1 %vm526_vm3, %v1365_v31 }
 0xfb4   :  { %1500 = vmatprep.mubr.f32.mxu0 %v4030_v3  ;;  %1754 = vmatprep.mubr.f32.mxu1 %v4030_v3 }
 0xfb5   :  { %3502 = vmatpush1.bf16.msra.mxu1 %v3501_v42 }
 0xfb6   :  { %3504 = vmatprep.subr.bf16.mxu1 %v4658_v37 }
 0xfb7   :  { %3238 = vmatmul.mubr.msk.f32.gmra.mrb[24].mxu0 %vm526_vm3, %v1368_v47  ;;  %3252 = vmatmul.mubr.msk.f32.gmra.mrb[14].mxu1 %vm526_vm3, %v1366_v34 }
 0xfb8   :  { %1506 = vmatprep.mubr.f32.mxu0 %v4030_v3  ;;  %1760 = vmatprep.mubr.f32.mxu1 %v4030_v3 }
 0xfbb   :  { %3239 = vmatmul.mubr.msk.f32.gmra.mrb[26].mxu0 %vm526_vm3, %v1369_v48  ;;  %3253 = vmatmul.mubr.msk.f32.gmra.mrb[12].mxu1 %vm526_vm3, %v1367_v45 }
 0xfbc   :  { %1766 = vmatprep.mubr.f32.mxu1 %v4030_v3 }
 0xfbf   :  { %3254 = vmatmul.mubr.msk.f32.gmra.mrb[10].mxu1 %vm526_vm3, %v1368_v47 }
 0xfc0   :  { %1772 = vmatprep.mubr.f32.mxu1 %v4030_v3 }
 0xfc3   :  { %3255 = vmatmul.mubr.msk.f32.gmra.mrb[8].mxu1 %vm526_vm3, %v1369_v48 }
 0xfc4   :  { %1778 = vmatprep.mubr.f32.mxu1 %v4030_v3 }
 0xfc7   :  { %3256 = vmatmul.mubr.msk.f32.gmra.mrb[6].mxu1 %vm526_vm3, %v4483_v21  ;;  %v4694_v21 = vpack.c.bf16 %v1994_v43, %v1992_v38  ;;  %v2110_v38 = vpop.permute.xlu1 %2109 }
 0xfc8   :  { %1784 = vmatprep.mubr.f32.mxu1 %v4030_v3 }
 0xfcb   :  { %3257 = vmatmul.mubr.msk.f32.gmra.mrb[4].mxu1 %vm526_vm3, %v4536_v58  ;;  %v4717_v58 = vpack.c.bf16 %v2003_v27, %v2001_v54 }
 0xfcc   :  { %1855 = vmatprep.mubr.f32.mxu1 %v4030_v3 }
 0xfcf   :  { %3258 = vmatmul.mubr.msk.f32.vlgmr.msra.gmra.mrb[2].mxu1 %vm526_vm3, %v4555_v7  ;;  %v4750_v7 = vpack.c.bf16 %v2006_v6, %v2004_v5 }
 0xfd0   :  { %3506 = vmatpush1.bf16.msra.mxu1 %v4694_v21  ;;  %1861 = vmatprep.mubr.f32.mxu1 %v4030_v3 }
 0xfd1   :  { %3508 = vmatprep.subr.bf16.mxu1 %v4696_v49 }
 0xfd3   :  { %3259 = vmatmul.mubr.msk.f32.gmra.mrb[0].mxu1 %vm526_vm3, %v4570_v11 }
 0xfd4   :  { %1867 = vmatprep.mubr.f32.mxu1 %v4030_v3  ;;  %3510 = vmatpush1.bf16.msra.mxu1 %v4714_v56 }
 0xfd5   :  { %3512 = vmatprep.subr.bf16.mxu1 %v4717_v58 }
 0xfd7   :  { %3260 = vmatmul.mubr.msk.f32.gmra.mrb[14].mxu1 %vm526_vm3, %v4579_v39 }
 0xfd8   :  { %1873 = vmatprep.mubr.f32.mxu1 %v4030_v3  ;;  %3514 = vmatpush1.bf16.msra.mxu1 %v4735_v0 }
 0xfd9   :  { %3516 = vmatprep.subr.bf16.mxu1 %v4738_v4 }
 0xfdb   :  { %3261 = vmatmul.mubr.msk.f32.gmra.mrb[12].mxu1 %vm526_vm3, %v4586_v16 }
 0xfdc   :  { %1879 = vmatprep.mubr.f32.mxu1 %v4030_v3  ;;  %3518 = vmatpush1.bf16.msra.mxu1 %v4750_v7 }
 0xfdd   :  { %3520 = vmatprep.subr.bf16.mxu1 %v4658_v37 }
 0xfdf   :  { %3262 = vmatmul.mubr.msk.f32.gmra.mrb[10].mxu1 %vm526_vm3, %v4591_v46 }
 0xfe0   :  { %1885 = vmatprep.mubr.f32.mxu1 %v4030_v3 }
 0xfe3   :  { %3263 = vmatmul.mubr.msk.f32.gmra.mrb[8].mxu1 %vm526_vm3, %v4596_v12 }
 0xfe4   :  { %1891 = vmatprep.mubr.f32.mxu1 %v4030_v3 }
 0xfe7   :  { %3264 = vmatmul.mubr.msk.f32.gmra.mrb[6].mxu1 %vm526_vm3, %v4601_v20 }
 0xfe8   :  { %1897 = vmatprep.mubr.f32.mxu1 %v4030_v3 }
 0xfeb   :  { %3265 = vmatmul.mubr.msk.f32.gmra.mrb[4].mxu1 %vm526_vm3, %v4618_v28  ;;  %v4817_v28 = vrot.slane %v1948_v25, %v4298_v57 }
 0xfec   :  { %2081 = vmatprep.mubr.f32.mxu1 %v4030_v3 }
 0xff3   :  { %3268 = vmatmul.mubr.msk.f32.vlgmr.msra.gmra.mrb[4].mxu1 %vm413_vm1, %v3266_v8 }
 0xff4   :  { %3522 = vmatpush1.bf16.msra.mxu1 %v4694_v21  ;;  %2198 = vmatprep.mubr.f32.mxu1 %v4030_v3 }
 0xff5   :  { %3524 = vmatprep.subr.bf16.mxu1 %v4696_v49 }
 0xff8   :  { %3526 = vmatpush1.bf16.msra.mxu1 %v4714_v56 }
 0xff9   :  { %3528 = vmatprep.subr.bf16.mxu1 %v4717_v58 }
 0xffc   :  { %3530 = vmatpush1.bf16.msra.mxu1 %v4735_v0 }
 0xffd   :  { %3532 = vmatprep.subr.bf16.mxu1 %v4738_v4 }
0x1000   :  { %3534 = vmatpush1.bf16.msra.mxu1 %v4750_v7 }
0x1001   :  { %3536 = vmatprep.subr.bf16.mxu1 %v4658_v37 }
0x107a   :  { %v1478_v9 = vpop.f32.mrb[16].mxu0 }
0x107b   :  { %v1480_v10 = vpop.f32.mrb[17].mxu0  ;;  %v3675_v26 = vadd.f32 %v4807_v23, %v1478_v9 }
0x107c   :  { %v3678_v29 = vadd.f32 %v4810_v24, %v1480_v10 }
0x107d   :  { %v3676_v18 = vadd.f32 %v3675_v26, %v4817_v28 }
0x107e   :  { %v4783_v11 = vpop.f32.mrb[18].mxu0  ;;  %v3679_v1 = vadd.f32 %v3678_v29, %v4821_v30 }
0x107f   :  { %v4785_v13 = vpop.f32.mrb[19].mxu0  ;;  %v3681_v27 = vadd.f32 %v4807_v23, %v4783_v11 }
0x1080   :  { %v3684_v59 = vadd.f32 %v4810_v24, %v4785_v13 }
0x1081   :  { %v3682_v61 = vadd.f32 %v3681_v27, %v4817_v28 }
0x1082   :  { %v4787_v39 = vpop.f32.mrb[20].mxu0  ;;  %v3685_v63 = vadd.f32 %v3684_v59, %v4821_v30 }
0x1083   :  { %v4789_v16 = vpop.f32.mrb[21].mxu0 }
0x1086   :  { %v4791_v46 = vpop.f32.mrb[22].mxu0 }
0x1087   :  { %v4793_v12 = vpop.f32.mrb[23].mxu0 }
0x108a   :  { %v4795_v20 = vpop.f32.mrb[24].mxu0 }
0x108b   :  { %v4797_v17 = vpop.f32.mrb[25].mxu0 }
0x108e   :  { %v4799_v19 = vpop.f32.mrb[26].mxu0 }
0x108f   :  { %v4801_v55 = vpop.f32.mrb[27].mxu0 }
0x10c6   :  { %v2083_v31 = vpop.f32.mrb[4].mxu1 }
0x10c7   :  { %v3677_v2 = vadd.f32 %v3676_v18, %v2083_v31  ;;  %v2085_v32 = vpop.f32.mrb[5].mxu1 }
0x10c8   :  { %v3680_v33 = vadd.f32 %v3679_v1, %v2085_v32 }
0x10c9   :  { %v3269_v34 = vmul.f32 -1.442695, %v3677_v2 }
0x10ca   :  { %v3270_v35 = vmul.f32 -1.442695, %v3680_v33 }
0x10cb   :  { %3902 = vpow2.f32 %v3269_v34 }
0x10cc   :  { %3904 = vpow2.f32 %v3270_v35 }
0x10cd   :  { %3906 = vtanh.f32 %v3680_v33 }
0x10d5   :  { %v3903_v36 = vpop.eup %3902 }
0x10d6   :  { %v3905_v57 = vpop.eup %3904  ;;  %v2100_v40 = vadd.f32 1.0, %v3903_v36 }
0x10d7   :  { %v2101_v41 = vadd.f32 1.0, %v3905_v57  ;;  %v3907_v60 = vpop.eup %3906  ;;  %v3687_v57 = vadd.f32 %v4807_v23, %v4787_v39 }
0x10d9   :  { %3908 = vrcp.f32 %v2101_v41  ;;  %v3688_v41 = vadd.f32 %v3687_v57, %v4817_v28 }
0x10da   :  { %3910 = vrcp.f32 %v2100_v40  ;;  %v3690_v40 = vadd.f32 %v4810_v24, %v4789_v16 }
0x10e3   :  { %v3909_v42 = vpop.eup %3908 }
0x10e4   :  { %v3911_v45 = vpop.eup %3910  ;;  %v2107_v47 = vsel %vm59_vm2, %v3907_v60, %v3909_v42  ;;  %v3691_v42 = vadd.f32 %v3690_v40, %v4821_v30 }
0x10e5   :  { %v2113_v48 = vmul.f32 %v3911_v45, %v2107_v47  ;;  %v2112_v43 = vmul.f32 %v3911_v45, %v2110_v38 }
0x10e7   :  { %2115 = vrot.lane.b32.xlu0 %v2113_v48, %s4031_s27 }
0x1159   :  { %v2116_v51 = vpop.permute.xlu0 %2115 }
0x115a   :  { %v2118_v44 = vadd.f32 %v2116_v51, %v2112_v43 }
0x115c   :  { %3912 = vtanh.f32 %v2118_v44 }
0x1166   :  { %v3913_v50 = vpop.eup %3912 }
0x1167   :  { %v4828_v53 = vmul.f32 %v3913_v50, %v2107_v47 }
0x1169   :  { %2122 = vrot.lane.b32.xlu1 %v4828_v53, %s4031_s27 }
0x11db   :  { %v2123_v54 = vpop.permute.xlu1 %2122 }
0x11dc   :  { %2125 = vst.msk [vmem:[#allocation4] sm:$0xff] %vm526_vm3, %v2123_v54  ;;  %3271 = vmatmul.mubr.msk.f32.vlgmr.msra.gmra.mrb[6].mxu1 %vm413_vm1, %v2123_v54 }
0x11dd   :  { %3538 = vmatpush1.bf16.msra.mxu1 %v4694_v21  ;;  %2311 = vmatprep.mubr.f32.mxu1 %v4030_v3 }
0x11de   :  { %3540 = vmatprep.subr.bf16.mxu1 %v4696_v49 }
0x11e1   :  { %3542 = vmatpush1.bf16.msra.mxu1 %v4714_v56 }
0x11e2   :  { %3544 = vmatprep.subr.bf16.mxu1 %v4717_v58 }
0x11e5   :  { %3546 = vmatpush1.bf16.msra.mxu1 %v4735_v0 }
0x11e6   :  { %3548 = vmatprep.subr.bf16.mxu1 %v4738_v4 }
0x11e9   :  { %3550 = vmatpush1.bf16.msra.mxu1 %v4750_v7 }
0x11ea   :  { %3552 = vmatprep.subr.bf16.mxu1 %v4658_v37 }
0x12af   :  { %v2200_v62 = vpop.f32.mrb[6].mxu1 }
0x12b0   :  { %v3683_v5 = vadd.f32 %v3682_v61, %v2200_v62  ;;  %v2202_v6 = vpop.f32.mrb[7].mxu1 }
0x12b1   :  { %v3686_v8 = vadd.f32 %v3685_v63, %v2202_v6 }
0x12b2   :  { %v3272_v9 = vmul.f32 -1.442695, %v3683_v5 }
0x12b3   :  { %v3273_v10 = vmul.f32 -1.442695, %v3686_v8 }
0x12b4   :  { %3914 = vpow2.f32 %v3272_v9 }
0x12b5   :  { %3916 = vpow2.f32 %v3273_v10  ;;  %v3693_v10 = vadd.f32 %v4807_v23, %v4791_v46 }
0x12b6   :  { %3918 = vtanh.f32 %v3686_v8 }
0x12be   :  { %v3915_v22 = vpop.eup %3914 }
0x12bf   :  { %v3917_v25 = vpop.eup %3916  ;;  %v2217_v26 = vadd.f32 1.0, %v3915_v22  ;;  %v3696_v22 = vadd.f32 %v4810_v24, %v4793_v12 }
0x12c0   :  { %v2218_v29 = vadd.f32 1.0, %v3917_v25  ;;  %v3919_v11 = vpop.eup %3918  ;;  %v3694_v25 = vadd.f32 %v3693_v10, %v4817_v28 }
0x12c2   :  { %3920 = vrcp.f32 %v2218_v29  ;;  %v3697_v29 = vadd.f32 %v3696_v22, %v4821_v30 }
0x12c3   :  { %3922 = vrcp.f32 %v2217_v26 }
0x12cc   :  { %v3921_v13 = vpop.eup %3920 }
0x12cd   :  { %v3923_v18 = vpop.eup %3922  ;;  %v2224_v31 = vsel %vm59_vm2, %v3919_v11, %v3921_v13 }
0x12ce   :  { %v2226_v1 = vmul.f32 %v3923_v18, %v2224_v31  ;;  %v2225_v2 = vmul.f32 %v3923_v18, %v2118_v44 }
0x12d0   :  { %2228 = vrot.lane.b32.xlu0 %v2226_v1, %s4031_s27 }
0x1342   :  { %v2229_v32 = vpop.permute.xlu0 %2228 }
0x1343   :  { %v2231_v33 = vadd.f32 %v2229_v32, %v2225_v2 }
0x1345   :  { %3924 = vtanh.f32 %v2231_v33 }
0x134f   :  { %v3925_v34 = vpop.eup %3924 }
0x1350   :  { %v4852_v35 = vmul.f32 %v3925_v34, %v2224_v31 }
0x1352   :  { %2235 = vrot.lane.b32.xlu1 %v4852_v35, %s4031_s27 }
0x13c4   :  { %v2236_v36 = vpop.permute.xlu1 %2235 }
0x13c5   :  { %2238 = vst.msk [vmem:[#allocation4 + $0x8] sm:$0xff] %vm526_vm3, %v2236_v36  ;;  %3274 = vmatmul.mubr.msk.f32.vlgmr.msra.gmra.mrb[8].mxu1 %vm413_vm1, %v2236_v36 }
0x13c6   :  { %3554 = vmatpush1.bf16.msra.mxu1 %v4694_v21  ;;  %2424 = vmatprep.mubr.f32.mxu1 %v4030_v3 }
0x13c7   :  { %3556 = vmatprep.subr.bf16.mxu1 %v4696_v49 }
0x13ca   :  { %3558 = vmatpush1.bf16.msra.mxu1 %v4714_v56 }
0x13cb   :  { %3560 = vmatprep.subr.bf16.mxu1 %v4717_v58 }
0x13ce   :  { %3562 = vmatpush1.bf16.msra.mxu1 %v4735_v0 }
0x13cf   :  { %3564 = vmatprep.subr.bf16.mxu1 %v4738_v4 }
0x13d2   :  { %3566 = vmatpush1.bf16.msra.mxu1 %v4750_v7 }
0x13d3   :  { %3568 = vmatprep.subr.bf16.mxu1 %v4658_v37 }
0x1498   :  { %v2313_v60 = vpop.f32.mrb[8].mxu1 }
0x1499   :  { %v3689_v45 = vadd.f32 %v3688_v41, %v2313_v60  ;;  %v2315_v47 = vpop.f32.mrb[9].mxu1 }
0x149a   :  { %v3692_v48 = vadd.f32 %v3691_v42, %v2315_v47 }
0x149b   :  { %v3275_v38 = vmul.f32 -1.442695, %v3689_v45 }
0x149c   :  { %v3276_v43 = vmul.f32 -1.442695, %v3692_v48 }
0x149d   :  { %3926 = vpow2.f32 %v3275_v38  ;;  %v3699_v38 = vadd.f32 %v4807_v23, %v4795_v20 }
0x149e   :  { %3928 = vpow2.f32 %v3276_v43  ;;  %v3702_v43 = vadd.f32 %v4810_v24, %v4797_v17 }
0x149f   :  { %3930 = vtanh.f32 %v3692_v48 }
0x14a7   :  { %v3927_v51 = vpop.eup %3926 }
0x14a8   :  { %v3929_v44 = vpop.eup %3928  ;;  %v2330_v50 = vadd.f32 1.0, %v3927_v51  ;;  %v3700_v51 = vadd.f32 %v3699_v38, %v4817_v28 }
0x14a9   :  { %v2331_v54 = vadd.f32 1.0, %v3929_v44  ;;  %v3931_v39 = vpop.eup %3930 }
0x14ab   :  { %3932 = vrcp.f32 %v2331_v54 }
0x14ac   :  { %3934 = vrcp.f32 %v2330_v50  ;;  %v3703_v50 = vadd.f32 %v3702_v43, %v4821_v30 }
0x14b5   :  { %v3933_v16 = vpop.eup %3932 }
0x14b6   :  { %v3935_v27 = vpop.eup %3934  ;;  %v2337_v59 = vsel %vm59_vm2, %v3931_v39, %v3933_v16 }
0x14b7   :  { %v2339_v61 = vmul.f32 %v3935_v27, %v2337_v59  ;;  %v2338_v62 = vmul.f32 %v3935_v27, %v2231_v33 }
0x14b9   :  { %2341 = vrot.lane.b32.xlu0 %v2339_v61, %s4031_s27 }
0x152b   :  { %v2342_v63 = vpop.permute.xlu0 %2341 }
0x152c   :  { %v2344_v5 = vadd.f32 %v2342_v63, %v2338_v62 }
0x152e   :  { %3936 = vtanh.f32 %v2344_v5 }
0x1538   :  { %v3937_v6 = vpop.eup %3936 }
0x1539   :  { %v4876_v8 = vmul.f32 %v3937_v6, %v2337_v59 }
0x153b   :  { %2348 = vrot.lane.b32.xlu1 %v4876_v8, %s4031_s27 }
0x15ad   :  { %v2349_v9 = vpop.permute.xlu1 %2348 }
0x15ae   :  { %2351 = vst.msk [vmem:[#allocation4 + $0x10] sm:$0xff] %vm526_vm3, %v2349_v9  ;;  %3277 = vmatmul.mubr.msk.f32.vlgmr.msra.gmra.mrb[10].mxu1 %vm413_vm1, %v2349_v9 }
0x15af   :  { %3570 = vmatpush1.bf16.msra.mxu1 %v4694_v21  ;;  %2537 = vmatprep.mubr.f32.mxu1 %v4030_v3 }
0x15b0   :  { %3572 = vmatprep.subr.bf16.mxu1 %v4696_v49 }
0x15b3   :  { %3574 = vmatpush1.bf16.msra.mxu1 %v4714_v56 }
0x15b4   :  { %3576 = vmatprep.subr.bf16.mxu1 %v4717_v58 }
0x15b7   :  { %3578 = vmatpush1.bf16.msra.mxu1 %v4735_v0 }
0x15b8   :  { %3580 = vmatprep.subr.bf16.mxu1 %v4738_v4 }
0x15bb   :  { %3582 = vmatpush1.bf16.msra.mxu1 %v4750_v7 }
0x15bc   :  { %3584 = vmatprep.subr.bf16.mxu1 %v4658_v37 }
0x1681   :  { %v2426_v26 = vpop.f32.mrb[10].mxu1 }
0x1682   :  { %v3695_v11 = vadd.f32 %v3694_v25, %v2426_v26  ;;  %v2428_v13 = vpop.f32.mrb[11].mxu1 }
0x1683   :  { %v3698_v18 = vadd.f32 %v3697_v29, %v2428_v13 }
0x1684   :  { %v3278_v31 = vmul.f32 -1.442695, %v3695_v11 }
0x1685   :  { %v3279_v1 = vmul.f32 -1.442695, %v3698_v18 }
0x1686   :  { %3938 = vpow2.f32 %v3278_v31  ;;  %v3708_v31 = vadd.f32 %v4810_v24, %v4801_v55 }
0x1687   :  { %3940 = vpow2.f32 %v3279_v1 }
0x1688   :  { %3942 = vtanh.f32 %v3698_v18  ;;  %v3705_v18 = vadd.f32 %v4807_v23, %v4799_v19 }
0x168a   :  { %v3706_v1 = vadd.f32 %v3705_v18, %v4817_v28 }
0x1690   :  { %v3939_v2 = vpop.eup %3938 }
0x1691   :  { %v3941_v32 = vpop.eup %3940  ;;  %v2443_v33 = vadd.f32 1.0, %v3939_v2 }
0x1692   :  { %v2444_v34 = vadd.f32 1.0, %v3941_v32  ;;  %v3943_v46 = vpop.eup %3942  ;;  %v3709_v32 = vadd.f32 %v3708_v31, %v4821_v30 }
0x1694   :  { %3944 = vrcp.f32 %v2444_v34 }
0x1695   :  { %3946 = vrcp.f32 %v2443_v33 }
0x169e   :  { %v3945_v12 = vpop.eup %3944 }
0x169f   :  { %v3947_v36 = vpop.eup %3946  ;;  %v2450_v57 = vsel %vm59_vm2, %v3943_v46, %v3945_v12 }
0x16a0   :  { %v2452_v40 = vmul.f32 %v3947_v36, %v2450_v57  ;;  %v2451_v41 = vmul.f32 %v3947_v36, %v2344_v5 }
0x16a2   :  { %2454 = vrot.lane.b32.xlu0 %v2452_v40, %s4031_s27 }
0x1714   :  { %v2455_v60 = vpop.permute.xlu0 %2454 }
0x1715   :  { %v2457_v42 = vadd.f32 %v2455_v60, %v2451_v41 }
0x1717   :  { %3948 = vtanh.f32 %v2457_v42 }
0x1721   :  { %v3949_v45 = vpop.eup %3948 }
0x1722   :  { %v4900_v47 = vmul.f32 %v3949_v45, %v2450_v57 }
0x1724   :  { %2461 = vrot.lane.b32.xlu1 %v4900_v47, %s4031_s27 }
0x1796   :  { %v2462_v48 = vpop.permute.xlu1 %2461 }
0x1797   :  { %2464 = vst.msk [vmem:[#allocation4 + $0x18] sm:$0xff] %vm526_vm3, %v2462_v48  ;;  %3280 = vmatmul.mubr.msk.f32.vlgmr.msra.gmra.mrb[12].mxu1 %vm413_vm1, %v2462_v48 }
0x1798   :  { %3586 = vmatpush1.bf16.msra.mxu1 %v4694_v21  ;;  %2650 = vmatprep.mubr.f32.mxu1 %v4030_v3 }
0x1799   :  { %3588 = vmatprep.subr.bf16.mxu1 %v4696_v49 }
0x179c   :  { %3590 = vmatpush1.bf16.msra.mxu1 %v4714_v56 }
0x179d   :  { %3592 = vmatprep.subr.bf16.mxu1 %v4717_v58 }
0x17a0   :  { %3594 = vmatpush1.bf16.msra.mxu1 %v4735_v0 }
0x17a1   :  { %3596 = vmatprep.subr.bf16.mxu1 %v4738_v4 }
0x17a4   :  { %3598 = vmatpush1.bf16.msra.mxu1 %v4750_v7 }
0x17a5   :  { %3600 = vmatprep.subr.bf16.mxu1 %v4658_v37 }
0x186a   :  { %v2539_v44 = vpop.f32.mrb[12].mxu1 }
0x186b   :  { %v3701_v54 = vadd.f32 %v3700_v51, %v2539_v44  ;;  %v2541_v39 = vpop.f32.mrb[13].mxu1 }
0x186c   :  { %v3704_v16 = vadd.f32 %v3703_v50, %v2541_v39 }
0x186d   :  { %v3281_v27 = vmul.f32 -1.442695, %v3701_v54  ;;  %v3711_v54 = vadd.f32 %v4817_v28, %v4807_v23 }
0x186e   :  { %v3282_v59 = vmul.f32 -1.442695, %v3704_v16 }
0x186f   :  { %3950 = vpow2.f32 %v3281_v27 }
0x1870   :  { %3952 = vpow2.f32 %v3282_v59 }
0x1871   :  { %3954 = vtanh.f32 %v3704_v16 }
0x1879   :  { %v3951_v61 = vpop.eup %3950 }
0x187a   :  { %v3953_v62 = vpop.eup %3952  ;;  %v2556_v63 = vadd.f32 1.0, %v3951_v61 }
0x187b   :  { %v2557_v5 = vadd.f32 1.0, %v3953_v62  ;;  %v3955_v20 = vpop.eup %3954 }
0x187d   :  { %3956 = vrcp.f32 %v2557_v5 }
0x187e   :  { %3958 = vrcp.f32 %v2556_v63 }
0x1887   :  { %v3957_v17 = vpop.eup %3956 }
0x1888   :  { %v3959_v6 = vpop.eup %3958  ;;  %v2563_v9 = vsel %vm59_vm2, %v3955_v20, %v3957_v17 }
0x1889   :  { %v2565_v10 = vmul.f32 %v3959_v6, %v2563_v9  ;;  %v2564_v22 = vmul.f32 %v3959_v6, %v2457_v42 }
0x188b   :  { %2567 = vrot.lane.b32.xlu0 %v2565_v10, %s4031_s27 }
0x18fd   :  { %v2568_v25 = vpop.permute.xlu0 %2567 }
0x18fe   :  { %v2570_v26 = vadd.f32 %v2568_v25, %v2564_v22 }
0x1900   :  { %3960 = vtanh.f32 %v2570_v26 }
0x190a   :  { %v3961_v29 = vpop.eup %3960 }
0x190b   :  { %v4924_v11 = vmul.f32 %v3961_v29, %v2563_v9 }
0x190d   :  { %2574 = vrot.lane.b32.xlu1 %v4924_v11, %s4031_s27 }
0x197f   :  { %v2575_v13 = vpop.permute.xlu1 %2574 }
0x1980   :  { %2577 = vst.msk [vmem:[#allocation4 + $0x20] sm:$0xff] %vm526_vm3, %v2575_v13  ;;  %3283 = vmatmul.mubr.msk.f32.vlgmr.msra.gmra.mrb[14].mxu1 %vm413_vm1, %v2575_v13 }
0x1981   :  { %3602 = vmatpush1.bf16.msra.mxu1 %v4694_v21  ;;  %2763 = vmatprep.mubr.f32.mxu1 %v4030_v3 }
0x1982   :  { %3604 = vmatprep.subr.bf16.mxu1 %v4696_v49 }
0x1985   :  { %3606 = vmatpush1.bf16.msra.mxu1 %v4714_v56 }
0x1986   :  { %3608 = vmatprep.subr.bf16.mxu1 %v4717_v58 }
0x1989   :  { %3610 = vmatpush1.bf16.msra.mxu1 %v4735_v0 }
0x198a   :  { %3612 = vmatprep.subr.bf16.mxu1 %v4738_v4 }
0x198d   :  { %3614 = vmatpush1.bf16.msra.mxu1 %v4750_v7 }
0x198e   :  { %3616 = vmatprep.subr.bf16.mxu1 %v4658_v37 }
0x1a53   :  { %v2652_v2 = vpop.f32.mrb[14].mxu1 }
0x1a54   :  { %v3707_v33 = vadd.f32 %v3706_v1, %v2652_v2  ;;  %v2654_v34 = vpop.f32.mrb[15].mxu1 }
0x1a55   :  { %v3710_v46 = vadd.f32 %v3709_v32, %v2654_v34 }
0x1a56   :  { %v3284_v12 = vmul.f32 -1.442695, %v3707_v33 }
0x1a57   :  { %v3285_v36 = vmul.f32 -1.442695, %v3710_v46 }
0x1a58   :  { %3962 = vpow2.f32 %v3284_v12  ;;  %v2955_v12 = vld [vmem:[%s5096_s13 + $0x10] sm:$0xff] }
0x1a59   :  { %3964 = vpow2.f32 %v3285_v36 }
0x1a5a   :  { %3966 = vtanh.f32 %v3710_v46  ;;  %v2953_v46 = vld [vmem:[%s5096_s13] sm:$0xff] }
0x1a5b   :  { %v3631_v36 = vpack.c.bf16 %v2954_v15, %v2953_v46 }
0x1a5d   :  { %3632 = vmatprep.subr.bf16.mxu0 %v3631_v36 }
0x1a5e   :  { %3634 = vmatpush3.bf16.msra.mxu0 %v3631_v36 }
0x1a62   :  { %v3963_v57 = vpop.eup %3962 }
0x1a63   :  { %v3965_v37 = vpop.eup %3964  ;;  %v2669_v40 = vadd.f32 1.0, %v3963_v57 }
0x1a64   :  { %v2670_v41 = vadd.f32 1.0, %v3965_v37  ;;  %v3967_v19 = vpop.eup %3966 }
0x1a66   :  { %3968 = vrcp.f32 %v2670_v41 }
0x1a67   :  { %3970 = vrcp.f32 %v2669_v40 }
0x1a70   :  { %v3969_v55 = vpop.eup %3968 }
0x1a71   :  { %v3971_v60 = vpop.eup %3970  ;;  %v2676_v42 = vsel %vm59_vm2, %v3967_v19, %v3969_v55 }
0x1a72   :  { %v2678_v45 = vmul.f32 %v3971_v60, %v2676_v42  ;;  %v2677_v48 = vmul.f32 %v3971_v60, %v2570_v26 }
0x1a74   :  { %2680 = vrot.lane.b32.xlu0 %v2678_v45, %s4031_s27 }
0x1ae6   :  { %v2681_v38 = vpop.permute.xlu0 %2680 }
0x1ae7   :  { %v2683_v43 = vadd.f32 %v2681_v38, %v2677_v48 }
0x1ae9   :  { %3972 = vtanh.f32 %v2683_v43 }
0x1af3   :  { %v3973_v51 = vpop.eup %3972 }
0x1af4   :  { %v4948_v44 = vmul.f32 %v3973_v51, %v2676_v42  ;;  %v2929_v51 = vld [vmem:[#allocation4] sm:$0xff] }
0x1af6   :  { %2687 = vrot.lane.b32.xlu1 %v4948_v44, %s4031_s27 }
0x1b68   :  { %v2688_v50 = vpop.permute.xlu1 %2687 }
0x1b69   :  { %2690 = vst.msk [vmem:[#allocation4 + $0x28] sm:$0xff] %vm526_vm3, %v2688_v50  ;;  %3286 = vmatmul.mubr.msk.f32.vlgmr.msra.gmra.mrb[0].mxu1 %vm413_vm1, %v2688_v50 }
0x1b6a   :  { %3618 = vmatpush1.bf16.msra.mxu1 %v4694_v21  ;;  %2876 = vmatprep.mubr.f32.mxu1 %v4030_v3  ;;  %v3713_v21 = vadd.f32 %v4821_v30, %v4810_v24 }
0x1b6b   :  { %3620 = vmatprep.subr.bf16.mxu1 %v4696_v49 }
0x1b6e   :  { %3622 = vmatpush1.bf16.msra.mxu1 %v4714_v56 }
0x1b6f   :  { %3624 = vmatprep.subr.bf16.mxu1 %v4717_v58 }
0x1b72   :  { %3626 = vmatpush1.bf16.msra.mxu1 %v4735_v0 }
0x1b73   :  { %3628 = vmatprep.subr.bf16.mxu1 %v4738_v4 }
0x1b76   :  { %3630 = vmatpush1.bf16.msra.mxu1 %v4750_v7 }
0x1c3c   :  { %v2765_v39 = vpop.f32.mrb[0].mxu1 }
0x1c3d   :  { %v3712_v3 = vadd.f32 %v3711_v54, %v2765_v39  ;;  %v2767_v16 = vpop.f32.mrb[1].mxu1  ;;  %v2931_v39 = vld [vmem:[#allocation4 + $0x10] sm:$0xff] }
0x1c3e   :  { %v3714_v49 = vadd.f32 %v3713_v21, %v2767_v16 }
0x1c3f   :  { %v3287_v27 = vmul.f32 -1.442695, %v3712_v3 }
0x1c40   :  { %v3288_v56 = vmul.f32 -1.442695, %v3714_v49 }
0x1c41   :  { %3974 = vpow2.f32 %v3287_v27 }
0x1c42   :  { %3976 = vpow2.f32 %v3288_v56 }
0x1c43   :  { %3978 = vtanh.f32 %v3714_v49  ;;  %v2932_v49 = vld [vmem:[#allocation4 + $0x18] sm:$0xff] }
0x1c4b   :  { %v3975_v58 = vpop.eup %3974 }
0x1c4c   :  { %v3977_v0 = vpop.eup %3976  ;;  %v2782_v59 = vadd.f32 1.0, %v3975_v58 }
0x1c4d   :  { %v2783_v4 = vadd.f32 1.0, %v3977_v0  ;;  %v3979_v7 = vpop.eup %3978  ;;  %v2933_v0 = vld [vmem:[#allocation4 + $0x20] sm:$0xff] }
0x1c4f   :  { %3980 = vrcp.f32 %v2783_v4 }
0x1c50   :  { %3982 = vrcp.f32 %v2782_v59 }
0x1c59   :  { %v3981_v23 = vpop.eup %3980 }
0x1c5a   :  { %v3983_v28 = vpop.eup %3982  ;;  %v2789_v24 = vsel %vm59_vm2, %v3979_v7, %v3981_v23  ;;  %v2934_v7 = vld [vmem:[#allocation4 + $0x28] sm:$0xff] }
0x1c5b   :  { %v2791_v30 = vmul.f32 %v3983_v28, %v2789_v24  ;;  %v2790_v61 = vmul.f32 %v3983_v28, %v2683_v43 }
0x1c5d   :  { %2793 = vrot.lane.b32.xlu0 %v2791_v30, %s4031_s27 }
0x1ccf   :  { %v2794_v62 = vpop.permute.xlu0 %2793 }
0x1cd0   :  { %v2796_v63 = vadd.f32 %v2794_v62, %v2790_v61 }
0x1cd2   :  { %3984 = vtanh.f32 %v2796_v63 }
0x1cdc   :  { %v3985_v5 = vpop.eup %3984 }
0x1cdd   :  { %v2798_v20 = vmul.f32 %v3985_v5, %v2789_v24  ;;  %v3294_v5 = vld [vmem:[%s5097_s14] ss:$0 sm:$0xff] }
0x1cdf   :  { %2800 = vrot.lane.b32.xlu1 %v2798_v20, %s4031_s27 }
0x1d51   :  { %v2801_v17 = vpop.permute.xlu1 %2800 }
0x1d52   :  { %2803 = vst.msk [vmem:[#allocation4 + $0x30] sm:$0xff] %vm526_vm3, %v2801_v17  ;;  %3289 = vmatmul.mubr.msk.f32.vlgmr.msra.gmra.mrb[2].mxu1 %vm413_vm1, %v2801_v17 }
0x1d59   :  { %v2935_v28 = vld [vmem:[#allocation4 + $0x30] sm:$0xff] }
0x1e25   :  { %v2878_v6 = vpop.f32.mrb[2].mxu1 }
0x1e26   :  { %v3716_v9 = vadd.f32 %v3711_v54, %v2878_v6  ;;  %v2880_v10 = vpop.f32.mrb[3].mxu1  ;;  %v2930_v54 = vld [vmem:[#allocation4 + $0x8] sm:$0xff] }
0x1e27   :  { %v3718_v22 = vadd.f32 %v3713_v21, %v2880_v10 }
0x1e28   :  { %v3290_v25 = vmul.f32 -1.442695, %v3716_v9 }
0x1e29   :  { %v3291_v26 = vmul.f32 -1.442695, %v3718_v22 }
0x1e2a   :  { %3986 = vpow2.f32 %v3290_v25 }
0x1e2b   :  { %3988 = vpow2.f32 %v3291_v26 }
0x1e2c   :  { %3990 = vtanh.f32 %v3718_v22 }
0x1e34   :  { %v3987_v29 = vpop.eup %3986 }
0x1e35   :  { %v3989_v13 = vpop.eup %3988  ;;  %v2895_v18 = vadd.f32 1.0, %v3987_v29 }
0x1e36   :  { %v2896_v31 = vadd.f32 1.0, %v3989_v13  ;;  %v3991_v1 = vpop.eup %3990 }
0x1e38   :  { %3992 = vrcp.f32 %v2896_v31 }
0x1e39   :  { %3994 = vrcp.f32 %v2895_v18 }
0x1e42   :  { %v3993_v2 = vpop.eup %3992 }
0x1e43   :  { %v3995_v32 = vpop.eup %3994  ;;  %v2902_v33 = vsel %vm59_vm2, %v3991_v1, %v3993_v2 }
0x1e44   :  { %v2904_v34 = vmul.f32 %v3995_v32, %v2902_v33 }
0x1e46   :  { %2906 = vrot.lane.b32.xlu0 %v2904_v34, %s4031_s27 }
0x1e4a   :  { %2804 = vrot.lane.b32.xlu0 %v2798_v20, %s4032_s21 }
0x1e4e   :  { %2578 = vrot.lane.b32.xlu0 %v4924_v11, %s4032_s21 }
0x1e52   :  { %2352 = vrot.lane.b32.xlu0 %v4876_v8, %s4032_s21  ;;  %v2956_v8 = vld [vmem:[%s5096_s13 + $0x18] sm:$0xff] }
0x1e53   :  { %v3635_v11 = vpack.c.bf16 %v2956_v8, %v2955_v12 }
0x1e55   :  { %3636 = vmatprep.subr.bf16.mxu0 %v3635_v11 }
0x1e56   :  { %2126 = vrot.lane.b32.xlu0 %v4828_v53, %s4032_s21  ;;  %3638 = vmatpush3.bf16.msra.mxu0 %v3635_v11  ;;  %v2903_v53 = vmul.f32 %v3995_v32, %v2796_v63 }
0x1eb8   :  { %v2907_v57 = vpop.permute.xlu0 %2906 }
0x1eb9   :  { %v4994_v37 = vadd.f32 %v2907_v57, %v2903_v53 }
0x1ebb   :  { %3996 = vtanh.f32 %v4994_v37 }
0x1ebc   :  { %v2805_v40 = vpop.permute.xlu0 %2804 }
0x1ebd   :  { %2807 = vst.msk [vmem:[#allocation5 + $0x8] sm:$0xff] %vm526_vm3, %v2805_v40 }
0x1ec0   :  { %v2579_v41 = vpop.permute.xlu0 %2578 }
0x1ec1   :  { %2581 = vst.msk [vmem:[#allocation5 + $0x18] sm:$0xff] %vm526_vm3, %v2579_v41 }
0x1ec4   :  { %v2353_v19 = vpop.permute.xlu0 %2352  ;;  %v2938_v38 = vld [vmem:[#allocation5 + $0x8] sm:$0xff] }
0x1ec5   :  { %v3997_v55 = vpop.eup %3996  ;;  %2355 = vst.msk [vmem:[#allocation5 + $0x28] sm:$0xff] %vm526_vm3, %v2353_v19 }
0x1ec6   :  { %v2911_v60 = vmul.f32 %v3997_v55, %v2902_v33 }
0x1ec8   :  { %2917 = vrot.lane.b32.xlu1 %v2911_v60, %s4032_s21  ;;  %v2127_v42 = vpop.permute.xlu0 %2126 }
0x1ec9   :  { %2129 = vst.msk [vmem:[#allocation5 + $0x38] sm:$0xff] %vm526_vm3, %v2127_v42 }
0x1ecc   :  { %2691 = vrot.lane.b32.xlu1 %v4948_v44, %s4032_s21  ;;  %v2942_v56 = vld [vmem:[#allocation5 + $0x28] sm:$0xff] }
0x1ecd   :  { %v2950_v23 = vadd.f32 %v2942_v56, %v2934_v7 }
0x1ed0   :  { %2465 = vrot.lane.b32.xlu1 %v4900_v47, %s4032_s21  ;;  %v2946_v47 = vadd.f32 %v2938_v38, %v2930_v54  ;;  %v2944_v62 = vld [vmem:[#allocation5 + $0x38] sm:$0xff] }
0x1ed4   :  { %2239 = vrot.lane.b32.xlu1 %v4852_v35, %s4032_s21  ;;  %v2940_v35 = vld [vmem:[#allocation5 + $0x18] sm:$0xff] }
0x1ed5   :  { %v2948_v27 = vadd.f32 %v2940_v35, %v2932_v49 }
0x1ed8   :  { %2913 = vrot.lane.b32.xlu1 %v2911_v60, %s4031_s27 }
0x1f3a   :  { %v2918_v45 = vpop.permute.xlu1 %2917 }
0x1f3b   :  { %2920 = vst.msk [vmem:[#allocation5] sm:$0xff] %vm526_vm3, %v2918_v45 }
0x1f3e   :  { %v2692_v48 = vpop.permute.xlu1 %2691 }
0x1f3f   :  { %2694 = vst.msk [vmem:[#allocation5 + $0x10] sm:$0xff] %vm526_vm3, %v2692_v48 }
0x1f42   :  { %v2466_v43 = vpop.permute.xlu1 %2465  ;;  %v2937_v50 = vld [vmem:[#allocation5] sm:$0xff] }
0x1f43   :  { %2468 = vst.msk [vmem:[#allocation5 + $0x20] sm:$0xff] %vm526_vm3, %v2466_v43  ;;  %v2945_v44 = vadd.f32 %v2937_v50, %v2929_v51 }
0x1f45   :  { %3323 = vmatprep.mubr.msk.f32.mxu0 %vm526_vm3, %v2945_v44 }
0x1f46   :  { %v2240_v21 = vpop.permute.xlu1 %2239  ;;  %3324 = vmatmul.mubr.msk.f32.vlgmr.msra.gmra.mrb[28].mxu0 %vm526_vm3, %v2946_v47  ;;  %v2939_v3 = vld [vmem:[#allocation5 + $0x10] sm:$0xff] }
0x1f47   :  { %2242 = vst.msk [vmem:[#allocation5 + $0x30] sm:$0xff] %vm526_vm3, %v2240_v21  ;;  %v2947_v16 = vadd.f32 %v2939_v3, %v2931_v39 }
0x1f49   :  { %3326 = vmatprep.mubr.msk.f32.mxu0 %vm526_vm3, %v2947_v16 }
0x1f4a   :  { %v2914_v58 = vpop.permute.xlu1 %2913  ;;  %3327 = vmatmul.mubr.msk.f32.gmra.mrb[30].mxu0 %vm526_vm3, %v2948_v27  ;;  %v2941_v59 = vld [vmem:[#allocation5 + $0x20] sm:$0xff] }
0x1f4b   :  { %2916 = vst.msk [vmem:[#allocation4 + $0x38] sm:$0xff] %vm526_vm3, %v2914_v58  ;;  %v2949_v4 = vadd.f32 %v2941_v59, %v2933_v0 }
0x1f4c   :  { %3292 = vst.msk [vmem:[%s5092_s16 + $0x8] sm:$0xff] %vm413_vm1, %v2914_v58 }
0x1f4d   :  { %3329 = vmatprep.mubr.msk.f32.mxu0 %vm526_vm3, %v2949_v4 }
0x1f4e   :  { %3330 = vmatmul.mubr.msk.f32.gmra.mrb[32].mxu0 %vm526_vm3, %v2950_v23  ;;  %v2943_v24 = vld [vmem:[#allocation5 + $0x30] sm:$0xff] }
0x1f4f   :  { %v2951_v30 = vadd.f32 %v2943_v24, %v2935_v28 }
0x1f51   :  { %3332 = vmatprep.mubr.msk.f32.mxu0 %vm526_vm3, %v2951_v30 }
0x1f52   :  { %v2936_v61 = vld [vmem:[#allocation4 + $0x38] sm:$0xff] }
0x1f53   :  { %v2952_v63 = vadd.f32 %v2944_v62, %v2936_v61 }
0x1f55   :  { %3333 = vmatmul.mubr.msk.f32.gmra.mrb[34].mxu0 %vm526_vm3, %v2952_v63 }
0x2019   :  { %v3325_v20 = vpop.f32.mrb[28].mxu0 }
0x201a   :  { %v3060_v17 = vadd.f32 %v3325_v20, %v3294_v5  ;;  %v3054_v6 = vpop.f32.mrb[29].mxu0 }
0x201b   :  { %v3055_v9 = vadd.f32 %v3294_v5, %v3054_v6 }
0x201c   :  { %v3095_v10 = vsel %vm3093_vm4, %v3060_v17, -1e+30 }
0x201d   :  { %3104 = vmax.xlane.f32.xlu1 %v3095_v10  ;;  %v3328_v22 = vpop.f32.mrb[30].mxu0  ;;  %v3094_v25 = vsel %vm3093_vm4, %v3055_v9, -1e+30 }
0x201e   :  { %v3070_v26 = vadd.f32 %v3328_v22, %v3294_v5  ;;  %v3064_v29 = vpop.f32.mrb[31].mxu0  ;;  %3102 = vmax.xlane.f32.xlu0 %v3094_v25 }
0x201f   :  { %v3065_v18 = vadd.f32 %v3294_v5, %v3064_v29 }
0x2020   :  { %v3097_v13 = vsel %vm3093_vm4, %v3070_v26, -1e+30 }
0x2021   :  { %v3331_v31 = vpop.f32.mrb[32].mxu0  ;;  %v3096_v34 = vsel %vm3093_vm4, %v3065_v18, -1e+30 }
0x2022   :  { %v3074_v1 = vpop.f32.mrb[33].mxu0  ;;  %3108 = vmax.xlane.f32.xlu0 %v3097_v13  ;;  %v3080_v32 = vadd.f32 %v3331_v31, %v3294_v5 }
0x2023   :  { %v3075_v2 = vadd.f32 %v3294_v5, %v3074_v1 }
0x2024   :  { %v3099_v36 = vsel %vm3093_vm4, %v3080_v32, -1e+30 }
0x2025   :  { %v3098_v33 = vsel %vm3093_vm4, %v3075_v2, -1e+30 }
0x2026   :  { %3110 = vmax.xlane.f32.xlu1 %v3098_v33  ;;  %3106 = vmax.xlane.f32.xlu0 %v3096_v34 }
0x2028   :  { %v3334_v46 = vpop.f32.mrb[34].mxu0 }
0x2029   :  { %v3090_v15 = vadd.f32 %v3334_v46, %v3294_v5  ;;  %v3084_v12 = vpop.f32.mrb[35].mxu0 }
0x202a   :  { %v3085_v8 = vadd.f32 %v3294_v5, %v3084_v12  ;;  %3112 = vmax.xlane.f32.xlu0 %v3099_v36 }
0x202b   :  { %v3101_v53 = vsel %vm3093_vm4, %v3090_v15, -1e+30 }
0x202c   :  { %v3100_v11 = vsel %vm3093_vm4, %v3085_v8, -1e+30 }
0x202d   :  { %3114 = vmax.xlane.f32.xlu1 %v3100_v11 }
0x202e   :  { %3116 = vmax.xlane.f32.xlu0 %v3101_v53 }
0x20aa   :  { %v3105_v57 = vpop.xlane.xlu1 %3104 }
0x20ab   :  { %v3119_v40 = vsub.f32 %v3095_v10, %v3105_v57  ;;  %v3103_v41 = vpop.xlane.xlu0 %3102 }
0x20ac   :  { %v3118_v19 = vsub.f32 %v3094_v25, %v3103_v41 }
0x20ad   :  { %v3128_v55 = vmul.f32 1.442695, %v3119_v40 }
0x20ae   :  { %v3126_v60 = vmul.f32 1.442695, %v3118_v19 }
0x20af   :  { %3998 = vpow2.f32 %v3128_v55  ;;  %v3109_v42 = vpop.xlane.xlu0 %3108 }
0x20b0   :  { %4000 = vpow2.f32 %v3126_v60  ;;  %v3121_v45 = vsub.f32 %v3097_v13, %v3109_v42 }
0x20b2   :  { %v3132_v48 = vmul.f32 1.442695, %v3121_v45 }
0x20b3   :  { %v3111_v38 = vpop.xlane.xlu1 %3110  ;;  %v3107_v43 = vpop.xlane.xlu0 %3106 }
0x20b4   :  { %4002 = vpow2.f32 %v3132_v48  ;;  %v3120_v51 = vsub.f32 %v3096_v34, %v3107_v43  ;;  %v3122_v50 = vsub.f32 %v3098_v33, %v3111_v38 }
0x20b6   :  { %v3130_v44 = vmul.f32 1.442695, %v3120_v51  ;;  %v3134_v35 = vmul.f32 1.442695, %v3122_v50 }
0x20b7   :  { %v3113_v14 = vpop.xlane.xlu0 %3112 }
0x20b8   :  { %v3123_v54 = vsub.f32 %v3099_v36, %v3113_v14  ;;  %4004 = vpow2.f32 %v3130_v44 }
0x20b9   :  { %v3999_v47 = vpop.eup %3998 }
0x20ba   :  { %v4001_v21 = vpop.eup %4000  ;;  %v3136_v39 = vmul.f32 1.442695, %v3123_v54  ;;  %v3115_v3 = vpop.xlane.xlu1 %3114  ;;  %3144 = vadd.xlane.f32.xlu0 %v3999_v47 }
0x20bb   :  { %v3124_v16 = vsub.f32 %v3100_v11, %v3115_v3  ;;  %3142 = vadd.xlane.f32.xlu1 %v4001_v21  ;;  %v3117_v49 = vpop.xlane.xlu0 %3116 }
0x20bc   :  { %4006 = vpow2.f32 %v3136_v39  ;;  %v3125_v27 = vsub.f32 %v3101_v53, %v3117_v49 }
0x20bd   :  { %4008 = vpow2.f32 %v3134_v35  ;;  %v3138_v56 = vmul.f32 1.442695, %v3124_v16 }
0x20be   :  { %v4003_v58 = vpop.eup %4002  ;;  %v3140_v0 = vmul.f32 1.442695, %v3125_v27 }
0x20bf   :  { %4010 = vpow2.f32 %v3138_v56  ;;  %3148 = vadd.xlane.f32.xlu0 %v4003_v58 }
0x20c0   :  { %4012 = vpow2.f32 %v3140_v0 }
0x20c2   :  { %v4005_v59 = vpop.eup %4004 }
0x20c3   :  { %3146 = vadd.xlane.f32.xlu1 %v4005_v59 }
0x20c6   :  { %v4007_v4 = vpop.eup %4006 }
0x20c7   :  { %v4009_v7 = vpop.eup %4008  ;;  %3152 = vadd.xlane.f32.xlu0 %v4007_v4 }
0x20c8   :  { %3150 = vadd.xlane.f32.xlu1 %v4009_v7 }
0x20c9   :  { %v4011_v23 = vpop.eup %4010 }
0x20ca   :  { %v4013_v28 = vpop.eup %4012 }
0x20cb   :  { %3156 = vadd.xlane.f32.xlu0 %v4013_v28 }
0x20cc   :  { %3154 = vadd.xlane.f32.xlu1 %v4011_v23 }
0x20dd   :  { %1352 = vrot.lane.b32.xlu1 %v4526_v52, %s4031_s27 }
0x20e1   :  { %2924 = vrot.lane.b32.xlu0 %v4994_v37, %s4031_s27 }
0x2147   :  { %v3145_v24 = vpop.xlane.xlu0 %3144 }
0x2148   :  { %4014 = vrcp.f32 %v3145_v24  ;;  %v3143_v30 = vpop.xlane.xlu1 %3142 }
0x2149   :  { %4016 = vrcp.f32 %v3143_v30 }
0x214c   :  { %v3149_v61 = vpop.xlane.xlu0 %3148 }
0x214d   :  { %4018 = vrcp.f32 %v3149_v61 }
0x2150   :  { %v3147_v62 = vpop.xlane.xlu1 %3146 }
0x2151   :  { %4020 = vrcp.f32 %v3147_v62 }
0x2152   :  { %v4015_v63 = vpop.eup %4014 }
0x2153   :  { %v4017_v5 = vpop.eup %4016  ;;  %v3167_v20 = vmul.f32 %v4015_v63, %v3999_v47 }
0x2154   :  { %v3166_v17 = vmul.f32 %v4017_v5, %v4001_v21  ;;  %v3153_v6 = vpop.xlane.xlu0 %3152 }
0x2155   :  { %3175 = vst [vmem:[%s5098_s15 + $0x8] sm:$0xff] %v3167_v20  ;;  %v3151_v52 = vpop.xlane.xlu1 %3150  ;;  %4022 = vrcp.f32 %v3153_v6 }
0x2156   :  { %3174 = vst [vmem:[%s5098_s15] sm:$0xff] %v3166_v17  ;;  %4024 = vrcp.f32 %v3151_v52 }
0x2157   :  { %v4019_v37 = vpop.eup %4018 }
0x2158   :  { %v3169_v9 = vmul.f32 %v4019_v37, %v4003_v58  ;;  %v3157_v10 = vpop.xlane.xlu0 %3156 }
0x2159   :  { %v3155_v22 = vpop.xlane.xlu1 %3154  ;;  %4026 = vrcp.f32 %v3157_v10 }
0x215a   :  { %3177 = vst [vmem:[%s5098_s15 + $0x18] sm:$0xff] %v3169_v9  ;;  %4028 = vrcp.f32 %v3155_v22 }
0x215b   :  { %v4021_v25 = vpop.eup %4020 }
0x215c   :  { %v2925_v26 = vpop.permute.xlu0 %2924  ;;  %v3168_v29 = vmul.f32 %v4021_v25, %v4005_v59 }
0x215d   :  { %v1353_v13 = vpop.permute.xlu1 %1352  ;;  %3293 = vst.msk [vmem:[%s5099_s17 + $0x8] sm:$0xff] %vm413_vm1, %v2925_v26 }
0x215e   :  { %1355 = vst.msk [vmem:[%s5099_s17] sm:$0xff] %vm413_vm1, %v1353_v13  ;;  %3176 = vst [vmem:[%s5098_s15 + $0x10] sm:$0xff] %v3168_v29 }
0x215f   :  { %v4023_v18 = vpop.eup %4022 }
0x2160   :  { %v4025_v31 = vpop.eup %4024  ;;  %v3171_v1 = vmul.f32 %v4023_v18, %v4007_v4 }
0x2161   :  { %v3170_v2 = vmul.f32 %v4025_v31, %v4009_v7 }
0x2162   :  { %3179 = vst [vmem:[%s5098_s15 + $0x28] sm:$0xff] %v3171_v1 }
0x2163   :  { %v4027_v32 = vpop.eup %4026  ;;  %3178 = vst [vmem:[%s5098_s15 + $0x20] sm:$0xff] %v3170_v2 }
0x2164   :  { %v4029_v33 = vpop.eup %4028  ;;  %v3173_v34 = vmul.f32 %v4027_v32, %v4013_v28 }
0x2165   :  { %v3172_v46 = vmul.f32 %v4029_v33, %v4011_v23 }
0x2166   :  { %3181 = vst [vmem:[%s5098_s15 + $0x38] sm:$0xff] %v3173_v34 }
0x2167   :  { %3180 = vst [vmem:[%s5098_s15 + $0x30] sm:$0xff] %v3172_v46 }

</bundles_post_ra>
